<compile_context>
chip_gen: v7x
topology: tpu7x:2x2x1
jax: 0.10.0
libtpu: 0.0.40
codegen_flags: <defaults>
</compile_context>

<pallas_src>
import jax
import jax.numpy as jnp
from jax.experimental import pallas as pl
from jax.experimental.pallas import tpu as pltpu

LATENT = 100
LATENT_PAD = 128          # pad K of the first dot to a full lane width
H1, H2, H3 = 256, 512, 1024
OUT = 784
OUT_PAD = 896             # 7 * 128 -> lane-dense output stores


def _leaky_relu(x, slope=0.2):
    return jnp.where(x >= 0, x, slope * x)


def _round_up(n, m):
    return ((n + m - 1) // m) * m


# --------------------------------------------------------------------------
# Kernel: full 4-layer MLP for one batch tile.  Weights are bf16, activations
# are cast to bf16 right before each MXU dot, accumulation is f32.
# --------------------------------------------------------------------------
def generator_kernel(x_ref,
                     w1_ref, b1_ref,
                     w2_ref, b2_ref,
                     w3_ref, b3_ref,
                     w4_ref, b4_ref,
                     o_ref):
    h = x_ref[...].astype(jnp.bfloat16)

    h = jnp.dot(h, w1_ref[...], preferred_element_type=jnp.float32) + b1_ref[...]
    h = _leaky_relu(h).astype(jnp.bfloat16)

    h = jnp.dot(h, w2_ref[...], preferred_element_type=jnp.float32) + b2_ref[...]
    h = _leaky_relu(h).astype(jnp.bfloat16)

    h = jnp.dot(h, w3_ref[...], preferred_element_type=jnp.float32) + b3_ref[...]
    h = _leaky_relu(h).astype(jnp.bfloat16)

    h = jnp.dot(h, w4_ref[...], preferred_element_type=jnp.float32) + b4_ref[...]

    o_ref[...] = h.astype(o_ref.dtype)


# --------------------------------------------------------------------------
# One-time parameter preparation: cast weights to bf16, pad w1 (K: 100->128),
# pad w4/b4 (N: 784->896).  Biases stay f32 (tiny).
# --------------------------------------------------------------------------
def prepare_params(params):
    w1 = jnp.zeros((LATENT_PAD, H1), jnp.bfloat16).at[:LATENT, :].set(
        params["w1"].astype(jnp.bfloat16))
    b1 = params["b1"].astype(jnp.float32)
    w2 = params["w2"].astype(jnp.bfloat16)
    b2 = params["b2"].astype(jnp.float32)
    w3 = params["w3"].astype(jnp.bfloat16)
    b3 = params["b3"].astype(jnp.float32)
    w4 = jnp.zeros((H3, OUT_PAD), jnp.bfloat16).at[:, :OUT].set(
        params["w4"].astype(jnp.bfloat16))
    b4 = jnp.zeros((1, OUT_PAD), jnp.float32).at[:, :OUT].set(
        params["b4"].astype(jnp.float32))
    return (w1, b1, w2, b2, w3, b3, w4, b4)


# --------------------------------------------------------------------------
# Wrapper: pad latent/batch, tile the batch with a 1-D "parallel" grid,
# keep weights VMEM-resident (constant index_map), slice the padded output.
# --------------------------------------------------------------------------
def generator_forward(x, prepped, *, block_b=128):
    B = x.shape[0]
    # Use a batch tile of at most block_b rows; for small batches shrink it to
    # the next multiple of 8 so the (8, 128) block constraint is satisfied.
    block_b = min(block_b, _round_up(B, 8))
    B_pad = _round_up(B, block_b)

    x_pad = jnp.zeros((B_pad, LATENT_PAD), jnp.float32).at[:B, :LATENT].set(
        x.astype(jnp.float32))

    w1, b1, w2, b2, w3, b3, w4, b4 = prepped
    grid = (B_pad // block_b,)

    in_specs = [
        pl.BlockSpec((block_b, LATENT_PAD), lambda i: (i, 0)),   # x tile
        pl.BlockSpec(w1.shape, lambda i: (0, 0)),                # weights/biases:
        pl.BlockSpec(b1.shape, lambda i: (0, 0)),                # constant block index
        pl.BlockSpec(w2.shape, lambda i: (0, 0)),                # -> fetched once,
        pl.BlockSpec(b2.shape, lambda i: (0, 0)),                #    VMEM-resident
        pl.BlockSpec(w3.shape, lambda i: (0, 0)),                #    across grid steps
        pl.BlockSpec(b3.shape, lambda i: (0, 0)),
        pl.BlockSpec(w4.shape, lambda i: (0, 0)),
        pl.BlockSpec(b4.shape, lambda i: (0, 0)),
    ]
    out_spec = pl.BlockSpec((block_b, OUT_PAD), lambda i: (i, 0))

    out_pad = pl.pallas_call(
        generator_kernel,
        out_shape=jax.ShapeDtypeStruct((B_pad, OUT_PAD), jnp.float32),
        grid=grid,
        in_specs=in_specs,
        out_specs=out_spec,
        compiler_params=pltpu.CompilerParams(
            dimension_semantics=("parallel",)),
    )(x_pad, w1, b1, w2, b2, w3, b3, w4, b4)

    return out_pad[:B, :OUT]


# --------------------------------------------------------------------------
# Parameter init (mimics PyTorch nn.Linear default: U(+-1/sqrt(fan_in))),
# stored as (in, out) so forward is y = x @ W + b.
# --------------------------------------------------------------------------
def init_params(key):
    dims = [LATENT, H1, H2, H3, OUT]
    params = {}
    keys = jax.random.split(key, 2 * (len(dims) - 1))
    for i, (fan_in, fan_out) in enumerate(zip(dims[:-1], dims[1:])):
        bound = 1.0 / jnp.sqrt(fan_in)
        kw, kb = keys[2 * i], keys[2 * i + 1]
        params[f"w{i+1}"] = jax.random.uniform(
            kw, (fan_in, fan_out), jnp.float32, minval=-bound, maxval=bound)
        params[f"b{i+1}"] = jax.random.uniform(
            kb, (1, fan_out), jnp.float32, minval=-bound, maxval=bound)
    return params


# --------------------------------------------------------------------------
# Plain-JAX reference that mirrors the kernel's bf16-weight / bf16-activation,
# f32-accumulate numerics.
# --------------------------------------------------------------------------
def reference_forward(x, params):
    def lin(h, w, b):
        hb = h.astype(jnp.bfloat16).astype(jnp.float32)
        wb = w.astype(jnp.bfloat16).astype(jnp.float32)
        return jnp.dot(hb, wb, precision=jax.lax.Precision.HIGHEST) + b

    h = _leaky_relu(lin(x, params["w1"], params["b1"]))
    h = _leaky_relu(lin(h, params["w2"], params["b2"]))
    h = _leaky_relu(lin(h, params["w3"], params["b3"]))
    return lin(h, params["w4"], params["b4"])


if __name__ == "__main__":
    key = jax.random.PRNGKey(0)
    k_param, k_x = jax.random.split(key)

    params = init_params(k_param)
    prepped = prepare_params(params)

    B = 8  # small batch of latent noise vectors
    x = jax.random.normal(k_x, (B, LATENT), jnp.float32)

    out = generator_forward(x, prepped)
    out = jax.block_until_ready(out)

    ref = reference_forward(x, params)
    assert out.shape == (B, OUT), out.shape
    assert jnp.allclose(out, ref, atol=2e-3, rtol=2e-3), \
        f"mismatch vs reference, max err {jnp.max(jnp.abs(out - ref))}"

    print("KERNEL_OK")
</pallas_src>

<mosaic_0001>
module attributes {stable_mosaic.version = 11 : i64} {
  func.func @generator_kernel(%arg0: i32, %arg1: memref<8x128xf32, #tpu.memory_space<vmem>>, %arg2: memref<128x256xbf16, #tpu.memory_space<vmem>>, %arg3: memref<1x256xf32, #tpu.memory_space<vmem>>, %arg4: memref<256x512xbf16, #tpu.memory_space<vmem>>, %arg5: memref<1x512xf32, #tpu.memory_space<vmem>>, %arg6: memref<512x1024xbf16, #tpu.memory_space<vmem>>, %arg7: memref<1x1024xf32, #tpu.memory_space<vmem>>, %arg8: memref<1024x896xbf16, #tpu.memory_space<vmem>>, %arg9: memref<1x896xf32, #tpu.memory_space<vmem>>, %arg10: memref<8x896xf32, #tpu.memory_space<vmem>>) attributes {dimension_semantics = [#tpu.dimension_semantics<parallel>], iteration_bounds = array<i64: 1>, scalar_prefetch = 0 : i64, scratch_operands = 0 : i64, tpu.core_type = #tpu.core_type<tc>, window_params = [{transform_indices = @transform_0, window_bounds = array<i64: 8, 128>}, {pipeline_mode = #tpu.pipeline_mode<synchronous>, transform_indices = @transform_1, window_bounds = array<i64: 128, 256>}, {pipeline_mode = #tpu.pipeline_mode<synchronous>, transform_indices = @transform_2, window_bounds = array<i64: 1, 256>}, {pipeline_mode = #tpu.pipeline_mode<synchronous>, transform_indices = @transform_3, window_bounds = array<i64: 256, 512>}, {pipeline_mode = #tpu.pipeline_mode<synchronous>, transform_indices = @transform_4, window_bounds = array<i64: 1, 512>}, {pipeline_mode = #tpu.pipeline_mode<synchronous>, transform_indices = @transform_5, window_bounds = array<i64: 512, 1024>}, {pipeline_mode = #tpu.pipeline_mode<synchronous>, transform_indices = @transform_6, window_bounds = array<i64: 1, 1024>}, {pipeline_mode = #tpu.pipeline_mode<synchronous>, transform_indices = @transform_7, window_bounds = array<i64: 1024, 896>}, {pipeline_mode = #tpu.pipeline_mode<synchronous>, transform_indices = @transform_8, window_bounds = array<i64: 1, 896>}, {transform_indices = @transform_9, window_bounds = array<i64: 8, 896>}]} {
    %c0 = arith.constant 0 : index
    %c0_0 = arith.constant 0 : index
    %0 = vector.load %arg1[%c0, %c0_0] : memref<8x128xf32, #tpu.memory_space<vmem>>, vector<8x128xf32>
    %1 = arith.truncf %0 : vector<8x128xf32> to vector<8x128xbf16>
    %c0_1 = arith.constant 0 : index
    %c0_2 = arith.constant 0 : index
    %2 = vector.load %arg2[%c0_1, %c0_2] : memref<128x256xbf16, #tpu.memory_space<vmem>>, vector<128x256xbf16>
    %cst = arith.constant dense<0.000000e+00> : vector<8x256xf32>
    %3 = tpu.matmul %1, %2, %cst {dimension_numbers = #tpu.dot_dimension_numbers<[1], [0], [0], [1], [0, 0, 1, 1], [], []>} : vector<8x128xbf16>, vector<128x256xbf16>, vector<8x256xf32> -> vector<8x256xf32>
    %c0_3 = arith.constant 0 : index
    %c0_4 = arith.constant 0 : index
    %4 = vector.load %arg3[%c0_3, %c0_4] : memref<1x256xf32, #tpu.memory_space<vmem>>, vector<1x256xf32>
    %5 = vector.broadcast %4 : vector<1x256xf32> to vector<8x256xf32>
    %6 = arith.addf %3, %5 : vector<8x256xf32>
    %cst_5 = arith.constant 0.000000e+00 : f32
    %7 = vector.broadcast %cst_5 : f32 to vector<8x256xf32>
    %8 = arith.cmpf oge, %6, %7 : vector<8x256xf32>
    %cst_6 = arith.constant 2.000000e-01 : f32
    %9 = vector.broadcast %cst_6 : f32 to vector<8x256xf32>
    %10 = arith.mulf %9, %6 : vector<8x256xf32>
    %11 = arith.select %8, %6, %10 : vector<8x256xi1>, vector<8x256xf32>
    %12 = arith.truncf %11 : vector<8x256xf32> to vector<8x256xbf16>
    %c0_7 = arith.constant 0 : index
    %c0_8 = arith.constant 0 : index
    %13 = vector.load %arg4[%c0_7, %c0_8] : memref<256x512xbf16, #tpu.memory_space<vmem>>, vector<256x512xbf16>
    %cst_9 = arith.constant dense<0.000000e+00> : vector<8x512xf32>
    %14 = tpu.matmul %12, %13, %cst_9 {dimension_numbers = #tpu.dot_dimension_numbers<[1], [0], [0], [1], [0, 0, 1, 1], [], []>} : vector<8x256xbf16>, vector<256x512xbf16>, vector<8x512xf32> -> vector<8x512xf32>
    %c0_10 = arith.constant 0 : index
    %c0_11 = arith.constant 0 : index
    %15 = vector.load %arg5[%c0_10, %c0_11] : memref<1x512xf32, #tpu.memory_space<vmem>>, vector<1x512xf32>
    %16 = vector.broadcast %15 : vector<1x512xf32> to vector<8x512xf32>
    %17 = arith.addf %14, %16 : vector<8x512xf32>
    %cst_12 = arith.constant 0.000000e+00 : f32
    %18 = vector.broadcast %cst_12 : f32 to vector<8x512xf32>
    %19 = arith.cmpf oge, %17, %18 : vector<8x512xf32>
    %cst_13 = arith.constant 2.000000e-01 : f32
    %20 = vector.broadcast %cst_13 : f32 to vector<8x512xf32>
    %21 = arith.mulf %20, %17 : vector<8x512xf32>
    %22 = arith.select %19, %17, %21 : vector<8x512xi1>, vector<8x512xf32>
    %23 = arith.truncf %22 : vector<8x512xf32> to vector<8x512xbf16>
    %c0_14 = arith.constant 0 : index
    %c0_15 = arith.constant 0 : index
    %24 = vector.load %arg6[%c0_14, %c0_15] : memref<512x1024xbf16, #tpu.memory_space<vmem>>, vector<512x1024xbf16>
    %cst_16 = arith.constant dense<0.000000e+00> : vector<8x1024xf32>
    %25 = tpu.matmul %23, %24, %cst_16 {dimension_numbers = #tpu.dot_dimension_numbers<[1], [0], [0], [1], [0, 0, 1, 1], [], []>} : vector<8x512xbf16>, vector<512x1024xbf16>, vector<8x1024xf32> -> vector<8x1024xf32>
    %c0_17 = arith.constant 0 : index
    %c0_18 = arith.constant 0 : index
    %26 = vector.load %arg7[%c0_17, %c0_18] : memref<1x1024xf32, #tpu.memory_space<vmem>>, vector<1x1024xf32>
    %27 = vector.broadcast %26 : vector<1x1024xf32> to vector<8x1024xf32>
    %28 = arith.addf %25, %27 : vector<8x1024xf32>
    %cst_19 = arith.constant 0.000000e+00 : f32
    %29 = vector.broadcast %cst_19 : f32 to vector<8x1024xf32>
    %30 = arith.cmpf oge, %28, %29 : vector<8x1024xf32>
    %cst_20 = arith.constant 2.000000e-01 : f32
    %31 = vector.broadcast %cst_20 : f32 to vector<8x1024xf32>
    %32 = arith.mulf %31, %28 : vector<8x1024xf32>
    %33 = arith.select %30, %28, %32 : vector<8x1024xi1>, vector<8x1024xf32>
    %34 = arith.truncf %33 : vector<8x1024xf32> to vector<8x1024xbf16>
    %c0_21 = arith.constant 0 : index
    %c0_22 = arith.constant 0 : index
    %35 = vector.load %arg8[%c0_21, %c0_22] : memref<1024x896xbf16, #tpu.memory_space<vmem>>, vector<1024x896xbf16>
    %cst_23 = arith.constant dense<0.000000e+00> : vector<8x896xf32>
    %36 = tpu.matmul %34, %35, %cst_23 {dimension_numbers = #tpu.dot_dimension_numbers<[1], [0], [0], [1], [0, 0, 1, 1], [], []>} : vector<8x1024xbf16>, vector<1024x896xbf16>, vector<8x896xf32> -> vector<8x896xf32>
    %c0_24 = arith.constant 0 : index
    %c0_25 = arith.constant 0 : index
    %37 = vector.load %arg9[%c0_24, %c0_25] : memref<1x896xf32, #tpu.memory_space<vmem>>, vector<1x896xf32>
    %38 = vector.broadcast %37 : vector<1x896xf32> to vector<8x896xf32>
    %39 = arith.addf %36, %38 : vector<8x896xf32>
    %c0_26 = arith.constant 0 : index
    %c0_27 = arith.constant 0 : index
    %40 = vector.load %arg10[%c0_26, %c0_27] : memref<8x896xf32, #tpu.memory_space<vmem>>, vector<8x896xf32>
    tpu.vector_store %arg10[%c0_26, %c0_27], %39 {strides = array<i32>} : memref<8x896xf32, #tpu.memory_space<vmem>>, vector<8x896xf32>,
    return
  }
  func.func @transform_0(%arg0: i32) -> (i32, i32) {
    %c0_i32 = arith.constant 0 : i32
    %c0_i32_0 = arith.constant 0 : i32
    return %arg0, %c0_i32 : i32, i32
  }
  func.func @transform_1(%arg0: i32) -> (i32, i32) {
    %c0_i32 = arith.constant 0 : i32
    %c0_i32_0 = arith.constant 0 : i32
    %c0_i32_1 = arith.constant 0 : i32
    return %c0_i32, %c0_i32_0 : i32, i32
  }
  func.func @transform_2(%arg0: i32) -> (i32, i32) {
    %c0_i32 = arith.constant 0 : i32
    %c0_i32_0 = arith.constant 0 : i32
    %c0_i32_1 = arith.constant 0 : i32
    return %c0_i32, %c0_i32_0 : i32, i32
  }
  func.func @transform_3(%arg0: i32) -> (i32, i32) {
    %c0_i32 = arith.constant 0 : i32
    %c0_i32_0 = arith.constant 0 : i32
    %c0_i32_1 = arith.constant 0 : i32
    return %c0_i32, %c0_i32_0 : i32, i32
  }
  func.func @transform_4(%arg0: i32) -> (i32, i32) {
    %c0_i32 = arith.constant 0 : i32
    %c0_i32_0 = arith.constant 0 : i32
    %c0_i32_1 = arith.constant 0 : i32
    return %c0_i32, %c0_i32_0 : i32, i32
  }
  func.func @transform_5(%arg0: i32) -> (i32, i32) {
    %c0_i32 = arith.constant 0 : i32
    %c0_i32_0 = arith.constant 0 : i32
    %c0_i32_1 = arith.constant 0 : i32
    return %c0_i32, %c0_i32_0 : i32, i32
  }
  func.func @transform_6(%arg0: i32) -> (i32, i32) {
    %c0_i32 = arith.constant 0 : i32
    %c0_i32_0 = arith.constant 0 : i32
    %c0_i32_1 = arith.constant 0 : i32
    return %c0_i32, %c0_i32_0 : i32, i32
  }
  func.func @transform_7(%arg0: i32) -> (i32, i32) {
    %c0_i32 = arith.constant 0 : i32
    %c0_i32_0 = arith.constant 0 : i32
    %c0_i32_1 = arith.constant 0 : i32
    return %c0_i32, %c0_i32_0 : i32, i32
  }
  func.func @transform_8(%arg0: i32) -> (i32, i32) {
    %c0_i32 = arith.constant 0 : i32
    %c0_i32_0 = arith.constant 0 : i32
    %c0_i32_1 = arith.constant 0 : i32
    return %c0_i32, %c0_i32_0 : i32, i32
  }
  func.func @transform_9(%arg0: i32) -> (i32, i32) {
    %c0_i32 = arith.constant 0 : i32
    %c0_i32_0 = arith.constant 0 : i32
    return %arg0, %c0_i32 : i32, i32
  }
}

</mosaic_0001>

<bundles_post_ra>
// kernel: tpu_custom_call.1
= control target key start
LH: loop header
LB: loop body
LE: loop exit
PB: predicated region body
PF: predicated region fallthrough
CT: control target
= control target key end

     0   :  { %14 = vsyncpa [#allocation3], 0  ;;  %s8589_s0 = inlined_call_operand.hbm [shape: f32[8,128], index: 0, kind: input, shape index: {}]   ;;  %s8590_s1 = inlined_call_operand.hbm [shape: bf16[128,256], index: 1, kind: input, shape index: {}]   ;;  %s8591_s2 = inlined_call_operand.hbm [shape: f32[1,256], index: 2, kind: input, shape index: {}]   ;;  %s8592_s3 = inlined_call_operand.hbm [shape: bf16[256,512], index: 3, kind: input, shape index: {}]   ;;  %s8593_s4 = inlined_call_operand.hbm [shape: f32[1,512], index: 4, kind: input, shape index: {}]   ;;  %s8594_s5 = inlined_call_operand.hbm [shape: bf16[512,1024], index: 5, kind: input, shape index: {}]   ;;  %s8595_s6 = inlined_call_operand.hbm [shape: f32[1,1024], index: 6, kind: input, shape index: {}]   ;;  %s8596_s7 = inlined_call_operand.hbm [shape: bf16[1024,896], index: 7, kind: input, shape index: {}]   ;;  %s8597_s8 = inlined_call_operand.hbm [shape: f32[1,896], index: 8, kind: input, shape index: {}]   ;;  %s8598_s9 = inlined_call_operand.hbm [shape: f32[8,896], index: 9, kind: output, shape index: {}]  }
   0x1   :  { %15 = vsyncpa [#allocation6], 0 }
   0x2   :  { %16 = vsyncpa [#allocation9], 0 }
   0x3   :  { %17 = vsyncpa [#allocation12], 0 }
   0x4   :  { %18 = vsyncpa [#allocation15], 0 }
   0x5   :  { %19 = vsyncpa [#allocation4], 0  ;;  %s8227_s30 = smov [#allocation5]   ;;  %s7995_s13 = scalar_lea.hbm %s8590_s1, 2048 }
   0x6   :  { %s35_s10 = sshll.u32 %s8227_s30, 4  ;;  %p7996_p0 = scmp.ne.s32.totalorder %s8590_s1, %s7995_s13  ;;  %s36_s10 = int_to_ptr.vmem [resolvable:$true] %s35_s10 }
   0x7   :  { %p7999_p1 = scmp.lt.u32.totalorder %s7995_s13, %s8590_s1 }
   0x9   :  { %p8001_p2 = pnand %p7999_p1, %p7996_p0 }
   0xb   :  { %8004 = shalt.err (!%p8001_p2)
}
   0xc   :  { %s8005_s18 = scalar_lea.vmem %s36_s10, 2048  ;;  %p8010_p4 = scmp.lt.s32.totalorder %s36_s10, %s36_s10 }
   0xd   :  { %p8006_p3 = scmp.ne.s32.totalorder %s36_s10, %s8005_s18  ;;  %p8011_p5 = scmp.lt.s32.totalorder %s8005_s18, %s8005_s18 }
   0xf   :  { %p8012_p6 = por %p8011_p5, %p8010_p4 }
  0x11   :  { %p8013_p7 = pnand %p8012_p6, %p8006_p3 }
  0x13   :  { %8016 = shalt.err (!%p8013_p7)
}
  0x14   :  { %s8228_s19 = smov 128   ;;  %s8229_s20 = smov 8  }
  0x15   :  { %41 = dma.hbm_to_vmem [thread:$0]  %s8590_s1, 2048, %s36_s10, [#allocation6], %s8228_s19, %s8228_s19, %s8229_s20  }
  0x16   :  { %s8230_s23 = smov [#allocation8]   ;;  %s8017_s27 = scalar_lea.hbm %s8592_s3, 8192 }
  0x17   :  { %s57_s24 = sshll.u32 %s8230_s23, 4  ;;  %p8018_p8 = scmp.ne.s32.totalorder %s8592_s3, %s8017_s27  ;;  %s58_s24 = int_to_ptr.vmem [resolvable:$true] %s57_s24 }
  0x18   :  { %p8021_p9 = scmp.lt.u32.totalorder %s8017_s27, %s8592_s3 }
  0x1a   :  { %p8023_p10 = pnand %p8021_p9, %p8018_p8 }
  0x1c   :  { %8026 = shalt.err (!%p8023_p10)
}
  0x1d   :  { %s8027_s12 = scalar_lea.vmem %s58_s24, 8192  ;;  %p8032_p12 = scmp.lt.s32.totalorder %s58_s24, %s58_s24 }
  0x1e   :  { %p8028_p11 = scmp.ne.s32.totalorder %s58_s24, %s8027_s12  ;;  %p8033_p13 = scmp.lt.s32.totalorder %s8027_s12, %s8027_s12 }
  0x20   :  { %p8034_p0 = por %p8033_p13, %p8032_p12 }
  0x22   :  { %p8035_p1 = pnand %p8034_p0, %p8028_p11 }
  0x24   :  { %8038 = shalt.err (!%p8035_p1)
}
  0x25   :  { %s8231_s1 = smov 256   ;;  %s8232_s10 = smov 16  }
  0x26   :  { %63 = dma.hbm_to_vmem [thread:$0]  %s8592_s3, 8192, %s58_s24, [#allocation9], %s8231_s1, %s8231_s1, %s8232_s10  }
  0x27   :  { %s8233_s15 = smov [#allocation11]   ;;  %s8039_s19 = scalar_lea.hbm %s8594_s5, 32768 }
  0x28   :  { %s79_s16 = sshll.u32 %s8233_s15, 4  ;;  %p8040_p2 = scmp.ne.s32.totalorder %s8594_s5, %s8039_s19  ;;  %s80_s16 = int_to_ptr.vmem [resolvable:$true] %s79_s16 }
  0x29   :  { %p8043_p3 = scmp.lt.u32.totalorder %s8039_s19, %s8594_s5 }
  0x2b   :  { %p8045_p4 = pnand %p8043_p3, %p8040_p2 }
  0x2d   :  { %8048 = shalt.err (!%p8045_p4)
}
  0x2e   :  { %s8049_s25 = scalar_lea.vmem %s80_s16, 32768  ;;  %p8054_p6 = scmp.lt.s32.totalorder %s80_s16, %s80_s16 }
  0x2f   :  { %p8050_p5 = scmp.ne.s32.totalorder %s80_s16, %s8049_s25  ;;  %p8055_p7 = scmp.lt.s32.totalorder %s8049_s25, %s8049_s25 }
  0x31   :  { %p8056_p8 = por %p8055_p7, %p8054_p6 }
  0x33   :  { %p8057_p9 = pnand %p8056_p8, %p8050_p5 }
  0x35   :  { %8060 = shalt.err (!%p8057_p9)
}
  0x36   :  { %s8234_s3 = smov 512   ;;  %s8235_s24 = smov 32  }
  0x37   :  { %85 = dma.hbm_to_vmem [thread:$0]  %s8594_s5, 32768, %s80_s16, [#allocation12], %s8234_s3, %s8234_s3, %s8235_s24  }
  0x38   :  { %s8236_s28 = smov [#allocation14]   ;;  %s8061_s12 = scalar_lea.hbm %s8596_s7, 57344 }
  0x39   :  { %s101_s29 = sshll.u32 %s8236_s28, 4  ;;  %p8062_p10 = scmp.ne.s32.totalorder %s8596_s7, %s8061_s12  ;;  %s102_s29 = int_to_ptr.vmem [resolvable:$true] %s101_s29 }
  0x3a   :  { %p8065_p11 = scmp.lt.u32.totalorder %s8061_s12, %s8596_s7 }
  0x3c   :  { %p8067_p12 = pnand %p8065_p11, %p8062_p10 }
  0x3e   :  { %8070 = shalt.err (!%p8067_p12)
}
  0x3f   :  { %s8071_s15 = scalar_lea.vmem %s102_s29, 57344  ;;  %p8076_p0 = scmp.lt.s32.totalorder %s102_s29, %s102_s29 }
  0x40   :  { %p8072_p13 = scmp.ne.s32.totalorder %s102_s29, %s8071_s15  ;;  %p8077_p1 = scmp.lt.s32.totalorder %s8071_s15, %s8071_s15 }
  0x42   :  { %p8078_p2 = por %p8077_p1, %p8076_p0 }
  0x44   :  { %p8079_p3 = pnand %p8078_p2, %p8072_p13 }
  0x46   :  { %8082 = shalt.err (!%p8079_p3)
}
  0x47   :  { %s8237_s5 = smov 448   ;;  %s8238_s16 = smov 28  }
  0x48   :  { %107 = dma.hbm_to_vmem [thread:$0]  %s8596_s7, 57344, %s102_s29, [#allocation15], %s8237_s5, %s8237_s5, %s8238_s16  }
  0x49   :  { %s8239_s19 = smov [#allocation2]   ;;  %s8240_s21 = smov [#allocation7]  }
  0x4a   :  { %s26_s20 = sshll.u32 %s8239_s19, 4  ;;  %s48_s22 = sshll.u32 %s8240_s21, 4  ;;  %s27_s20 = int_to_ptr.vmem [resolvable:$true] %s26_s20  ;;  %s49_s22 = int_to_ptr.vmem [resolvable:$true] %s48_s22 }
  0x4b   :  { %s8083_s3 = scalar_lea.hbm %s8589_s0, 128 }
  0x4c   :  { %p8084_p4 = scmp.ne.s32.totalorder %s8589_s0, %s8083_s3  ;;  %p8087_p5 = scmp.lt.u32.totalorder %s8083_s3, %s8589_s0 }
  0x4e   :  { %p8089_p6 = pnand %p8087_p5, %p8084_p4 }
  0x50   :  { %8092 = shalt.err (!%p8089_p6)
}
  0x51   :  { %s8093_s7 = scalar_lea.vmem %s27_s20, 128  ;;  %p8098_p8 = scmp.lt.s32.totalorder %s27_s20, %s27_s20 }
  0x52   :  { %p8094_p7 = scmp.ne.s32.totalorder %s27_s20, %s8093_s7  ;;  %p8099_p9 = scmp.lt.s32.totalorder %s8093_s7, %s8093_s7 }
  0x54   :  { %p8100_p10 = por %p8099_p9, %p8098_p8 }
  0x56   :  { %p8101_p11 = pnand %p8100_p10, %p8094_p7 }
  0x58   :  { %8104 = shalt.err (!%p8101_p11)
}
  0x59   :  { %29 = dma.hbm_to_vmem [thread:$0]  %s8589_s0, 128, %s27_s20, [#allocation3]  }
  0x5a   :  { %s8105_s1 = scalar_lea.hbm %s8591_s2, 32 }
  0x5b   :  { %p8106_p12 = scmp.ne.s32.totalorder %s8591_s2, %s8105_s1  ;;  %p8109_p13 = scmp.lt.u32.totalorder %s8105_s1, %s8591_s2 }
  0x5d   :  { %p8111_p0 = pnand %p8109_p13, %p8106_p12 }
  0x5f   :  { %8114 = shalt.err (!%p8111_p0)
}
  0x60   :  { %s8115_s5 = scalar_lea.vmem %s49_s22, 32  ;;  %p8120_p2 = scmp.lt.s32.totalorder %s49_s22, %s49_s22 }
  0x61   :  { %p8116_p1 = scmp.ne.s32.totalorder %s49_s22, %s8115_s5  ;;  %p8121_p3 = scmp.lt.s32.totalorder %s8115_s5, %s8115_s5 }
  0x63   :  { %p8122_p4 = por %p8121_p3, %p8120_p2 }
  0x65   :  { %p8123_p5 = pnand %p8122_p4, %p8116_p1 }
  0x67   :  { %8126 = shalt.err (!%p8123_p5)
}
  0x68   :  { %51 = dma.hbm_to_vmem [thread:$0]  %s8591_s2, 32, %s49_s22, [#allocation6]  }
  0x69   :  { %s8241_s17 = smov [#allocation10]   ;;  %s8242_s19 = smov [#allocation13]  }
  0x6a   :  { %s70_s18 = sshll.u32 %s8241_s17, 4  ;;  %s92_s20 = sshll.u32 %s8242_s19, 4  ;;  %s71_s18 = int_to_ptr.vmem [resolvable:$true] %s70_s18  ;;  %s93_s20 = int_to_ptr.vmem [resolvable:$true] %s92_s20 }
  0x6b   :  { %s8127_s25 = scalar_lea.hbm %s8593_s4, 64 }
  0x6c   :  { %p8128_p6 = scmp.ne.s32.totalorder %s8593_s4, %s8127_s25  ;;  %p8131_p7 = scmp.lt.u32.totalorder %s8127_s25, %s8593_s4 }
  0x6e   :  { %p8133_p8 = pnand %p8131_p7, %p8128_p6 }
  0x70   :  { %8136 = shalt.err (!%p8133_p8)
}
  0x71   :  { %s8137_s2 = scalar_lea.vmem %s71_s18, 64  ;;  %p8142_p10 = scmp.lt.s32.totalorder %s71_s18, %s71_s18 }
  0x72   :  { %p8138_p9 = scmp.ne.s32.totalorder %s71_s18, %s8137_s2  ;;  %p8143_p11 = scmp.lt.s32.totalorder %s8137_s2, %s8137_s2 }
  0x74   :  { %p8144_p12 = por %p8143_p11, %p8142_p10 }
  0x76   :  { %p8145_p13 = pnand %p8144_p12, %p8138_p9 }
  0x78   :  { %8148 = shalt.err (!%p8145_p13)
}
  0x79   :  { %73 = dma.hbm_to_vmem [thread:$0]  %s8593_s4, 64, %s71_s18, [#allocation9]  }
  0x7a   :  { %s8149_s30 = scalar_lea.hbm %s8595_s6, 128 }
  0x7b   :  { %p8150_p0 = scmp.ne.s32.totalorder %s8595_s6, %s8149_s30  ;;  %p8153_p1 = scmp.lt.u32.totalorder %s8149_s30, %s8595_s6 }
  0x7d   :  { %p8155_p2 = pnand %p8153_p1, %p8150_p0 }
  0x7f   :  { %8158 = shalt.err (!%p8155_p2)
}
  0x80   :  { %s8159_s13 = scalar_lea.vmem %s93_s20, 128  ;;  %p8164_p4 = scmp.lt.s32.totalorder %s93_s20, %s93_s20 }
  0x81   :  { %p8160_p3 = scmp.ne.s32.totalorder %s93_s20, %s8159_s13  ;;  %p8165_p5 = scmp.lt.s32.totalorder %s8159_s13, %s8159_s13 }
  0x83   :  { %p8166_p6 = por %p8165_p5, %p8164_p4 }
  0x85   :  { %p8167_p7 = pnand %p8166_p6, %p8160_p3 }
  0x87   :  { %8170 = shalt.err (!%p8167_p7)
}
  0x88   :  { %95 = dma.hbm_to_vmem [thread:$0]  %s8595_s6, 128, %s93_s20, [#allocation12]  }
  0x89   :  { %s8243_s15 = smov [#allocation16]   ;;  %s8171_s17 = scalar_lea.hbm %s8597_s8, 112 }
  0x8a   :  { %s114_s5 = sshll.u32 %s8243_s15, 4  ;;  %p8172_p8 = scmp.ne.s32.totalorder %s8597_s8, %s8171_s17  ;;  %s115_s5 = int_to_ptr.vmem [resolvable:$true] %s114_s5 }
  0x8b   :  { %p8175_p9 = scmp.lt.u32.totalorder %s8171_s17, %s8597_s8 }
  0x8d   :  { %p8177_p10 = pnand %p8175_p9, %p8172_p8 }
  0x8f   :  { %8180 = shalt.err (!%p8177_p10)
}
  0x90   :  { %s8181_s25 = scalar_lea.vmem %s115_s5, 112  ;;  %s8185_s6 = scalar_lea.vmem %s115_s5, 128 }
  0x91   :  { %p8182_p11 = scmp.ne.s32.totalorder %s115_s5, %s8181_s25  ;;  %p8186_p12 = scmp.lt.s32.totalorder %s115_s5, %s115_s5 }
  0x92   :  { %p8187_p13 = scmp.lt.s32.totalorder %s8185_s6, %s8181_s25 }
  0x94   :  { %p8188_p0 = por %p8187_p13, %p8186_p12 }
  0x96   :  { %p8189_p1 = pnand %p8188_p0, %p8182_p11 }
  0x98   :  { %8192 = shalt.err (!%p8189_p1)
}
  0x99   :  { %117 = dma.hbm_to_vmem [thread:$0]  %s8597_s8, 112, %s115_s5, [#allocation15]  }
  0x9a   :  { %8215 = dma.done.wait [#allocation3], 128  }
  0x9b   :  { %8216 = vsyncadd [#allocation3], 4294967168 }
  0x9c   :  { %8217 = dma.done.wait [#allocation6], 2080  }
  0x9d   :  { %8218 = vsyncadd [#allocation6], 4294965216 }
  0x9e   :  { %8219 = dma.done.wait [#allocation9], 8256  }
  0x9f   :  { %8220 = vsyncadd [#allocation9], 4294959040 }
  0xa0   :  { %8221 = dma.done.wait [#allocation12], 32896  }
  0xa1   :  { %8222 = vsyncadd [#allocation12], 4294934400 }
  0xa2   :  { %8223 = dma.done.wait [#allocation15], 57456  }
  0xa3   :  { %8224 = vsyncadd [#allocation15], 4294909840  ;;  %v8244_v0 = vmov 0   ;;  %v7235_v1 = vld [vmem:[#allocation5 + $0x4] ss:$8 sps:$4 sm:$0xff]   ;;  %v146_v17 = vld [vmem:[#allocation2] sm:$0xff] }
  0xa4   :  { %288 = vmatprep.mubr.bf16.mxu0 %v8244_v0  ;;  %v7237_v2 = vld [vmem:[#allocation5] ss:$8 sps:$4 sm:$0xff]   ;;  %256 = vmatprep.subr.bf16.mxu0 %v7235_v1  ;;  %v7238_v3 = vld [vmem:[#allocation5 + $0x14] ss:$8 sps:$4 sm:$0xff]   ;;  %v7240_v4 = vld [vmem:[#allocation5 + $0x10] ss:$8 sps:$4 sm:$0xff]   ;;  %v147_v20 = vpack.c.bf16 %v146_v17, %v146_v17 }
  0xa5   :  { %257 = vmatpush1.bf16.msra.mxu0 %v7237_v2  ;;  %v7241_v5 = vld [vmem:[#allocation5 + $0x24] ss:$8 sps:$4 sm:$0xff]   ;;  %v7243_v6 = vld [vmem:[#allocation5 + $0x20] ss:$8 sps:$4 sm:$0xff]   ;;  %v7244_v7 = vld [vmem:[#allocation5 + $0x34] ss:$8 sps:$4 sm:$0xff]  }
  0xa6   :  { %258 = vmatprep.subr.bf16.mxu0 %v7238_v3  ;;  %v7246_v8 = vld [vmem:[#allocation5 + $0x30] ss:$8 sps:$4 sm:$0xff]   ;;  %v7247_v9 = vld [vmem:[#allocation5 + $0x44] ss:$8 sps:$4 sm:$0xff]   ;;  %v7249_v10 = vld [vmem:[#allocation5 + $0x40] ss:$8 sps:$4 sm:$0xff]  }
  0xa7   :  { %v7250_v11 = vld [vmem:[#allocation5 + $0x54] ss:$8 sps:$4 sm:$0xff]   ;;  %v7252_v12 = vld [vmem:[#allocation5 + $0x50] ss:$8 sps:$4 sm:$0xff]   ;;  %v7253_v13 = vld [vmem:[#allocation5 + $0x64] ss:$8 sps:$4 sm:$0xff]  }
  0xa8   :  { %v7255_v14 = vld [vmem:[#allocation5 + $0x60] ss:$8 sps:$4 sm:$0xff]   ;;  %v7256_v15 = vld [vmem:[#allocation5 + $0x74] ss:$8 sps:$4 sm:$0xff]   ;;  %v7258_v16 = vld [vmem:[#allocation5 + $0x70] ss:$8 sps:$4 sm:$0xff]  }
  0xa9   :  { %259 = vmatpush1.bf16.msra.mxu0 %v7240_v4  ;;  %v7261_v18 = vld [vmem:[#allocation8 + $0x4] ss:$16 sps:$4 sm:$0xff]   ;;  %v7259_v19 = vld [vmem:[#allocation8] ss:$16 sps:$4 sm:$0xff]   ;;  %v7309_v51 = vld [vmem:[#allocation8 + $0xc] ss:$16 sps:$4 sm:$0xff]  }
  0xaa   :  { %260 = vmatprep.subr.bf16.mxu0 %v7241_v5  ;;  %v7264_v21 = vld [vmem:[#allocation8 + $0x24] ss:$16 sps:$4 sm:$0xff]   ;;  %v7262_v22 = vld [vmem:[#allocation8 + $0x20] ss:$16 sps:$4 sm:$0xff]   ;;  %s8245_s8 = smov [#allocation17]  }
  0xab   :  { %v7267_v23 = vld [vmem:[#allocation8 + $0x44] ss:$16 sps:$4 sm:$0xff]   ;;  %v7265_v24 = vld [vmem:[#allocation8 + $0x40] ss:$16 sps:$4 sm:$0xff]   ;;  %s6265_s24 = sshll.u32 %s8245_s8, 4  ;;  %s6266_s24 = int_to_ptr.vmem [resolvable:$true] %s6265_s24 }
  0xac   :  { %v7270_v25 = vld [vmem:[#allocation8 + $0x64] ss:$16 sps:$4 sm:$0xff]   ;;  %v7268_v26 = vld [vmem:[#allocation8 + $0x60] ss:$16 sps:$4 sm:$0xff]   ;;  %s8193_s26 = scalar_lea.vmem %s6266_s24, 896  ;;  %p8198_p3 = scmp.lt.s32.totalorder %s6266_s24, %s6266_s24 }
  0xad   :  { %261 = vmatpush1.bf16.msra.mxu0 %v7243_v6  ;;  %v7273_v27 = vld [vmem:[#allocation8 + $0x84] ss:$16 sps:$4 sm:$0xff]   ;;  %v7271_v28 = vld [vmem:[#allocation8 + $0x80] ss:$16 sps:$4 sm:$0xff]   ;;  %p8194_p2 = scmp.ne.s32.totalorder %s6266_s24, %s8193_s26  ;;  %p8199_p4 = scmp.lt.s32.totalorder %s8193_s26, %s8193_s26 }
  0xae   :  { %262 = vmatprep.subr.bf16.mxu0 %v7244_v7  ;;  %v7276_v29 = vld [vmem:[#allocation8 + $0xa4] ss:$16 sps:$4 sm:$0xff]   ;;  %v7274_v30 = vld [vmem:[#allocation8 + $0xa0] ss:$16 sps:$4 sm:$0xff]  }
  0xaf   :  { %v7279_v31 = vld [vmem:[#allocation8 + $0xc4] ss:$16 sps:$4 sm:$0xff]   ;;  %v7277_v32 = vld [vmem:[#allocation8 + $0xc0] ss:$16 sps:$4 sm:$0xff]   ;;  %p8200_p5 = por %p8199_p4, %p8198_p3 }
  0xb0   :  { %v7282_v33 = vld [vmem:[#allocation8 + $0xe4] ss:$16 sps:$4 sm:$0xff]   ;;  %v7280_v34 = vld [vmem:[#allocation8 + $0xe0] ss:$16 sps:$4 sm:$0xff]  }
  0xb1   :  { %263 = vmatpush1.bf16.msra.mxu0 %v7246_v8  ;;  %v7285_v35 = vld [vmem:[#allocation8 + $0x104] ss:$16 sps:$4 sm:$0xff]   ;;  %v7283_v36 = vld [vmem:[#allocation8 + $0x100] ss:$16 sps:$4 sm:$0xff]   ;;  %p8201_p6 = pnand %p8200_p5, %p8194_p2 }
  0xb2   :  { %264 = vmatprep.subr.bf16.mxu0 %v7247_v9  ;;  %v7288_v37 = vld [vmem:[#allocation8 + $0x124] ss:$16 sps:$4 sm:$0xff]   ;;  %v7286_v38 = vld [vmem:[#allocation8 + $0x120] ss:$16 sps:$4 sm:$0xff]  }
  0xb3   :  { %v7291_v39 = vld [vmem:[#allocation8 + $0x144] ss:$16 sps:$4 sm:$0xff]   ;;  %v7289_v40 = vld [vmem:[#allocation8 + $0x140] ss:$16 sps:$4 sm:$0xff]  }
  0xb4   :  { %v7294_v41 = vld [vmem:[#allocation8 + $0x164] ss:$16 sps:$4 sm:$0xff]   ;;  %v7292_v42 = vld [vmem:[#allocation8 + $0x160] ss:$16 sps:$4 sm:$0xff]  }
  0xb5   :  { %265 = vmatpush1.bf16.msra.mxu0 %v7249_v10  ;;  %v7297_v43 = vld [vmem:[#allocation8 + $0x184] ss:$16 sps:$4 sm:$0xff]   ;;  %v7295_v44 = vld [vmem:[#allocation8 + $0x180] ss:$16 sps:$4 sm:$0xff]  }
  0xb6   :  { %266 = vmatprep.subr.bf16.mxu0 %v7250_v11  ;;  %v7300_v45 = vld [vmem:[#allocation8 + $0x1a4] ss:$16 sps:$4 sm:$0xff]   ;;  %v7298_v46 = vld [vmem:[#allocation8 + $0x1a0] ss:$16 sps:$4 sm:$0xff]  }
  0xb7   :  { %v7303_v47 = vld [vmem:[#allocation8 + $0x1c4] ss:$16 sps:$4 sm:$0xff]   ;;  %v7301_v48 = vld [vmem:[#allocation8 + $0x1c0] ss:$16 sps:$4 sm:$0xff]  }
  0xb8   :  { %v7306_v49 = vld [vmem:[#allocation8 + $0x1e4] ss:$16 sps:$4 sm:$0xff]   ;;  %v7304_v50 = vld [vmem:[#allocation8 + $0x1e0] ss:$16 sps:$4 sm:$0xff]  }
  0xb9   :  { %267 = vmatpush1.bf16.msra.mxu0 %v7252_v12  ;;  %v809_v52 = vld [vmem:[#allocation11] sm:$0xff] }
  0xba   :  { %268 = vmatprep.subr.bf16.mxu0 %v7253_v13  ;;  %v813_v53 = vld [vmem:[#allocation11 + $0x20] sm:$0xff] }
  0xbb   :  { %v6359_v54 = vcombine.high %v809_v52, %v813_v53  ;;  %v6358_v55 = vcombine.low %v809_v52, %v813_v53  ;;  %v817_v56 = vld [vmem:[#allocation11 + $0x40] sm:$0xff] }
  0xbc   :  { %v821_v57 = vld [vmem:[#allocation11 + $0x60] sm:$0xff] }
  0xbd   :  { %269 = vmatpush1.bf16.msra.mxu0 %v7255_v14  ;;  %v6367_v58 = vcombine.high %v817_v56, %v821_v57  ;;  %2387 = vmatprep.subr.bf16.mxu1 %v6359_v54  ;;  %v6366_v59 = vcombine.low %v817_v56, %v821_v57  ;;  %v825_v60 = vld [vmem:[#allocation11 + $0x80] sm:$0xff] }
  0xbe   :  { %270 = vmatprep.subr.bf16.mxu0 %v7256_v15  ;;  %2388 = vmatpush1.bf16.msra.mxu1 %v6358_v55  ;;  %v829_v61 = vld [vmem:[#allocation11 + $0xa0] sm:$0xff] }
  0xbf   :  { %2389 = vmatprep.subr.bf16.mxu1 %v6367_v58  ;;  %v6375_v62 = vcombine.high %v825_v60, %v829_v61  ;;  %v6374_v63 = vcombine.low %v825_v60, %v829_v61  ;;  %v833_v0 = vld [vmem:[#allocation11 + $0xc0] sm:$0xff] }
  0xc0   :  { %v837_v1 = vld [vmem:[#allocation11 + $0xe0] sm:$0xff] }
  0xc1   :  { %271 = vmatpush1.bf16.msra.mxu0 %v7258_v16  ;;  %v6383_v2 = vcombine.high %v833_v0, %v837_v1  ;;  %v6382_v3 = vcombine.low %v833_v0, %v837_v1  ;;  %v841_v4 = vld [vmem:[#allocation11 + $0x100] sm:$0xff]  ;;  %v7312_v0 = vld [vmem:[#allocation8 + $0x2c] ss:$16 sps:$4 sm:$0xff]  }
  0xc2   :  { %711 = vmatprep.subr.bf16.mxu0 %v7261_v18  ;;  %2390 = vmatpush1.bf16.msra.mxu1 %v6366_v59  ;;  %v845_v5 = vld [vmem:[#allocation11 + $0x120] sm:$0xff] }
  0xc3   :  { %2391 = vmatprep.subr.bf16.mxu1 %v6375_v62  ;;  %v6391_v6 = vcombine.high %v841_v4, %v845_v5  ;;  %v6390_v7 = vcombine.low %v841_v4, %v845_v5  ;;  %v849_v8 = vld [vmem:[#allocation11 + $0x140] sm:$0xff]  ;;  %v7318_v4 = vld [vmem:[#allocation8 + $0x6c] ss:$16 sps:$4 sm:$0xff]  }
  0xc4   :  { %289 = vmatmul.mubr.bf16.vlgmr.msra.gmra.mrb[0].mxu0 %v147_v20  ;;  %v853_v9 = vld [vmem:[#allocation11 + $0x160] sm:$0xff] }
  0xc5   :  { %712 = vmatpush1.bf16.msra.mxu0 %v7259_v19  ;;  %v6399_v10 = vcombine.high %v849_v8, %v853_v9  ;;  %v6398_v11 = vcombine.low %v849_v8, %v853_v9  ;;  %v857_v12 = vld [vmem:[#allocation11 + $0x180] sm:$0xff]  ;;  %v7324_v8 = vld [vmem:[#allocation8 + $0xac] ss:$16 sps:$4 sm:$0xff]  }
  0xc6   :  { %713 = vmatprep.subr.bf16.mxu0 %v7264_v21  ;;  %2392 = vmatpush1.bf16.msra.mxu1 %v6374_v63  ;;  %v861_v13 = vld [vmem:[#allocation11 + $0x1a0] sm:$0xff] }
  0xc7   :  { %2393 = vmatprep.subr.bf16.mxu1 %v6383_v2  ;;  %v6407_v14 = vcombine.high %v857_v12, %v861_v13  ;;  %v6406_v15 = vcombine.low %v857_v12, %v861_v13  ;;  %v865_v16 = vld [vmem:[#allocation11 + $0x1c0] sm:$0xff]  ;;  %v7315_v2 = vld [vmem:[#allocation8 + $0x4c] ss:$16 sps:$4 sm:$0xff]  }
  0xc8   :  { %v869_v17 = vld [vmem:[#allocation11 + $0x1e0] sm:$0xff]  ;;  %v7330_v12 = vld [vmem:[#allocation8 + $0xec] ss:$16 sps:$4 sm:$0xff]  }
  0xc9   :  { %714 = vmatpush1.bf16.msra.mxu0 %v7262_v22  ;;  %v6415_v18 = vcombine.high %v865_v16, %v869_v17  ;;  %v6414_v19 = vcombine.low %v865_v16, %v869_v17  ;;  %v873_v20 = vld [vmem:[#allocation11 + $0x200] sm:$0xff]  ;;  %v7336_v16 = vld [vmem:[#allocation8 + $0x12c] ss:$16 sps:$4 sm:$0xff]  }
  0xca   :  { %715 = vmatprep.subr.bf16.mxu0 %v7267_v23  ;;  %2394 = vmatpush1.bf16.msra.mxu1 %v6382_v3  ;;  %v877_v21 = vld [vmem:[#allocation11 + $0x220] sm:$0xff] }
  0xcb   :  { %2395 = vmatprep.subr.bf16.mxu1 %v6391_v6  ;;  %v6423_v22 = vcombine.high %v873_v20, %v877_v21  ;;  %v6422_v23 = vcombine.low %v873_v20, %v877_v21  ;;  %v7307_v62 = vld [vmem:[#allocation8 + $0x8] ss:$16 sps:$4 sm:$0xff]   ;;  %v7321_v6 = vld [vmem:[#allocation8 + $0x8c] ss:$16 sps:$4 sm:$0xff]  }
  0xcc   :  { %v7310_v1 = vld [vmem:[#allocation8 + $0x28] ss:$16 sps:$4 sm:$0xff]   ;;  %v7342_v20 = vld [vmem:[#allocation8 + $0x16c] ss:$16 sps:$4 sm:$0xff]  }
  0xcd   :  { %716 = vmatpush1.bf16.msra.mxu0 %v7265_v24  ;;  %v881_v24 = vld [vmem:[#allocation11 + $0x240] sm:$0xff] }
  0xce   :  { %717 = vmatprep.subr.bf16.mxu0 %v7270_v25  ;;  %2396 = vmatpush1.bf16.msra.mxu1 %v6390_v7  ;;  %v885_v25 = vld [vmem:[#allocation11 + $0x260] sm:$0xff] }
  0xcf   :  { %2397 = vmatprep.subr.bf16.mxu1 %v6399_v10  ;;  %v7313_v3 = vld [vmem:[#allocation8 + $0x48] ss:$16 sps:$4 sm:$0xff]   ;;  %v7327_v10 = vld [vmem:[#allocation8 + $0xcc] ss:$16 sps:$4 sm:$0xff]  }
  0xd0   :  { %v7316_v5 = vld [vmem:[#allocation8 + $0x68] ss:$16 sps:$4 sm:$0xff]  }
  0xd1   :  { %718 = vmatpush1.bf16.msra.mxu0 %v7268_v26  ;;  %v6431_v26 = vcombine.high %v881_v24, %v885_v25  ;;  %v7319_v7 = vld [vmem:[#allocation8 + $0x88] ss:$16 sps:$4 sm:$0xff]  }
  0xd2   :  { %719 = vmatprep.subr.bf16.mxu0 %v7273_v27  ;;  %2398 = vmatpush1.bf16.msra.mxu1 %v6398_v11  ;;  %v6430_v27 = vcombine.low %v881_v24, %v885_v25  ;;  %v7322_v9 = vld [vmem:[#allocation8 + $0xa8] ss:$16 sps:$4 sm:$0xff]   ;;  %v7348_v24 = vld [vmem:[#allocation8 + $0x1ac] ss:$16 sps:$4 sm:$0xff]  }
  0xd3   :  { %2399 = vmatprep.subr.bf16.mxu1 %v6407_v14  ;;  %v7325_v11 = vld [vmem:[#allocation8 + $0xc8] ss:$16 sps:$4 sm:$0xff]   ;;  %v7333_v14 = vld [vmem:[#allocation8 + $0x10c] ss:$16 sps:$4 sm:$0xff]  }
  0xd4   :  { %v7328_v13 = vld [vmem:[#allocation8 + $0xe8] ss:$16 sps:$4 sm:$0xff]  }
  0xd5   :  { %720 = vmatpush1.bf16.msra.mxu0 %v7271_v28  ;;  %v889_v28 = vld [vmem:[#allocation11 + $0x280] sm:$0xff] }
  0xd6   :  { %721 = vmatprep.subr.bf16.mxu0 %v7276_v29  ;;  %2400 = vmatpush1.bf16.msra.mxu1 %v6406_v15  ;;  %v893_v29 = vld [vmem:[#allocation11 + $0x2a0] sm:$0xff] }
  0xd7   :  { %2401 = vmatprep.subr.bf16.mxu1 %v6415_v18  ;;  %v7331_v15 = vld [vmem:[#allocation8 + $0x108] ss:$16 sps:$4 sm:$0xff]   ;;  %v7339_v18 = vld [vmem:[#allocation8 + $0x14c] ss:$16 sps:$4 sm:$0xff]  }
  0xd8   :  { %v7334_v17 = vld [vmem:[#allocation8 + $0x128] ss:$16 sps:$4 sm:$0xff]  }
  0xd9   :  { %722 = vmatpush1.bf16.msra.mxu0 %v7274_v30  ;;  %v6439_v30 = vcombine.high %v889_v28, %v893_v29  ;;  %v7340_v21 = vld [vmem:[#allocation8 + $0x168] ss:$16 sps:$4 sm:$0xff]  }
  0xda   :  { %723 = vmatprep.subr.bf16.mxu0 %v7279_v31  ;;  %2402 = vmatpush1.bf16.msra.mxu1 %v6414_v19  ;;  %v166_v31 = vlaneseq  ;;  %v7337_v19 = vld [vmem:[#allocation8 + $0x148] ss:$16 sps:$4 sm:$0xff]  }
  0xdb   :  { %2403 = vmatprep.subr.bf16.mxu1 %v6423_v22  ;;  %v7345_v22 = vld [vmem:[#allocation8 + $0x18c] ss:$16 sps:$4 sm:$0xff]   ;;  %v7346_v25 = vld [vmem:[#allocation8 + $0x1a8] ss:$16 sps:$4 sm:$0xff]  }
  0xdd   :  { %724 = vmatpush1.bf16.msra.mxu0 %v7277_v32  ;;  %v6438_v32 = vcombine.low %v889_v28, %v893_v29  ;;  %v7354_v28 = vld [vmem:[#allocation8 + $0x1ec] ss:$16 sps:$4 sm:$0xff]  }
  0xde   :  { %725 = vmatprep.subr.bf16.mxu0 %v7282_v33  ;;  %2404 = vmatpush1.bf16.msra.mxu1 %v6422_v23  ;;  %v897_v33 = vld [vmem:[#allocation11 + $0x2c0] sm:$0xff]  ;;  %v810_v29 = vld [vmem:[#allocation11 + $0x8] sm:$0xff] }
  0xdf   :  { %2405 = vmatprep.subr.bf16.mxu1 %v6431_v26  ;;  %v7343_v23 = vld [vmem:[#allocation8 + $0x188] ss:$16 sps:$4 sm:$0xff]   ;;  %v7351_v26 = vld [vmem:[#allocation8 + $0x1cc] ss:$16 sps:$4 sm:$0xff]  }
  0xe1   :  { %726 = vmatpush1.bf16.msra.mxu0 %v7280_v34  ;;  %v901_v34 = vld [vmem:[#allocation11 + $0x2e0] sm:$0xff] }
  0xe2   :  { %727 = vmatprep.subr.bf16.mxu0 %v7285_v35  ;;  %2406 = vmatpush1.bf16.msra.mxu1 %v6430_v27  ;;  %v6447_v35 = vcombine.high %v897_v33, %v901_v34  ;;  %v7349_v27 = vld [vmem:[#allocation8 + $0x1c8] ss:$16 sps:$4 sm:$0xff]  }
  0xe3   :  { %2407 = vmatprep.subr.bf16.mxu1 %v6439_v30  ;;  %v814_v30 = vld [vmem:[#allocation11 + $0x28] sm:$0xff] }
  0xe5   :  { %728 = vmatpush1.bf16.msra.mxu0 %v7283_v36  ;;  %v8404_v36 = vshrl.u32 %v166_v31, 7  ;;  %v7352_v31 = vld [vmem:[#allocation8 + $0x1e8] ss:$16 sps:$4 sm:$0xff]  }
  0xe6   :  { %729 = vmatprep.subr.bf16.mxu0 %v7288_v37  ;;  %2408 = vmatpush1.bf16.msra.mxu1 %v6438_v32  ;;  %v6446_v37 = vcombine.low %v897_v33, %v901_v34  ;;  %v6361_v32 = vcombine.high %v810_v29, %v814_v30  ;;  %v818_v33 = vld [vmem:[#allocation11 + $0x48] sm:$0xff] }
  0xe7   :  { %2409 = vmatprep.subr.bf16.mxu1 %v6447_v35  ;;  %v822_v34 = vld [vmem:[#allocation11 + $0x68] sm:$0xff]  ;;  %v6360_v35 = vcombine.low %v810_v29, %v814_v30 }
  0xe9   :  { %730 = vmatpush1.bf16.msra.mxu0 %v7286_v38  ;;  %v905_v38 = vld [vmem:[#allocation11 + $0x300] sm:$0xff] }
  0xea   :  { %731 = vmatprep.subr.bf16.mxu0 %v7291_v39  ;;  %v909_v39 = vld [vmem:[#allocation11 + $0x320] sm:$0xff]  ;;  %2410 = vmatpush1.bf16.msra.mxu1 %v6446_v37  ;;  %v6369_v37 = vcombine.high %v818_v33, %v822_v34 }
  0xed   :  { %732 = vmatpush1.bf16.msra.mxu0 %v7289_v40  ;;  %v164_v40 = vld [vmem:[#allocation7] sm:$0x3] }
  0xee   :  { %733 = vmatprep.subr.bf16.mxu0 %v7294_v41  ;;  %v6455_v41 = vcombine.high %v905_v38, %v909_v39 }
  0xf0   :  { %2411 = vmatprep.subr.bf16.mxu1 %v6455_v41 }
  0xf1   :  { %734 = vmatpush1.bf16.msra.mxu0 %v7292_v42  ;;  %v8407_v42 = vsub.s32 0, %v8404_v36 }
  0xf2   :  { %735 = vmatprep.subr.bf16.mxu0 %v7297_v43  ;;  %v8410_v43 = vsub.s32 1, %v8404_v36 }
  0xf5   :  { %736 = vmatpush1.bf16.msra.mxu0 %v7295_v44  ;;  %v6454_v44 = vcombine.low %v905_v38, %v909_v39  ;;  %v826_v38 = vld [vmem:[#allocation11 + $0x88] sm:$0xff] }
  0xf6   :  { %737 = vmatprep.subr.bf16.mxu0 %v7300_v45  ;;  %v913_v45 = vld [vmem:[#allocation11 + $0x340] sm:$0xff]  ;;  %v830_v39 = vld [vmem:[#allocation11 + $0xa8] sm:$0xff] }
  0xf7   :  { %2412 = vmatpush1.bf16.msra.mxu1 %v6454_v44  ;;  %v6377_v41 = vcombine.high %v826_v38, %v830_v39  ;;  %v834_v44 = vld [vmem:[#allocation11 + $0xc8] sm:$0xff] }
  0xf9   :  { %738 = vmatpush1.bf16.msra.mxu0 %v7298_v46  ;;  %v917_v46 = vld [vmem:[#allocation11 + $0x360] sm:$0xff] }
  0xfa   :  { %739 = vmatprep.subr.bf16.mxu0 %v7303_v47  ;;  %v6463_v47 = vcombine.high %v913_v45, %v917_v46 }
  0xfc   :  { %2413 = vmatprep.subr.bf16.mxu1 %v6463_v47 }
  0xfd   :  { %740 = vmatpush1.bf16.msra.mxu0 %v7301_v48  ;;  %v169_v48 = vrot.slane %v164_v40, %v8407_v42 }
  0xfe   :  { %741 = vmatprep.subr.bf16.mxu0 %v7306_v49  ;;  %v173_v49 = vrot.slane %v164_v40, %v8410_v43  ;;  %v6368_v40 = vcombine.low %v818_v33, %v822_v34 }
 0x101   :  { %742 = vmatpush1.bf16.msra.mxu0 %v7304_v50  ;;  %v6462_v50 = vcombine.low %v913_v45, %v917_v46  ;;  %v838_v45 = vld [vmem:[#allocation11 + $0xe8] sm:$0xff]  ;;  %v6376_v46 = vcombine.low %v826_v38, %v830_v39 }
 0x102   :  { %752 = vmatprep.subr.bf16.mxu0 %v7309_v51  ;;  %v6385_v47 = vcombine.high %v834_v44, %v838_v45 }
 0x103   :  { %2414 = vmatpush1.bf16.msra.mxu1 %v6462_v50  ;;  %v6384_v50 = vcombine.low %v834_v44, %v838_v45 }
 0x197   :  { %v290_v51 = vpop.f32.mrb[0].mxu0 }
 0x198   :  { %v291_v52 = vadd.f32 %v290_v51, %v169_v48  ;;  %v292_v53 = vpop.f32.mrb[1].mxu0  ;;  %v842_v48 = vld [vmem:[#allocation11 + $0x108] sm:$0xff] }
 0x199   :  { %v293_v54 = vadd.f32 %v292_v53, %v173_v49  ;;  %v294_v55 = vpop.f32.mrb[2].mxu0  ;;  %v846_v49 = vld [vmem:[#allocation11 + $0x128] sm:$0xff] }
 0x19a   :  { %vm297_vm0 = vcmp.ge.f32.partialorder %v291_v52, 0.0  ;;  %v299_v56 = vmul.f32 0.2, %v291_v52  ;;  %v295_v57 = vpop.f32.mrb[3].mxu0  ;;  %v6393_v51 = vcombine.high %v842_v48, %v846_v49  ;;  %v854_v53 = vld [vmem:[#allocation11 + $0x168] sm:$0xff] }
 0x19b   :  { %vm298_vm1 = vcmp.ge.f32.partialorder %v293_v54, 0.0  ;;  %v300_v58 = vmul.f32 0.2, %v293_v54  ;;  %v862_v57 = vld [vmem:[#allocation11 + $0x1a8] sm:$0xff] }
 0x19c   :  { %v301_v59 = vsel %vm297_vm0, %v291_v52, %v299_v56  ;;  %v850_v52 = vld [vmem:[#allocation11 + $0x148] sm:$0xff] }
 0x19d   :  { %v302_v60 = vsel %vm298_vm1, %v293_v54, %v300_v58  ;;  %v8414_v63 = vpack.c.bf16 %v301_v59, %v301_v59  ;;  %v6392_v54 = vcombine.low %v842_v48, %v846_v49  ;;  %v6401_v55 = vcombine.high %v850_v52, %v854_v53  ;;  %v858_v56 = vld [vmem:[#allocation11 + $0x188] sm:$0xff] }
 0x19e   :  { %v304_v61 = vpack.c.bf16 %v302_v60, %v302_v60  ;;  %v6400_v58 = vcombine.low %v850_v52, %v854_v53  ;;  %v6409_v59 = vcombine.high %v858_v56, %v862_v57  ;;  %v921_v60 = vld [vmem:[#allocation11 + $0x380] sm:$0xff]  ;;  %v8434_v52 = vld [vmem:[#allocation10] sm:$0xf] }
 0x19f   :  { %v374_v53 = vrot.slane %v8434_v52, %v8407_v42 }
 0x1a0   :  { %743 = vmatprep.mubr.bf16.mxu0 %v304_v61 }
 0x1a1   :  { %744 = vmatmul.mubr.bf16.vlgmr.msra.gmra.mrb[4].mxu0 %v8414_v63 }
 0x1a2   :  { %753 = vmatpush1.bf16.msra.mxu0 %v7307_v62  ;;  %784 = vmatprep.mubr.bf16.mxu0 %v304_v61  ;;  %v925_v61 = vld [vmem:[#allocation11 + $0x3a0] sm:$0xff]  ;;  %v866_v62 = vld [vmem:[#allocation11 + $0x1c8] sm:$0xff] }
 0x1a3   :  { %754 = vmatprep.subr.bf16.mxu0 %v7312_v0  ;;  %v6471_v0 = vcombine.high %v921_v60, %v925_v61 }
 0x1a5   :  { %2415 = vmatprep.subr.bf16.mxu1 %v6471_v0 }
 0x1a6   :  { %755 = vmatpush1.bf16.msra.mxu0 %v7310_v1  ;;  %v6470_v1 = vcombine.low %v921_v60, %v925_v61 }
 0x1a7   :  { %756 = vmatprep.subr.bf16.mxu0 %v7315_v2  ;;  %v6408_v2 = vcombine.low %v858_v56, %v862_v57 }
 0x1a8   :  { %2416 = vmatpush1.bf16.msra.mxu1 %v6470_v1  ;;  %v949_v1 = vld [vmem:[#allocation11 + $0x460] sm:$0xff] }
 0x1aa   :  { %757 = vmatpush1.bf16.msra.mxu0 %v7313_v3 }
 0x1ab   :  { %758 = vmatprep.subr.bf16.mxu0 %v7318_v4  ;;  %v929_v4 = vld [vmem:[#allocation11 + $0x3c0] sm:$0xff] }
 0x1ae   :  { %759 = vmatpush1.bf16.msra.mxu0 %v7316_v5  ;;  %v933_v5 = vld [vmem:[#allocation11 + $0x3e0] sm:$0xff] }
 0x1af   :  { %760 = vmatprep.subr.bf16.mxu0 %v7321_v6  ;;  %v874_v6 = vld [vmem:[#allocation11 + $0x208] sm:$0xff] }
 0x1b2   :  { %761 = vmatpush1.bf16.msra.mxu0 %v7319_v7  ;;  %v878_v7 = vld [vmem:[#allocation11 + $0x228] sm:$0xff] }
 0x1b3   :  { %762 = vmatprep.subr.bf16.mxu0 %v7324_v8  ;;  %v6479_v8 = vcombine.high %v929_v4, %v933_v5 }
 0x1b5   :  { %2417 = vmatprep.subr.bf16.mxu1 %v6479_v8 }
 0x1b6   :  { %763 = vmatpush1.bf16.msra.mxu0 %v7322_v9  ;;  %v6478_v9 = vcombine.low %v929_v4, %v933_v5 }
 0x1b7   :  { %764 = vmatprep.subr.bf16.mxu0 %v7327_v10 }
 0x1b8   :  { %2418 = vmatpush1.bf16.msra.mxu1 %v6478_v9  ;;  %v953_v9 = vld [vmem:[#allocation11 + $0x480] sm:$0xff] }
 0x1ba   :  { %765 = vmatpush1.bf16.msra.mxu0 %v7325_v11  ;;  %v6425_v11 = vcombine.high %v874_v6, %v878_v7 }
 0x1bb   :  { %766 = vmatprep.subr.bf16.mxu0 %v7330_v12  ;;  %v8418_v12 = vld [vmem:[#allocation11 + $0x400] sm:$0xff] }
 0x1be   :  { %767 = vmatpush1.bf16.msra.mxu0 %v7328_v13  ;;  %v8420_v13 = vld [vmem:[#allocation11 + $0x420] sm:$0xff] }
 0x1bf   :  { %768 = vmatprep.subr.bf16.mxu0 %v7333_v14  ;;  %v8422_v14 = vld [vmem:[#allocation11 + $0x408] sm:$0xff] }
 0x1c2   :  { %769 = vmatpush1.bf16.msra.mxu0 %v7331_v15  ;;  %v882_v15 = vld [vmem:[#allocation11 + $0x248] sm:$0xff] }
 0x1c3   :  { %770 = vmatprep.subr.bf16.mxu0 %v7336_v16  ;;  %v886_v16 = vld [vmem:[#allocation11 + $0x268] sm:$0xff] }
 0x1c6   :  { %771 = vmatpush1.bf16.msra.mxu0 %v7334_v17  ;;  %v6487_v17 = vcombine.high %v8418_v12, %v8420_v13 }
 0x1c7   :  { %772 = vmatprep.subr.bf16.mxu0 %v7339_v18  ;;  %v8426_v18 = vld [vmem:[#allocation11 + $0x428] sm:$0xff] }
 0x1c8   :  { %2428 = vmatprep.subr.bf16.mxu1 %v6487_v17 }
 0x1ca   :  { %773 = vmatpush1.bf16.msra.mxu0 %v7337_v19  ;;  %v6486_v19 = vcombine.low %v8418_v12, %v8420_v13 }
 0x1cb   :  { %774 = vmatprep.subr.bf16.mxu0 %v7342_v20  ;;  %v6488_v20 = vcombine.low %v8422_v14, %v8426_v18 }
 0x1ce   :  { %775 = vmatpush1.bf16.msra.mxu0 %v7340_v21  ;;  %v6424_v21 = vcombine.low %v874_v6, %v878_v7 }
 0x1cf   :  { %776 = vmatprep.subr.bf16.mxu0 %v7345_v22  ;;  %v6433_v22 = vcombine.high %v882_v15, %v886_v16 }
 0x1d2   :  { %777 = vmatpush1.bf16.msra.mxu0 %v7343_v23  ;;  %v890_v23 = vld [vmem:[#allocation11 + $0x288] sm:$0xff] }
 0x1d3   :  { %778 = vmatprep.subr.bf16.mxu0 %v7348_v24  ;;  %v894_v24 = vld [vmem:[#allocation11 + $0x2a8] sm:$0xff] }
 0x1d4   :  { %v6440_v29 = vcombine.low %v890_v23, %v894_v24 }
 0x1d6   :  { %779 = vmatpush1.bf16.msra.mxu0 %v7346_v25  ;;  %v6432_v25 = vcombine.low %v882_v15, %v886_v16  ;;  %v958_v15 = vld [vmem:[#allocation11 + $0x4a8] sm:$0xff] }
 0x1d7   :  { %780 = vmatprep.subr.bf16.mxu0 %v7351_v26  ;;  %v6441_v26 = vcombine.high %v890_v23, %v894_v24  ;;  %v961_v23 = vld [vmem:[#allocation11 + $0x4c0] sm:$0xff] }
 0x1d8   :  { %v965_v24 = vld [vmem:[#allocation11 + $0x4e0] sm:$0xff] }
 0x1d9   :  { %v6511_v12 = vcombine.high %v961_v23, %v965_v24 }
 0x1da   :  { %781 = vmatpush1.bf16.msra.mxu0 %v7349_v27  ;;  %v898_v27 = vld [vmem:[#allocation11 + $0x2c8] sm:$0xff] }
 0x1db   :  { %782 = vmatprep.subr.bf16.mxu0 %v7354_v28  ;;  %v902_v28 = vld [vmem:[#allocation11 + $0x2e8] sm:$0xff] }
 0x1dc   :  { %v6449_v30 = vcombine.high %v898_v27, %v902_v28  ;;  %v6448_v33 = vcombine.low %v898_v27, %v902_v28 }
 0x1de   :  { %783 = vmatpush1.bf16.msra.mxu0 %v7352_v31  ;;  %v906_v31 = vld [vmem:[#allocation11 + $0x308] sm:$0xff] }
 0x1df   :  { %2469 = vmatprep.subr.bf16.mxu0 %v6361_v32  ;;  %v910_v32 = vld [vmem:[#allocation11 + $0x328] sm:$0xff] }
 0x1e0   :  { %v6457_v34 = vcombine.high %v906_v31, %v910_v32  ;;  %v6456_v38 = vcombine.low %v906_v31, %v910_v32 }
 0x1e1   :  { %785 = vmatmul.mubr.bf16.vlgmr.msra.gmra.mrb[8].mxu0 %v8414_v63  ;;  %v870_v63 = vld [vmem:[#allocation11 + $0x1e8] sm:$0xff] }
 0x1e2   :  { %2470 = vmatpush1.bf16.msra.mxu0 %v6360_v35  ;;  %v6417_v3 = vcombine.high %v866_v62, %v870_v63  ;;  %v6416_v10 = vcombine.low %v866_v62, %v870_v63  ;;  %v914_v35 = vld [vmem:[#allocation11 + $0x348] sm:$0xff]  ;;  %v945_v63 = vld [vmem:[#allocation11 + $0x440] sm:$0xff] }
 0x1e3   :  { %2471 = vmatprep.subr.bf16.mxu0 %v6369_v37  ;;  %v918_v37 = vld [vmem:[#allocation11 + $0x368] sm:$0xff]  ;;  %v6495_v7 = vcombine.high %v945_v63, %v949_v1  ;;  %v6494_v16 = vcombine.low %v945_v63, %v949_v1 }
 0x1e4   :  { %v6465_v39 = vcombine.high %v914_v35, %v918_v37  ;;  %v6464_v44 = vcombine.low %v914_v35, %v918_v37  ;;  %v978_v35 = vld [vmem:[#allocation11 + $0x548] sm:$0xff] }
 0x1e5   :  { %v982_v37 = vld [vmem:[#allocation11 + $0x568] sm:$0xff] }
 0x1e6   :  { %2472 = vmatpush1.bf16.msra.mxu0 %v6368_v40  ;;  %v922_v40 = vld [vmem:[#allocation11 + $0x388] sm:$0xff] }
 0x1e7   :  { %2473 = vmatprep.subr.bf16.mxu0 %v6377_v41  ;;  %v926_v41 = vld [vmem:[#allocation11 + $0x3a8] sm:$0xff] }
 0x1e8   :  { %v6473_v45 = vcombine.high %v922_v40, %v926_v41  ;;  %v6472_v48 = vcombine.low %v922_v40, %v926_v41  ;;  %v6529_v41 = vcombine.high %v978_v35, %v982_v37  ;;  %v1002_v63 = vld [vmem:[#allocation11 + $0x608] sm:$0xff] }
 0x1ea   :  { %2474 = vmatpush1.bf16.msra.mxu0 %v6376_v46  ;;  %v930_v46 = vld [vmem:[#allocation11 + $0x3c8] sm:$0xff] }
 0x1eb   :  { %2475 = vmatprep.subr.bf16.mxu0 %v6385_v47  ;;  %v934_v47 = vld [vmem:[#allocation11 + $0x3e8] sm:$0xff] }
 0x1ec   :  { %v6481_v49 = vcombine.high %v930_v46, %v934_v47 }
 0x1ee   :  { %2476 = vmatpush1.bf16.msra.mxu0 %v6384_v50  ;;  %v6480_v50 = vcombine.low %v930_v46, %v934_v47  ;;  %v986_v46 = vld [vmem:[#allocation11 + $0x588] sm:$0xff] }
 0x1ef   :  { %2477 = vmatprep.subr.bf16.mxu0 %v6393_v51  ;;  %v6489_v51 = vcombine.high %v8422_v14, %v8426_v18  ;;  %v969_v14 = vld [vmem:[#allocation11 + $0x500] sm:$0xff]  ;;  %v990_v47 = vld [vmem:[#allocation11 + $0x5a8] sm:$0xff] }
 0x1f0   :  { %v973_v18 = vld [vmem:[#allocation11 + $0x520] sm:$0xff] }
 0x1f1   :  { %v6519_v31 = vcombine.high %v969_v14, %v973_v18 }
 0x1f2   :  { %2478 = vmatpush1.bf16.msra.mxu0 %v6392_v54  ;;  %v378_v54 = vrot.slane %v8434_v52, %v8410_v43 }
 0x1f3   :  { %2479 = vmatprep.subr.bf16.mxu0 %v6401_v55 }
 0x1f6   :  { %2480 = vmatpush1.bf16.msra.mxu0 %v6400_v58 }
 0x1f7   :  { %2481 = vmatprep.subr.bf16.mxu0 %v6409_v59 }
 0x1fa   :  { %2482 = vmatpush1.bf16.msra.mxu0 %v6408_v2  ;;  %v946_v2 = vld [vmem:[#allocation11 + $0x448] sm:$0xff] }
 0x1fb   :  { %2483 = vmatprep.subr.bf16.mxu0 %v6417_v3  ;;  %v950_v3 = vld [vmem:[#allocation11 + $0x468] sm:$0xff] }
 0x1fc   :  { %v6497_v8 = vcombine.high %v946_v2, %v950_v3  ;;  %v6496_v17 = vcombine.low %v946_v2, %v950_v3 }
 0x1fe   :  { %2484 = vmatpush1.bf16.msra.mxu0 %v6416_v10  ;;  %v957_v10 = vld [vmem:[#allocation11 + $0x4a0] sm:$0xff] }
 0x1ff   :  { %2485 = vmatprep.subr.bf16.mxu0 %v6425_v11  ;;  %v954_v11 = vld [vmem:[#allocation11 + $0x488] sm:$0xff]  ;;  %v6502_v27 = vcombine.low %v953_v9, %v957_v10 }
 0x200   :  { %v6504_v28 = vcombine.low %v954_v11, %v958_v15 }
 0x202   :  { %2486 = vmatpush1.bf16.msra.mxu0 %v6424_v21  ;;  %v6503_v21 = vcombine.high %v953_v9, %v957_v10  ;;  %v1010_v9 = vld [vmem:[#allocation11 + $0x648] sm:$0xff] }
 0x203   :  { %2487 = vmatprep.subr.bf16.mxu0 %v6433_v22  ;;  %v6505_v22 = vcombine.high %v954_v11, %v958_v15  ;;  %v1014_v10 = vld [vmem:[#allocation11 + $0x668] sm:$0xff] }
 0x206   :  { %2488 = vmatpush1.bf16.msra.mxu0 %v6432_v25  ;;  %v962_v25 = vld [vmem:[#allocation11 + $0x4c8] sm:$0xff] }
 0x207   :  { %2489 = vmatprep.subr.bf16.mxu0 %v6441_v26  ;;  %v966_v26 = vld [vmem:[#allocation11 + $0x4e8] sm:$0xff] }
 0x208   :  { %v6513_v13 = vcombine.high %v962_v25, %v966_v26 }
 0x20a   :  { %2490 = vmatpush1.bf16.msra.mxu0 %v6440_v29  ;;  %v6510_v29 = vcombine.low %v961_v23, %v965_v24  ;;  %v1018_v23 = vld [vmem:[#allocation11 + $0x688] sm:$0xff] }
 0x20b   :  { %2491 = vmatprep.subr.bf16.mxu0 %v6449_v30  ;;  %v6512_v30 = vcombine.low %v962_v25, %v966_v26  ;;  %v1022_v24 = vld [vmem:[#allocation11 + $0x6a8] sm:$0xff]  ;;  %v6560_v26 = vcombine.low %v1010_v9, %v1014_v10 }
 0x20e   :  { %2492 = vmatpush1.bf16.msra.mxu0 %v6448_v33  ;;  %v977_v33 = vld [vmem:[#allocation11 + $0x540] sm:$0xff] }
 0x20f   :  { %2493 = vmatprep.subr.bf16.mxu0 %v6457_v34  ;;  %v981_v34 = vld [vmem:[#allocation11 + $0x560] sm:$0xff] }
 0x210   :  { %v6527_v40 = vcombine.high %v977_v33, %v981_v34 }
 0x212   :  { %2494 = vmatpush1.bf16.msra.mxu0 %v6456_v38  ;;  %v6518_v38 = vcombine.low %v969_v14, %v973_v18  ;;  %v1026_v14 = vld [vmem:[#allocation11 + $0x6c8] sm:$0xff] }
 0x213   :  { %2495 = vmatprep.subr.bf16.mxu0 %v6465_v39  ;;  %v1030_v18 = vld [vmem:[#allocation11 + $0x6e8] sm:$0xff] }
 0x216   :  { %2496 = vmatpush1.bf16.msra.mxu0 %v6464_v44  ;;  %v985_v44 = vld [vmem:[#allocation11 + $0x580] sm:$0xff] }
 0x217   :  { %2497 = vmatprep.subr.bf16.mxu0 %v6473_v45  ;;  %v989_v45 = vld [vmem:[#allocation11 + $0x5a0] sm:$0xff] }
 0x21a   :  { %2498 = vmatpush1.bf16.msra.mxu0 %v6472_v48  ;;  %v6526_v48 = vcombine.low %v977_v33, %v981_v34  ;;  %v1034_v33 = vld [vmem:[#allocation11 + $0x708] sm:$0xff] }
 0x21b   :  { %2499 = vmatprep.subr.bf16.mxu0 %v6481_v49  ;;  %v6528_v49 = vcombine.low %v978_v35, %v982_v37  ;;  %v1038_v34 = vld [vmem:[#allocation11 + $0x728] sm:$0xff]  ;;  %v6576_v37 = vcombine.low %v1026_v14, %v1030_v18 }
 0x21e   :  { %2500 = vmatpush1.bf16.msra.mxu0 %v6480_v50  ;;  %v6535_v50 = vcombine.high %v985_v44, %v989_v45 }
 0x21f   :  { %2510 = vmatprep.subr.bf16.mxu0 %v6489_v51  ;;  %v6537_v51 = vcombine.high %v986_v46, %v990_v47 }
 0x274   :  { %v745_v55 = vpop.f32.mrb[4].mxu0 }
 0x275   :  { %v746_v56 = vadd.f32 %v745_v55, %v374_v53  ;;  %v747_v57 = vpop.f32.mrb[5].mxu0  ;;  %v993_v53 = vld [vmem:[#allocation11 + $0x5c0] sm:$0xff]  ;;  %v994_v55 = vld [vmem:[#allocation11 + $0x5c8] sm:$0xff] }
 0x276   :  { %v748_v58 = vadd.f32 %v747_v57, %v378_v54  ;;  %v749_v59 = vpop.f32.mrb[6].mxu0  ;;  %v997_v54 = vld [vmem:[#allocation11 + $0x5e0] sm:$0xff]  ;;  %v6534_v57 = vcombine.low %v985_v44, %v989_v45  ;;  %v1042_v44 = vld [vmem:[#allocation11 + $0x748] sm:$0xff] }
 0x277   :  { %vm793_vm2 = vcmp.ge.f32.partialorder %v746_v56, 0.0  ;;  %v797_v60 = vmul.f32 0.2, %v746_v56  ;;  %v750_v61 = vpop.f32.mrb[7].mxu0  ;;  %v6543_v59 = vcombine.high %v993_v53, %v997_v54  ;;  %v6542_v1 = vcombine.low %v993_v53, %v997_v54  ;;  %v1046_v45 = vld [vmem:[#allocation11 + $0x768] sm:$0xff]  ;;  %v1053_v53 = vld [vmem:[#allocation11 + $0x7a0] sm:$0xff] }
 0x278   :  { %vm794_vm3 = vcmp.ge.f32.partialorder %v748_v58, 0.0  ;;  %v798_v62 = vmul.f32 0.2, %v748_v58  ;;  %v1001_v61 = vld [vmem:[#allocation11 + $0x600] sm:$0xff]  ;;  %v1050_v54 = vld [vmem:[#allocation11 + $0x788] sm:$0xff] }
 0x279   :  { %v801_v0 = vsel %vm793_vm2, %v746_v56, %v797_v60  ;;  %v998_v56 = vld [vmem:[#allocation11 + $0x5e8] sm:$0xff] }
 0x27a   :  { %v802_v4 = vsel %vm794_vm3, %v748_v58, %v798_v62  ;;  %v8442_v6 = vpack.c.bf16 %v801_v0, %v801_v0  ;;  %v6536_v58 = vcombine.low %v986_v46, %v990_v47  ;;  %v6545_v60 = vcombine.high %v994_v55, %v998_v56  ;;  %v1005_v62 = vld [vmem:[#allocation11 + $0x620] sm:$0xff]  ;;  %v1006_v0 = vld [vmem:[#allocation11 + $0x628] sm:$0xff] }
 0x27b   :  { %v8440_v5 = vpack.c.bf16 %v802_v4, %v802_v4  ;;  %v6544_v2 = vcombine.low %v994_v55, %v998_v56  ;;  %v6551_v3 = vcombine.high %v1001_v61, %v1005_v62  ;;  %v6553_v4 = vcombine.high %v1002_v63, %v1006_v0  ;;  %v1054_v55 = vld [vmem:[#allocation11 + $0x7a8] sm:$0xff] }
 0x27c   :  { %v6550_v11 = vcombine.low %v1001_v61, %v1005_v62  ;;  %v6552_v15 = vcombine.low %v1002_v63, %v1006_v0  ;;  %v6584_v47 = vcombine.low %v1034_v33, %v1038_v34  ;;  %v8458_v56 = vsub.s32 3, %v8404_v36  ;;  %v1057_v61 = vld [vmem:[#allocation11 + $0x7c0] sm:$0xff]  ;;  %v1058_v0 = vld [vmem:[#allocation11 + $0x7c8] sm:$0xff] }
 0x27d   :  { %2419 = vmatprep.mubr.bf16.mxu1 %v8440_v5  ;;  %2501 = vmatprep.mubr.bf16.mxu0 %v8440_v5  ;;  %v1061_v63 = vld [vmem:[#allocation11 + $0x7e0] sm:$0xff] }
 0x27e   :  { %2420 = vmatmul.mubr.bf16.vlgmr.msra.gmra.mrb[0].mxu1 %v8442_v6  ;;  %2502 = vmatmul.mubr.bf16.vlgmr.msra.gmra.mrb[12].mxu0 %v8442_v6 }
 0x27f   :  { %2429 = vmatpush1.bf16.msra.mxu1 %v6486_v19  ;;  %2511 = vmatpush1.bf16.msra.mxu0 %v6488_v20  ;;  %v970_v19 = vld [vmem:[#allocation11 + $0x508] sm:$0xff] }
 0x280   :  { %2430 = vmatprep.subr.bf16.mxu1 %v6495_v7  ;;  %2512 = vmatprep.subr.bf16.mxu0 %v6497_v8  ;;  %v974_v20 = vld [vmem:[#allocation11 + $0x528] sm:$0xff]  ;;  %v1009_v7 = vld [vmem:[#allocation11 + $0x640] sm:$0xff] }
 0x281   :  { %v6521_v32 = vcombine.high %v970_v19, %v974_v20  ;;  %v6520_v39 = vcombine.low %v970_v19, %v974_v20  ;;  %v1013_v8 = vld [vmem:[#allocation11 + $0x660] sm:$0xff]  ;;  %v6568_v20 = vcombine.low %v1018_v23, %v1022_v24 }
 0x282   :  { %v6558_v25 = vcombine.low %v1009_v7, %v1013_v8 }
 0x283   :  { %2431 = vmatpush1.bf16.msra.mxu1 %v6494_v16  ;;  %2513 = vmatpush1.bf16.msra.mxu0 %v6496_v17  ;;  %v6559_v16 = vcombine.high %v1009_v7, %v1013_v8  ;;  %v6561_v17 = vcombine.high %v1010_v9, %v1014_v10  ;;  %v6607_v8 = vcombine.high %v1057_v61, %v1061_v63  ;;  %v811_v10 = vld [vmem:[#allocation11 + $0x10] sm:$0xff] }
 0x284   :  { %2432 = vmatprep.subr.bf16.mxu1 %v6503_v21  ;;  %2514 = vmatprep.subr.bf16.mxu0 %v6505_v22  ;;  %v1017_v21 = vld [vmem:[#allocation11 + $0x680] sm:$0xff] }
 0x285   :  { %v1021_v22 = vld [vmem:[#allocation11 + $0x6a0] sm:$0xff] }
 0x286   :  { %v6566_v19 = vcombine.low %v1017_v21, %v1021_v22 }
 0x287   :  { %2433 = vmatpush1.bf16.msra.mxu1 %v6502_v27  ;;  %2515 = vmatpush1.bf16.msra.mxu0 %v6504_v28  ;;  %v6567_v27 = vcombine.high %v1017_v21, %v1021_v22  ;;  %v6569_v28 = vcombine.high %v1018_v23, %v1022_v24  ;;  %v816_v21 = vld [vmem:[#allocation11 + $0x38] sm:$0xff] }
 0x288   :  { %2434 = vmatprep.subr.bf16.mxu1 %v6511_v12  ;;  %2516 = vmatprep.subr.bf16.mxu0 %v6513_v13  ;;  %v1025_v12 = vld [vmem:[#allocation11 + $0x6c0] sm:$0xff] }
 0x289   :  { %v1029_v13 = vld [vmem:[#allocation11 + $0x6e0] sm:$0xff] }
 0x28a   :  { %v6574_v35 = vcombine.low %v1025_v12, %v1029_v13 }
 0x28b   :  { %2435 = vmatpush1.bf16.msra.mxu1 %v6510_v29  ;;  %2517 = vmatpush1.bf16.msra.mxu0 %v6512_v30  ;;  %v6575_v29 = vcombine.high %v1025_v12, %v1029_v13  ;;  %v6577_v30 = vcombine.high %v1026_v14, %v1030_v18  ;;  %v819_v14 = vld [vmem:[#allocation11 + $0x50] sm:$0xff] }
 0x28c   :  { %2436 = vmatprep.subr.bf16.mxu1 %v6519_v31  ;;  %2518 = vmatprep.subr.bf16.mxu0 %v6521_v32  ;;  %v1033_v31 = vld [vmem:[#allocation11 + $0x700] sm:$0xff] }
 0x28d   :  { %v1037_v32 = vld [vmem:[#allocation11 + $0x720] sm:$0xff] }
 0x28e   :  { %v6582_v46 = vcombine.low %v1033_v31, %v1037_v32 }
 0x28f   :  { %2437 = vmatpush1.bf16.msra.mxu1 %v6518_v38  ;;  %2519 = vmatpush1.bf16.msra.mxu0 %v6520_v39  ;;  %v6583_v38 = vcombine.high %v1033_v31, %v1037_v32  ;;  %v6585_v39 = vcombine.high %v1034_v33, %v1038_v34 }
 0x290   :  { %2438 = vmatprep.subr.bf16.mxu1 %v6527_v40  ;;  %2520 = vmatprep.subr.bf16.mxu0 %v6529_v41  ;;  %v1041_v40 = vld [vmem:[#allocation11 + $0x740] sm:$0xff] }
 0x291   :  { %v1045_v41 = vld [vmem:[#allocation11 + $0x760] sm:$0xff] }
 0x293   :  { %2439 = vmatpush1.bf16.msra.mxu1 %v6526_v48  ;;  %2521 = vmatpush1.bf16.msra.mxu0 %v6528_v49  ;;  %v6591_v48 = vcombine.high %v1041_v40, %v1045_v41  ;;  %v6593_v49 = vcombine.high %v1042_v44, %v1046_v45 }
 0x294   :  { %2440 = vmatprep.subr.bf16.mxu1 %v6535_v50  ;;  %2522 = vmatprep.subr.bf16.mxu0 %v6537_v51  ;;  %v1049_v50 = vld [vmem:[#allocation11 + $0x780] sm:$0xff]  ;;  %v8455_v51 = vsub.s32 2, %v8404_v36 }
 0x296   :  { %v382_v62 = vrot.slane %v8434_v52, %v8455_v51 }
 0x297   :  { %2441 = vmatpush1.bf16.msra.mxu1 %v6534_v57  ;;  %2523 = vmatpush1.bf16.msra.mxu0 %v6536_v58  ;;  %v6590_v57 = vcombine.low %v1041_v40, %v1045_v41  ;;  %v6592_v58 = vcombine.low %v1042_v44, %v1046_v45  ;;  %v832_v40 = vld [vmem:[#allocation11 + $0xb8] sm:$0xff] }
 0x298   :  { %2442 = vmatprep.subr.bf16.mxu1 %v6543_v59  ;;  %2524 = vmatprep.subr.bf16.mxu0 %v6545_v60  ;;  %v6599_v59 = vcombine.high %v1049_v50, %v1053_v53  ;;  %v6601_v60 = vcombine.high %v1050_v54, %v1054_v55 }
 0x29b   :  { %2443 = vmatpush1.bf16.msra.mxu1 %v6542_v1  ;;  %2525 = vmatpush1.bf16.msra.mxu0 %v6544_v2  ;;  %v1062_v1 = vld [vmem:[#allocation11 + $0x7e8] sm:$0xff]  ;;  %v386_v2 = vrot.slane %v8434_v52, %v8458_v56 }
 0x29c   :  { %2444 = vmatprep.subr.bf16.mxu1 %v6551_v3  ;;  %2526 = vmatprep.subr.bf16.mxu0 %v6553_v4  ;;  %v6598_v3 = vcombine.low %v1049_v50, %v1053_v53  ;;  %v6600_v4 = vcombine.low %v1050_v54, %v1054_v55  ;;  %v6609_v9 = vcombine.high %v1058_v0, %v1062_v1  ;;  %v840_v50 = vld [vmem:[#allocation11 + $0xf8] sm:$0xff] }
 0x29f   :  { %2445 = vmatpush1.bf16.msra.mxu1 %v6550_v11  ;;  %2527 = vmatpush1.bf16.msra.mxu0 %v6552_v15 }
 0x2a0   :  { %2446 = vmatprep.subr.bf16.mxu1 %v6559_v16  ;;  %2528 = vmatprep.subr.bf16.mxu0 %v6561_v17  ;;  %v815_v16 = vld [vmem:[#allocation11 + $0x30] sm:$0xff]  ;;  %v812_v17 = vld [vmem:[#allocation11 + $0x18] sm:$0xff] }
 0x2a1   :  { %v6365_v12 = vcombine.high %v812_v17, %v816_v21  ;;  %v6362_v31 = vcombine.low %v811_v10, %v815_v16  ;;  %v6364_v33 = vcombine.low %v812_v17, %v816_v21  ;;  %v864_v17 = vld [vmem:[#allocation11 + $0x1b8] sm:$0xff] }
 0x2a3   :  { %2447 = vmatpush1.bf16.msra.mxu1 %v6558_v25  ;;  %2529 = vmatpush1.bf16.msra.mxu0 %v6560_v26  ;;  %v6606_v25 = vcombine.low %v1057_v61, %v1061_v63  ;;  %v6608_v26 = vcombine.low %v1058_v0, %v1062_v1  ;;  %v851_v1 = vld [vmem:[#allocation11 + $0x150] sm:$0xff] }
 0x2a4   :  { %2448 = vmatprep.subr.bf16.mxu1 %v6567_v27  ;;  %2530 = vmatprep.subr.bf16.mxu0 %v6569_v28  ;;  %v6363_v28 = vcombine.high %v811_v10, %v815_v16  ;;  %v860_v16 = vld [vmem:[#allocation11 + $0x198] sm:$0xff] }
 0x2a7   :  { %2449 = vmatpush1.bf16.msra.mxu1 %v6566_v19  ;;  %2531 = vmatpush1.bf16.msra.mxu0 %v6568_v20  ;;  %v823_v19 = vld [vmem:[#allocation11 + $0x70] sm:$0xff]  ;;  %v820_v20 = vld [vmem:[#allocation11 + $0x58] sm:$0xff] }
 0x2a8   :  { %2450 = vmatprep.subr.bf16.mxu1 %v6575_v29  ;;  %2532 = vmatprep.subr.bf16.mxu0 %v6577_v30  ;;  %v824_v29 = vld [vmem:[#allocation11 + $0x78] sm:$0xff]  ;;  %v6371_v34 = vcombine.high %v819_v14, %v823_v19  ;;  %v6370_v41 = vcombine.low %v819_v14, %v823_v19  ;;  %v879_v19 = vld [vmem:[#allocation11 + $0x230] sm:$0xff] }
 0x2a9   :  { %v6372_v44 = vcombine.low %v820_v20, %v824_v29 }
 0x2ab   :  { %2451 = vmatpush1.bf16.msra.mxu1 %v6574_v35  ;;  %2533 = vmatpush1.bf16.msra.mxu0 %v6576_v37  ;;  %v6373_v35 = vcombine.high %v820_v20, %v824_v29  ;;  %v827_v37 = vld [vmem:[#allocation11 + $0x90] sm:$0xff]  ;;  %v876_v20 = vld [vmem:[#allocation11 + $0x218] sm:$0xff] }
 0x2ac   :  { %2452 = vmatprep.subr.bf16.mxu1 %v6583_v38  ;;  %2534 = vmatprep.subr.bf16.mxu0 %v6585_v39  ;;  %v831_v38 = vld [vmem:[#allocation11 + $0xb0] sm:$0xff]  ;;  %v828_v39 = vld [vmem:[#allocation11 + $0x98] sm:$0xff] }
 0x2ad   :  { %v6379_v45 = vcombine.high %v827_v37, %v831_v38  ;;  %v6378_v53 = vcombine.low %v827_v37, %v831_v38  ;;  %v6380_v54 = vcombine.low %v828_v39, %v832_v40  ;;  %v880_v29 = vld [vmem:[#allocation11 + $0x238] sm:$0xff]  ;;  %v883_v37 = vld [vmem:[#allocation11 + $0x250] sm:$0xff] }
 0x2ae   :  { %v887_v38 = vld [vmem:[#allocation11 + $0x270] sm:$0xff] }
 0x2af   :  { %2453 = vmatpush1.bf16.msra.mxu1 %v6582_v46  ;;  %2535 = vmatpush1.bf16.msra.mxu0 %v6584_v47  ;;  %v6381_v46 = vcombine.high %v828_v39, %v832_v40  ;;  %v835_v47 = vld [vmem:[#allocation11 + $0xd0] sm:$0xff]  ;;  %v884_v39 = vld [vmem:[#allocation11 + $0x258] sm:$0xff] }
 0x2b0   :  { %2454 = vmatprep.subr.bf16.mxu1 %v6591_v48  ;;  %2536 = vmatprep.subr.bf16.mxu0 %v6593_v49  ;;  %v839_v48 = vld [vmem:[#allocation11 + $0xf0] sm:$0xff]  ;;  %v836_v49 = vld [vmem:[#allocation11 + $0xd8] sm:$0xff] }
 0x2b1   :  { %v6387_v55 = vcombine.high %v835_v47, %v839_v48  ;;  %v6386_v61 = vcombine.low %v835_v47, %v839_v48  ;;  %v888_v40 = vld [vmem:[#allocation11 + $0x278] sm:$0xff]  ;;  %v891_v47 = vld [vmem:[#allocation11 + $0x290] sm:$0xff] }
 0x2b2   :  { %v895_v48 = vld [vmem:[#allocation11 + $0x2b0] sm:$0xff] }
 0x2b3   :  { %2455 = vmatpush1.bf16.msra.mxu1 %v6590_v57  ;;  %2537 = vmatpush1.bf16.msra.mxu0 %v6592_v58  ;;  %v6389_v57 = vcombine.high %v836_v49, %v840_v50  ;;  %v843_v58 = vld [vmem:[#allocation11 + $0x110] sm:$0xff] }
 0x2b4   :  { %v786_v7 = vpop.f32.mrb[8].mxu0  ;;  %2456 = vmatprep.subr.bf16.mxu1 %v6599_v59  ;;  %2538 = vmatprep.subr.bf16.mxu0 %v6601_v60  ;;  %v847_v59 = vld [vmem:[#allocation11 + $0x130] sm:$0xff]  ;;  %v848_v60 = vld [vmem:[#allocation11 + $0x138] sm:$0xff] }
 0x2b5   :  { %v787_v11 = vadd.f32 %v786_v7, %v382_v62  ;;  %v788_v15 = vpop.f32.mrb[9].mxu0  ;;  %v6388_v62 = vcombine.low %v836_v49, %v840_v50  ;;  %v6395_v63 = vcombine.high %v843_v58, %v847_v59  ;;  %v6394_v7 = vcombine.low %v843_v58, %v847_v59  ;;  %v892_v49 = vld [vmem:[#allocation11 + $0x298] sm:$0xff]  ;;  %v899_v58 = vld [vmem:[#allocation11 + $0x2d0] sm:$0xff] }
 0x2b6   :  { %v789_v22 = vadd.f32 %v788_v15, %v386_v2  ;;  %v790_v23 = vpop.f32.mrb[10].mxu0  ;;  %v855_v2 = vld [vmem:[#allocation11 + $0x170] sm:$0xff]  ;;  %v896_v50 = vld [vmem:[#allocation11 + $0x2b8] sm:$0xff] }
 0x2b7   :  { %vm795_vm4 = vcmp.ge.f32.partialorder %v787_v11, 0.0  ;;  %v799_v24 = vmul.f32 0.2, %v787_v11  ;;  %v791_v52 = vpop.f32.mrb[11].mxu0  ;;  %2457 = vmatpush1.bf16.msra.mxu1 %v6598_v3  ;;  %2539 = vmatpush1.bf16.msra.mxu0 %v6600_v4  ;;  %v852_v3 = vld [vmem:[#allocation11 + $0x158] sm:$0xff]  ;;  %v863_v15 = vld [vmem:[#allocation11 + $0x1b0] sm:$0xff]  ;;  %v6402_v21 = vcombine.low %v851_v1, %v855_v2 }
 0x2b8   :  { %vm796_vm5 = vcmp.ge.f32.partialorder %v789_v22, 0.0  ;;  %v800_v27 = vmul.f32 0.2, %v789_v22  ;;  %2458 = vmatprep.subr.bf16.mxu1 %v6607_v8  ;;  %2540 = vmatprep.subr.bf16.mxu0 %v6609_v9  ;;  %v856_v4 = vld [vmem:[#allocation11 + $0x178] sm:$0xff]  ;;  %v6403_v9 = vcombine.high %v851_v1, %v855_v2  ;;  %v867_v52 = vld [vmem:[#allocation11 + $0x1d0] sm:$0xff] }
 0x2b9   :  { %v803_v13 = vsel %vm795_vm4, %v787_v11, %v799_v24  ;;  %v6405_v10 = vcombine.high %v852_v3, %v856_v4  ;;  %v859_v11 = vld [vmem:[#allocation11 + $0x190] sm:$0xff]  ;;  %v6413_v24 = vcombine.high %v860_v16, %v864_v17 }
 0x2ba   :  { %v804_v18 = vsel %vm796_vm5, %v789_v22, %v800_v27  ;;  %v8466_v32 = vpack.c.bf16 %v803_v13, %v803_v13  ;;  %v6404_v22 = vcombine.low %v852_v3, %v856_v4  ;;  %v6411_v23 = vcombine.high %v859_v11, %v863_v15  ;;  %v872_v27 = vld [vmem:[#allocation11 + $0x1f8] sm:$0xff]  ;;  %v903_v59 = vld [vmem:[#allocation11 + $0x2f0] sm:$0xff] }
 0x2bb   :  { %v8464_v30 = vpack.c.bf16 %v804_v18, %v804_v18  ;;  %2459 = vmatpush1.bf16.msra.mxu1 %v6606_v25  ;;  %2541 = vmatpush1.bf16.msra.mxu0 %v6608_v26  ;;  %v871_v25 = vld [vmem:[#allocation11 + $0x1f0] sm:$0xff]  ;;  %v868_v26 = vld [vmem:[#allocation11 + $0x1d8] sm:$0xff] }
 0x2bc   :  { %2551 = vmatprep.subr.bf16.mxu1 %v6363_v28  ;;  %2633 = vmatprep.subr.bf16.mxu0 %v6365_v12  ;;  %v6410_v28 = vcombine.low %v859_v11, %v863_v15  ;;  %v6412_v12 = vcombine.low %v860_v16, %v864_v17  ;;  %v6419_v13 = vcombine.high %v867_v52, %v871_v25  ;;  %v875_v18 = vld [vmem:[#allocation11 + $0x210] sm:$0xff]  ;;  %v908_v3 = vld [vmem:[#allocation11 + $0x318] sm:$0xff] }
 0x2bd   :  { %2460 = vmatprep.mubr.bf16.mxu1 %v8464_v30  ;;  %2542 = vmatprep.mubr.bf16.mxu0 %v8464_v30  ;;  %v6421_v14 = vcombine.high %v868_v26, %v872_v27  ;;  %v907_v1 = vld [vmem:[#allocation11 + $0x310] sm:$0xff]  ;;  %v912_v4 = vld [vmem:[#allocation11 + $0x338] sm:$0xff] }
 0x2be   :  { %2461 = vmatmul.mubr.bf16.vlgmr.msra.gmra.mrb[0].mxu1 %v8466_v32  ;;  %2543 = vmatmul.mubr.bf16.vlgmr.msra.gmra.mrb[12].mxu0 %v8466_v32  ;;  %v911_v2 = vld [vmem:[#allocation11 + $0x330] sm:$0xff]  ;;  %v916_v16 = vld [vmem:[#allocation11 + $0x358] sm:$0xff] }
 0x2bf   :  { %2552 = vmatpush1.bf16.msra.mxu1 %v6362_v31  ;;  %2583 = vmatprep.mubr.bf16.mxu1 %v8440_v5  ;;  %v6418_v31 = vcombine.low %v867_v52, %v871_v25  ;;  %v915_v11 = vld [vmem:[#allocation11 + $0x350] sm:$0xff]  ;;  %v920_v17 = vld [vmem:[#allocation11 + $0x378] sm:$0xff] }
 0x2c0   :  { %2634 = vmatpush1.bf16.msra.mxu0 %v6364_v33  ;;  %2665 = vmatprep.mubr.bf16.mxu0 %v8440_v5  ;;  %v844_v5 = vld [vmem:[#allocation11 + $0x118] sm:$0xff]  ;;  %v6420_v33 = vcombine.low %v868_v26, %v872_v27  ;;  %v919_v15 = vld [vmem:[#allocation11 + $0x370] sm:$0xff] }
 0x2c1   :  { %2553 = vmatprep.subr.bf16.mxu1 %v6371_v34  ;;  %2635 = vmatprep.subr.bf16.mxu0 %v6373_v35  ;;  %v6397_v0 = vcombine.high %v844_v5, %v848_v60  ;;  %v6396_v8 = vcombine.low %v844_v5, %v848_v60  ;;  %v6427_v34 = vcombine.high %v875_v18, %v879_v19  ;;  %v900_v5 = vld [vmem:[#allocation11 + $0x2d8] sm:$0xff]  ;;  %v923_v52 = vld [vmem:[#allocation11 + $0x390] sm:$0xff] }
 0x2c2   :  { %v6429_v35 = vcombine.high %v876_v20, %v880_v29  ;;  %v904_v60 = vld [vmem:[#allocation11 + $0x2f8] sm:$0xff]  ;;  %v927_v25 = vld [vmem:[#allocation11 + $0x3b0] sm:$0xff] }
 0x2c3   :  { %2554 = vmatpush1.bf16.msra.mxu1 %v6370_v41  ;;  %v6426_v41 = vcombine.low %v875_v18, %v879_v19  ;;  %v924_v26 = vld [vmem:[#allocation11 + $0x398] sm:$0xff]  ;;  %v931_v18 = vld [vmem:[#allocation11 + $0x3d0] sm:$0xff] }
 0x2c4   :  { %2636 = vmatpush1.bf16.msra.mxu0 %v6372_v44  ;;  %2555 = vmatprep.subr.bf16.mxu1 %v6379_v45  ;;  %v6428_v44 = vcombine.low %v876_v20, %v880_v29  ;;  %v6435_v45 = vcombine.high %v883_v37, %v887_v38  ;;  %v928_v27 = vld [vmem:[#allocation11 + $0x3b8] sm:$0xff]  ;;  %v935_v19 = vld [vmem:[#allocation11 + $0x3f0] sm:$0xff] }
 0x2c5   :  { %2637 = vmatprep.subr.bf16.mxu0 %v6381_v46  ;;  %v6437_v46 = vcombine.high %v884_v39, %v888_v40  ;;  %v932_v20 = vld [vmem:[#allocation11 + $0x3d8] sm:$0xff] }
 0x2c6   :  { %v936_v29 = vld [vmem:[#allocation11 + $0x3f8] sm:$0xff] }
 0x2c7   :  { %2556 = vmatpush1.bf16.msra.mxu1 %v6378_v53  ;;  %v6434_v53 = vcombine.low %v883_v37, %v887_v38  ;;  %v939_v37 = vld [vmem:[#allocation11 + $0x410] sm:$0xff] }
 0x2c8   :  { %2638 = vmatpush1.bf16.msra.mxu0 %v6380_v54  ;;  %2557 = vmatprep.subr.bf16.mxu1 %v6387_v55  ;;  %v6436_v54 = vcombine.low %v884_v39, %v888_v40  ;;  %v6443_v55 = vcombine.high %v891_v47, %v895_v48  ;;  %v943_v38 = vld [vmem:[#allocation11 + $0x430] sm:$0xff]  ;;  %v940_v39 = vld [vmem:[#allocation11 + $0x418] sm:$0xff] }
 0x2c9   :  { %2639 = vmatprep.subr.bf16.mxu0 %v6389_v57  ;;  %v6445_v57 = vcombine.high %v892_v49, %v896_v50  ;;  %v944_v40 = vld [vmem:[#allocation11 + $0x438] sm:$0xff] }
 0x2cb   :  { %2558 = vmatpush1.bf16.msra.mxu1 %v6386_v61  ;;  %v6442_v61 = vcombine.low %v891_v47, %v895_v48  ;;  %v947_v47 = vld [vmem:[#allocation11 + $0x450] sm:$0xff] }
 0x2cc   :  { %2640 = vmatpush1.bf16.msra.mxu0 %v6388_v62  ;;  %2559 = vmatprep.subr.bf16.mxu1 %v6395_v63  ;;  %v6444_v62 = vcombine.low %v892_v49, %v896_v50  ;;  %v6451_v63 = vcombine.high %v899_v58, %v903_v59  ;;  %v951_v48 = vld [vmem:[#allocation11 + $0x470] sm:$0xff]  ;;  %v6490_v49 = vcombine.low %v939_v37, %v943_v38  ;;  %v948_v50 = vld [vmem:[#allocation11 + $0x458] sm:$0xff] }
 0x2cd   :  { %2641 = vmatprep.subr.bf16.mxu0 %v6397_v0  ;;  %v6453_v0 = vcombine.high %v900_v5, %v904_v60 }
 0x2cf   :  { %2560 = vmatpush1.bf16.msra.mxu1 %v6394_v7  ;;  %v6450_v7 = vcombine.low %v899_v58, %v903_v59  ;;  %v959_v58 = vld [vmem:[#allocation11 + $0x4b0] sm:$0xff] }
 0x2d0   :  { %2642 = vmatpush1.bf16.msra.mxu0 %v6396_v8  ;;  %2561 = vmatprep.subr.bf16.mxu1 %v6403_v9  ;;  %v6452_v8 = vcombine.low %v900_v5, %v904_v60  ;;  %v6459_v9 = vcombine.high %v907_v1, %v911_v2  ;;  %v956_v5 = vld [vmem:[#allocation11 + $0x498] sm:$0xff] }
 0x2d1   :  { %2643 = vmatprep.subr.bf16.mxu0 %v6405_v10  ;;  %v6461_v10 = vcombine.high %v908_v3, %v912_v4  ;;  %v960_v60 = vld [vmem:[#allocation11 + $0x4b8] sm:$0xff] }
 0x2d3   :  { %2562 = vmatpush1.bf16.msra.mxu1 %v6402_v21  ;;  %v6458_v21 = vcombine.low %v907_v1, %v911_v2  ;;  %v963_v1 = vld [vmem:[#allocation11 + $0x4d0] sm:$0xff] }
 0x2d4   :  { %2644 = vmatpush1.bf16.msra.mxu0 %v6404_v22  ;;  %2563 = vmatprep.subr.bf16.mxu1 %v6411_v23  ;;  %v6460_v22 = vcombine.low %v908_v3, %v912_v4  ;;  %v6467_v23 = vcombine.high %v915_v11, %v919_v15  ;;  %v967_v2 = vld [vmem:[#allocation11 + $0x4f0] sm:$0xff]  ;;  %v964_v3 = vld [vmem:[#allocation11 + $0x4d8] sm:$0xff] }
 0x2d5   :  { %2645 = vmatprep.subr.bf16.mxu0 %v6413_v24  ;;  %v6469_v24 = vcombine.high %v916_v16, %v920_v17  ;;  %v968_v4 = vld [vmem:[#allocation11 + $0x4f8] sm:$0xff] }
 0x2d7   :  { %2564 = vmatpush1.bf16.msra.mxu1 %v6410_v28  ;;  %v6466_v28 = vcombine.low %v915_v11, %v919_v15  ;;  %v975_v11 = vld [vmem:[#allocation11 + $0x530] sm:$0xff]  ;;  %v972_v15 = vld [vmem:[#allocation11 + $0x518] sm:$0xff] }
 0x2d8   :  { %2646 = vmatpush1.bf16.msra.mxu0 %v6412_v12  ;;  %2565 = vmatprep.subr.bf16.mxu1 %v6419_v13  ;;  %v6468_v12 = vcombine.low %v916_v16, %v920_v17  ;;  %v6475_v13 = vcombine.high %v923_v52, %v927_v25  ;;  %v976_v16 = vld [vmem:[#allocation11 + $0x538] sm:$0xff]  ;;  %v6516_v17 = vcombine.low %v964_v3, %v968_v4 }
 0x2d9   :  { %2647 = vmatprep.subr.bf16.mxu0 %v6421_v14  ;;  %v6477_v14 = vcombine.high %v924_v26, %v928_v27 }
 0x2db   :  { %2566 = vmatpush1.bf16.msra.mxu1 %v6418_v31  ;;  %v6474_v31 = vcombine.low %v923_v52, %v927_v25  ;;  %v980_v52 = vld [vmem:[#allocation11 + $0x558] sm:$0xff] }
 0x2dc   :  { %2648 = vmatpush1.bf16.msra.mxu0 %v6420_v33  ;;  %2567 = vmatprep.subr.bf16.mxu1 %v6427_v34  ;;  %v6476_v33 = vcombine.low %v924_v26, %v928_v27  ;;  %v6483_v34 = vcombine.high %v931_v18, %v935_v19  ;;  %v984_v25 = vld [vmem:[#allocation11 + $0x578] sm:$0xff]  ;;  %v6524_v27 = vcombine.low %v972_v15, %v976_v16 }
 0x2dd   :  { %2649 = vmatprep.subr.bf16.mxu0 %v6429_v35  ;;  %v6485_v35 = vcombine.high %v932_v20, %v936_v29 }
 0x2df   :  { %2568 = vmatpush1.bf16.msra.mxu1 %v6426_v41  ;;  %v6482_v41 = vcombine.low %v931_v18, %v935_v19  ;;  %v988_v18 = vld [vmem:[#allocation11 + $0x598] sm:$0xff] }
 0x2e0   :  { %2650 = vmatpush1.bf16.msra.mxu0 %v6428_v44  ;;  %2569 = vmatprep.subr.bf16.mxu1 %v6435_v45  ;;  %v6484_v44 = vcombine.low %v932_v20, %v936_v29  ;;  %v6491_v45 = vcombine.high %v939_v37, %v943_v38  ;;  %v992_v19 = vld [vmem:[#allocation11 + $0x5b8] sm:$0xff]  ;;  %v6532_v29 = vcombine.low %v980_v52, %v984_v25 }
 0x2e1   :  { %2651 = vmatprep.subr.bf16.mxu0 %v6437_v46  ;;  %v6493_v46 = vcombine.high %v940_v39, %v944_v40  ;;  %v996_v37 = vld [vmem:[#allocation11 + $0x5d8] sm:$0xff] }
 0x2e2   :  { %v1000_v38 = vld [vmem:[#allocation11 + $0x5f8] sm:$0xff] }
 0x2e3   :  { %2570 = vmatpush1.bf16.msra.mxu1 %v6434_v53  ;;  %v952_v53 = vld [vmem:[#allocation11 + $0x478] sm:$0xff] }
 0x2e4   :  { %2652 = vmatpush1.bf16.msra.mxu0 %v6436_v54  ;;  %2571 = vmatprep.subr.bf16.mxu1 %v6443_v55  ;;  %v6492_v54 = vcombine.low %v940_v39, %v944_v40  ;;  %v6499_v55 = vcombine.high %v947_v47, %v951_v48  ;;  %v6501_v59 = vcombine.high %v948_v50, %v952_v53 }
 0x2e5   :  { %2653 = vmatprep.subr.bf16.mxu0 %v6445_v57  ;;  %v955_v57 = vld [vmem:[#allocation11 + $0x490] sm:$0xff]  ;;  %v6540_v40 = vcombine.low %v988_v18, %v992_v19 }
 0x2e7   :  { %2572 = vmatpush1.bf16.msra.mxu1 %v6442_v61  ;;  %v6498_v61 = vcombine.low %v947_v47, %v951_v48  ;;  %v1004_v47 = vld [vmem:[#allocation11 + $0x618] sm:$0xff] }
 0x2e8   :  { %2654 = vmatpush1.bf16.msra.mxu0 %v6444_v62  ;;  %2573 = vmatprep.subr.bf16.mxu1 %v6451_v63  ;;  %v6500_v62 = vcombine.low %v948_v50, %v952_v53  ;;  %v6507_v63 = vcombine.high %v955_v57, %v959_v58  ;;  %v1008_v48 = vld [vmem:[#allocation11 + $0x638] sm:$0xff]  ;;  %v6548_v50 = vcombine.low %v996_v37, %v1000_v38 }
 0x2e9   :  { %2655 = vmatprep.subr.bf16.mxu0 %v6453_v0  ;;  %v6509_v0 = vcombine.high %v956_v5, %v960_v60 }
 0x2eb   :  { %2574 = vmatpush1.bf16.msra.mxu1 %v6450_v7  ;;  %v6506_v7 = vcombine.low %v955_v57, %v959_v58  ;;  %v1015_v57 = vld [vmem:[#allocation11 + $0x670] sm:$0xff]  ;;  %v1012_v58 = vld [vmem:[#allocation11 + $0x658] sm:$0xff] }
 0x2ec   :  { %2656 = vmatpush1.bf16.msra.mxu0 %v6452_v8  ;;  %2575 = vmatprep.subr.bf16.mxu1 %v6459_v9  ;;  %v6515_v8 = vcombine.high %v963_v1, %v967_v2  ;;  %v6517_v9 = vcombine.high %v964_v3, %v968_v4 }
 0x2ed   :  { %2657 = vmatprep.subr.bf16.mxu0 %v6461_v10  ;;  %v971_v10 = vld [vmem:[#allocation11 + $0x510] sm:$0xff] }
 0x2ee   :  { %v6522_v26 = vcombine.low %v971_v10, %v975_v11 }
 0x2ef   :  { %2576 = vmatpush1.bf16.msra.mxu1 %v6458_v21  ;;  %v6523_v21 = vcombine.high %v971_v10, %v975_v11  ;;  %v1028_v10 = vld [vmem:[#allocation11 + $0x6d8] sm:$0xff] }
 0x2f0   :  { %2658 = vmatpush1.bf16.msra.mxu0 %v6460_v22  ;;  %2577 = vmatprep.subr.bf16.mxu1 %v6467_v23  ;;  %v6525_v22 = vcombine.high %v972_v15, %v976_v16  ;;  %v979_v23 = vld [vmem:[#allocation11 + $0x550] sm:$0xff]  ;;  %v1032_v11 = vld [vmem:[#allocation11 + $0x6f8] sm:$0xff] }
 0x2f1   :  { %2659 = vmatprep.subr.bf16.mxu0 %v6469_v24  ;;  %v983_v24 = vld [vmem:[#allocation11 + $0x570] sm:$0xff] }
 0x2f2   :  { %v6530_v20 = vcombine.low %v979_v23, %v983_v24 }
 0x2f3   :  { %2578 = vmatpush1.bf16.msra.mxu1 %v6466_v28  ;;  %v6531_v28 = vcombine.high %v979_v23, %v983_v24  ;;  %v1036_v23 = vld [vmem:[#allocation11 + $0x718] sm:$0xff] }
 0x2f4   :  { %2660 = vmatpush1.bf16.msra.mxu0 %v6468_v12  ;;  %2579 = vmatprep.subr.bf16.mxu1 %v6475_v13  ;;  %v6533_v12 = vcombine.high %v980_v52, %v984_v25  ;;  %v987_v13 = vld [vmem:[#allocation11 + $0x590] sm:$0xff]  ;;  %v1040_v24 = vld [vmem:[#allocation11 + $0x738] sm:$0xff]  ;;  %v6580_v25 = vcombine.low %v1028_v10, %v1032_v11 }
 0x2f5   :  { %2661 = vmatprep.subr.bf16.mxu0 %v6477_v14  ;;  %v991_v14 = vld [vmem:[#allocation11 + $0x5b0] sm:$0xff] }
 0x2f6   :  { %v6538_v39 = vcombine.low %v987_v13, %v991_v14 }
 0x2f7   :  { %2580 = vmatpush1.bf16.msra.mxu1 %v6474_v31  ;;  %v6539_v31 = vcombine.high %v987_v13, %v991_v14  ;;  %v1044_v13 = vld [vmem:[#allocation11 + $0x758] sm:$0xff] }
 0x2f8   :  { %2662 = vmatpush1.bf16.msra.mxu0 %v6476_v33  ;;  %2581 = vmatprep.subr.bf16.mxu1 %v6483_v34  ;;  %v6541_v33 = vcombine.high %v988_v18, %v992_v19  ;;  %v995_v34 = vld [vmem:[#allocation11 + $0x5d0] sm:$0xff]  ;;  %v1048_v14 = vld [vmem:[#allocation11 + $0x778] sm:$0xff]  ;;  %v6588_v19 = vcombine.low %v1036_v23, %v1040_v24 }
 0x2f9   :  { %2663 = vmatprep.subr.bf16.mxu0 %v6485_v35  ;;  %v999_v35 = vld [vmem:[#allocation11 + $0x5f0] sm:$0xff] }
 0x2fb   :  { %2582 = vmatpush1.bf16.msra.mxu1 %v6482_v41  ;;  %v6547_v41 = vcombine.high %v995_v34, %v999_v35 }
 0x2fc   :  { %2664 = vmatpush1.bf16.msra.mxu0 %v6484_v44  ;;  %2592 = vmatprep.subr.bf16.mxu1 %v6491_v45  ;;  %v6549_v44 = vcombine.high %v996_v37, %v1000_v38  ;;  %v1003_v45 = vld [vmem:[#allocation11 + $0x610] sm:$0xff]  ;;  %v6596_v38 = vcombine.low %v1044_v13, %v1048_v14 }
 0x2fd   :  { %2674 = vmatprep.subr.bf16.mxu0 %v6493_v46  ;;  %v1007_v46 = vld [vmem:[#allocation11 + $0x630] sm:$0xff] }
 0x2fe   :  { %2584 = vmatmul.mubr.bf16.vlgmr.msra.gmra.mrb[4].mxu1 %v8442_v6  ;;  %v6555_v53 = vcombine.high %v1003_v45, %v1007_v46 }
 0x2ff   :  { %2666 = vmatmul.mubr.bf16.vlgmr.msra.gmra.mrb[16].mxu0 %v8442_v6  ;;  %2593 = vmatpush1.bf16.msra.mxu1 %v6490_v49  ;;  %v6508_v6 = vcombine.low %v956_v5, %v960_v60  ;;  %v6546_v49 = vcombine.low %v995_v34, %v999_v35  ;;  %v6554_v5 = vcombine.low %v1003_v45, %v1007_v46  ;;  %v1052_v34 = vld [vmem:[#allocation11 + $0x798] sm:$0xff] }
 0x300   :  { %2624 = vmatprep.mubr.bf16.mxu1 %v8464_v30  ;;  %2675 = vmatpush1.bf16.msra.mxu0 %v6492_v54  ;;  %v6557_v54 = vcombine.high %v1004_v47, %v1008_v48  ;;  %v6556_v60 = vcombine.low %v1004_v47, %v1008_v48  ;;  %v1056_v35 = vld [vmem:[#allocation11 + $0x7b8] sm:$0xff] }
 0x301   :  { %2706 = vmatprep.mubr.bf16.mxu0 %v8464_v30  ;;  %2594 = vmatprep.subr.bf16.mxu1 %v6499_v55  ;;  %v6514_v30 = vcombine.low %v963_v1, %v967_v2  ;;  %v1011_v55 = vld [vmem:[#allocation11 + $0x650] sm:$0xff]  ;;  %v1020_v1 = vld [vmem:[#allocation11 + $0x698] sm:$0xff]  ;;  %v6604_v48 = vcombine.low %v1052_v34, %v1056_v35 }
 0x302   :  { %2676 = vmatprep.subr.bf16.mxu0 %v6501_v59  ;;  %v1016_v59 = vld [vmem:[#allocation11 + $0x678] sm:$0xff]  ;;  %v6562_v3 = vcombine.low %v1011_v55, %v1015_v57 }
 0x303   :  { %2595 = vmatpush1.bf16.msra.mxu1 %v6498_v61  ;;  %v6563_v61 = vcombine.high %v1011_v55, %v1015_v57  ;;  %v1024_v2 = vld [vmem:[#allocation11 + $0x6b8] sm:$0xff]  ;;  %v6564_v4 = vcombine.low %v1012_v58, %v1016_v59  ;;  %v7357_v55 = vld [vmem:[#allocation14 + $0x4] ss:$28 sps:$4 sm:$0xff]   ;;  %v7360_v57 = vld [vmem:[#allocation14 + $0xc] ss:$28 sps:$4 sm:$0xff]  }
 0x304   :  { %2677 = vmatpush1.bf16.msra.mxu0 %v6500_v62  ;;  %2596 = vmatprep.subr.bf16.mxu1 %v6507_v63  ;;  %v6565_v62 = vcombine.high %v1012_v58, %v1016_v59  ;;  %v1019_v63 = vld [vmem:[#allocation11 + $0x690] sm:$0xff]  ;;  %v6572_v16 = vcombine.low %v1020_v1, %v1024_v2  ;;  %v1060_v45 = vld [vmem:[#allocation11 + $0x7d8] sm:$0xff]  ;;  %v7355_v58 = vld [vmem:[#allocation14] ss:$28 sps:$4 sm:$0xff]  }
 0x305   :  { %2678 = vmatprep.subr.bf16.mxu0 %v6509_v0  ;;  %v1023_v0 = vld [vmem:[#allocation11 + $0x6b0] sm:$0xff]  ;;  %v1064_v46 = vld [vmem:[#allocation11 + $0x7f8] sm:$0xff] }
 0x306   :  { %v6570_v15 = vcombine.low %v1019_v63, %v1023_v0  ;;  %v7358_v59 = vld [vmem:[#allocation14 + $0x8] ss:$28 sps:$4 sm:$0xff]  }
 0x307   :  { %2597 = vmatpush1.bf16.msra.mxu1 %v6506_v7  ;;  %v6571_v7 = vcombine.high %v1019_v63, %v1023_v0  ;;  %v7369_v63 = vld [vmem:[#allocation14 + $0x74] ss:$28 sps:$4 sm:$0xff]   ;;  %v7372_v0 = vld [vmem:[#allocation14 + $0x7c] ss:$28 sps:$4 sm:$0xff]  }
 0x308   :  { %2679 = vmatpush1.bf16.msra.mxu0 %v6508_v6  ;;  %2598 = vmatprep.subr.bf16.mxu1 %v6515_v8  ;;  %v6573_v6 = vcombine.high %v1020_v1, %v1024_v2  ;;  %v1027_v8 = vld [vmem:[#allocation11 + $0x6d0] sm:$0xff]  ;;  %v7370_v2 = vld [vmem:[#allocation14 + $0x78] ss:$28 sps:$4 sm:$0xff]  }
 0x309   :  { %2680 = vmatprep.subr.bf16.mxu0 %v6517_v9  ;;  %v1031_v9 = vld [vmem:[#allocation11 + $0x6f0] sm:$0xff] }
 0x30a   :  { %v6578_v52 = vcombine.low %v1027_v8, %v1031_v9  ;;  %v7367_v1 = vld [vmem:[#allocation14 + $0x70] ss:$28 sps:$4 sm:$0xff]  }
 0x30b   :  { %2599 = vmatpush1.bf16.msra.mxu1 %v6514_v30  ;;  %v6579_v30 = vcombine.high %v1027_v8, %v1031_v9  ;;  %v7384_v8 = vld [vmem:[#allocation14 + $0xec] ss:$28 sps:$4 sm:$0xff]   ;;  %v7379_v9 = vld [vmem:[#allocation14 + $0xe0] ss:$28 sps:$4 sm:$0xff]  }
 0x30c   :  { %2681 = vmatpush1.bf16.msra.mxu0 %v6516_v17  ;;  %2600 = vmatprep.subr.bf16.mxu1 %v6523_v21  ;;  %v6581_v17 = vcombine.high %v1028_v10, %v1032_v11  ;;  %v1035_v21 = vld [vmem:[#allocation11 + $0x710] sm:$0xff]  ;;  %v7387_v11 = vld [vmem:[#allocation14 + $0x11c] ss:$28 sps:$4 sm:$0xff]  }
 0x30d   :  { %2682 = vmatprep.subr.bf16.mxu0 %v6525_v22  ;;  %v1039_v22 = vld [vmem:[#allocation11 + $0x730] sm:$0xff] }
 0x30e   :  { %v6586_v18 = vcombine.low %v1035_v21, %v1039_v22  ;;  %v7382_v10 = vld [vmem:[#allocation14 + $0xe8] ss:$28 sps:$4 sm:$0xff]  }
 0x30f   :  { %2601 = vmatpush1.bf16.msra.mxu1 %v6522_v26  ;;  %v6587_v26 = vcombine.high %v1035_v21, %v1039_v22  ;;  %v7396_v21 = vld [vmem:[#allocation14 + $0x15c] ss:$28 sps:$4 sm:$0xff]   ;;  %v7391_v22 = vld [vmem:[#allocation14 + $0x150] ss:$28 sps:$4 sm:$0xff]  }
 0x310   :  { %2683 = vmatpush1.bf16.msra.mxu0 %v6524_v27  ;;  %2602 = vmatprep.subr.bf16.mxu1 %v6531_v28  ;;  %v6589_v27 = vcombine.high %v1036_v23, %v1040_v24  ;;  %v1043_v28 = vld [vmem:[#allocation11 + $0x750] sm:$0xff]  ;;  %v7394_v23 = vld [vmem:[#allocation14 + $0x158] ss:$28 sps:$4 sm:$0xff]  }
 0x311   :  { %2684 = vmatprep.subr.bf16.mxu0 %v6533_v12  ;;  %v1047_v12 = vld [vmem:[#allocation11 + $0x770] sm:$0xff] }
 0x312   :  { %v6594_v37 = vcombine.low %v1043_v28, %v1047_v12  ;;  %v7399_v24 = vld [vmem:[#allocation14 + $0x18c] ss:$28 sps:$4 sm:$0xff]  }
 0x313   :  { %2603 = vmatpush1.bf16.msra.mxu1 %v6530_v20  ;;  %v6595_v20 = vcombine.high %v1043_v28, %v1047_v12  ;;  %v7408_v28 = vld [vmem:[#allocation14 + $0x1cc] ss:$28 sps:$4 sm:$0xff]   ;;  %v7403_v12 = vld [vmem:[#allocation14 + $0x1c0] ss:$28 sps:$4 sm:$0xff]  }
 0x314   :  { %2685 = vmatpush1.bf16.msra.mxu0 %v6532_v29  ;;  %2604 = vmatprep.subr.bf16.mxu1 %v6539_v31  ;;  %v6597_v29 = vcombine.high %v1044_v13, %v1048_v14  ;;  %v1051_v31 = vld [vmem:[#allocation11 + $0x790] sm:$0xff]  ;;  %v7411_v14 = vld [vmem:[#allocation14 + $0x1fc] ss:$28 sps:$4 sm:$0xff]  }
 0x315   :  { %2686 = vmatprep.subr.bf16.mxu0 %v6541_v33  ;;  %v1055_v33 = vld [vmem:[#allocation11 + $0x7b0] sm:$0xff] }
 0x316   :  { %v6602_v47 = vcombine.low %v1051_v31, %v1055_v33  ;;  %v7406_v13 = vld [vmem:[#allocation14 + $0x1c8] ss:$28 sps:$4 sm:$0xff]  }
 0x317   :  { %2605 = vmatpush1.bf16.msra.mxu1 %v6538_v39  ;;  %v6603_v39 = vcombine.high %v1051_v31, %v1055_v33  ;;  %v7420_v31 = vld [vmem:[#allocation14 + $0x23c] ss:$28 sps:$4 sm:$0xff]   ;;  %v7415_v33 = vld [vmem:[#allocation14 + $0x230] ss:$28 sps:$4 sm:$0xff]  }
 0x318   :  { %2687 = vmatpush1.bf16.msra.mxu0 %v6540_v40  ;;  %2606 = vmatprep.subr.bf16.mxu1 %v6547_v41  ;;  %v6605_v40 = vcombine.high %v1052_v34, %v1056_v35  ;;  %v1059_v41 = vld [vmem:[#allocation11 + $0x7d0] sm:$0xff]  ;;  %v7418_v34 = vld [vmem:[#allocation14 + $0x238] ss:$28 sps:$4 sm:$0xff]  }
 0x319   :  { %2688 = vmatprep.subr.bf16.mxu0 %v6549_v44  ;;  %v1063_v44 = vld [vmem:[#allocation11 + $0x7f0] sm:$0xff] }
 0x31a   :  { %v7423_v35 = vld [vmem:[#allocation14 + $0x26c] ss:$28 sps:$4 sm:$0xff]  }
 0x31b   :  { %2607 = vmatpush1.bf16.msra.mxu1 %v6546_v49  ;;  %v6611_v49 = vcombine.high %v1059_v41, %v1063_v44 }
 0x31c   :  { %2689 = vmatpush1.bf16.msra.mxu0 %v6548_v50  ;;  %2608 = vmatprep.subr.bf16.mxu1 %v6555_v53  ;;  %v6613_v50 = vcombine.high %v1060_v45, %v1064_v46  ;;  %v6610_v53 = vcombine.low %v1059_v41, %v1063_v44  ;;  %v7432_v41 = vld [vmem:[#allocation14 + $0x2ac] ss:$28 sps:$4 sm:$0xff]   ;;  %v7427_v44 = vld [vmem:[#allocation14 + $0x2a0] ss:$28 sps:$4 sm:$0xff]  }
 0x31d   :  { %2690 = vmatprep.subr.bf16.mxu0 %v6557_v54  ;;  %v6612_v54 = vcombine.low %v1060_v45, %v1064_v46  ;;  %v7430_v45 = vld [vmem:[#allocation14 + $0x2a8] ss:$28 sps:$4 sm:$0xff]   ;;  %v7435_v46 = vld [vmem:[#allocation14 + $0x2dc] ss:$28 sps:$4 sm:$0xff]  }
 0x31f   :  { %2609 = vmatpush1.bf16.msra.mxu1 %v6554_v5  ;;  %v7363_v5 = vld [vmem:[#allocation14 + $0x3c] ss:$28 sps:$4 sm:$0xff]  }
 0x320   :  { %2691 = vmatpush1.bf16.msra.mxu0 %v6556_v60  ;;  %2610 = vmatprep.subr.bf16.mxu1 %v6563_v61  ;;  %v7366_v60 = vld [vmem:[#allocation14 + $0x44] ss:$28 sps:$4 sm:$0xff]   ;;  %v7361_v61 = vld [vmem:[#allocation14 + $0x38] ss:$28 sps:$4 sm:$0xff]  }
 0x321   :  { %2692 = vmatprep.subr.bf16.mxu0 %v6565_v62  ;;  %v7364_v62 = vld [vmem:[#allocation14 + $0x40] ss:$28 sps:$4 sm:$0xff]  }
 0x323   :  { %2611 = vmatpush1.bf16.msra.mxu1 %v6562_v3  ;;  %v7375_v3 = vld [vmem:[#allocation14 + $0xac] ss:$28 sps:$4 sm:$0xff]  }
 0x324   :  { %2693 = vmatpush1.bf16.msra.mxu0 %v6564_v4  ;;  %2612 = vmatprep.subr.bf16.mxu1 %v6571_v7  ;;  %v7378_v4 = vld [vmem:[#allocation14 + $0xb4] ss:$28 sps:$4 sm:$0xff]   ;;  %v7373_v7 = vld [vmem:[#allocation14 + $0xa8] ss:$28 sps:$4 sm:$0xff]  }
 0x325   :  { %2694 = vmatprep.subr.bf16.mxu0 %v6573_v6  ;;  %v7381_v6 = vld [vmem:[#allocation14 + $0xe4] ss:$28 sps:$4 sm:$0xff]  }
 0x327   :  { %2613 = vmatpush1.bf16.msra.mxu1 %v6570_v15  ;;  %v7390_v15 = vld [vmem:[#allocation14 + $0x124] ss:$28 sps:$4 sm:$0xff]  }
 0x328   :  { %2695 = vmatpush1.bf16.msra.mxu0 %v6572_v16  ;;  %2614 = vmatprep.subr.bf16.mxu1 %v6579_v30  ;;  %v7385_v16 = vld [vmem:[#allocation14 + $0x118] ss:$28 sps:$4 sm:$0xff]   ;;  %v7388_v30 = vld [vmem:[#allocation14 + $0x120] ss:$28 sps:$4 sm:$0xff]  }
 0x329   :  { %2696 = vmatprep.subr.bf16.mxu0 %v6581_v17  ;;  %v7393_v17 = vld [vmem:[#allocation14 + $0x154] ss:$28 sps:$4 sm:$0xff]  }
 0x32b   :  { %2615 = vmatpush1.bf16.msra.mxu1 %v6578_v52  ;;  %v7402_v52 = vld [vmem:[#allocation14 + $0x194] ss:$28 sps:$4 sm:$0xff]  }
 0x32c   :  { %2697 = vmatpush1.bf16.msra.mxu0 %v6580_v25  ;;  %2616 = vmatprep.subr.bf16.mxu1 %v6587_v26  ;;  %v7397_v25 = vld [vmem:[#allocation14 + $0x188] ss:$28 sps:$4 sm:$0xff]   ;;  %v7400_v26 = vld [vmem:[#allocation14 + $0x190] ss:$28 sps:$4 sm:$0xff]  }
 0x32d   :  { %2698 = vmatprep.subr.bf16.mxu0 %v6589_v27  ;;  %v7405_v27 = vld [vmem:[#allocation14 + $0x1c4] ss:$28 sps:$4 sm:$0xff]  }
 0x32f   :  { %2617 = vmatpush1.bf16.msra.mxu1 %v6586_v18  ;;  %v7414_v18 = vld [vmem:[#allocation14 + $0x204] ss:$28 sps:$4 sm:$0xff]  }
 0x330   :  { %2699 = vmatpush1.bf16.msra.mxu0 %v6588_v19  ;;  %2618 = vmatprep.subr.bf16.mxu1 %v6595_v20  ;;  %v7409_v19 = vld [vmem:[#allocation14 + $0x1f8] ss:$28 sps:$4 sm:$0xff]   ;;  %v7412_v20 = vld [vmem:[#allocation14 + $0x200] ss:$28 sps:$4 sm:$0xff]  }
 0x331   :  { %2700 = vmatprep.subr.bf16.mxu0 %v6597_v29  ;;  %v7417_v29 = vld [vmem:[#allocation14 + $0x234] ss:$28 sps:$4 sm:$0xff]  }
 0x333   :  { %2619 = vmatpush1.bf16.msra.mxu1 %v6594_v37  ;;  %v7426_v37 = vld [vmem:[#allocation14 + $0x274] ss:$28 sps:$4 sm:$0xff]  }
 0x334   :  { %2701 = vmatpush1.bf16.msra.mxu0 %v6596_v38  ;;  %2620 = vmatprep.subr.bf16.mxu1 %v6603_v39  ;;  %v7421_v38 = vld [vmem:[#allocation14 + $0x268] ss:$28 sps:$4 sm:$0xff]   ;;  %v7424_v39 = vld [vmem:[#allocation14 + $0x270] ss:$28 sps:$4 sm:$0xff]  }
 0x335   :  { %2702 = vmatprep.subr.bf16.mxu0 %v6605_v40  ;;  %v7429_v40 = vld [vmem:[#allocation14 + $0x2a4] ss:$28 sps:$4 sm:$0xff]  }
 0x337   :  { %2621 = vmatpush1.bf16.msra.mxu1 %v6602_v47  ;;  %v7438_v47 = vld [vmem:[#allocation14 + $0x2e4] ss:$28 sps:$4 sm:$0xff]  }
 0x338   :  { %2703 = vmatpush1.bf16.msra.mxu0 %v6604_v48  ;;  %2622 = vmatprep.subr.bf16.mxu1 %v6611_v49  ;;  %v7433_v48 = vld [vmem:[#allocation14 + $0x2d8] ss:$28 sps:$4 sm:$0xff]   ;;  %v7436_v49 = vld [vmem:[#allocation14 + $0x2e0] ss:$28 sps:$4 sm:$0xff]  }
 0x339   :  { %2704 = vmatprep.subr.bf16.mxu0 %v6613_v50  ;;  %v7441_v50 = vld [vmem:[#allocation14 + $0x314] ss:$28 sps:$4 sm:$0xff]  }
 0x33b   :  { %2623 = vmatpush1.bf16.msra.mxu1 %v6610_v53  ;;  %v7444_v53 = vld [vmem:[#allocation14 + $0x31c] ss:$28 sps:$4 sm:$0xff]  }
 0x33c   :  { %2705 = vmatpush1.bf16.msra.mxu0 %v6612_v54  ;;  %5600 = vmatprep.subr.bf16.mxu1 %v7357_v55  ;;  %v7439_v54 = vld [vmem:[#allocation14 + $0x310] ss:$28 sps:$4 sm:$0xff]   ;;  %v7442_v55 = vld [vmem:[#allocation14 + $0x318] ss:$28 sps:$4 sm:$0xff]  }
 0x33d   :  { %5764 = vmatprep.subr.bf16.mxu0 %v7360_v57  ;;  %v7447_v57 = vld [vmem:[#allocation14 + $0x34c] ss:$28 sps:$4 sm:$0xff]  }
 0x33e   :  { %2625 = vmatmul.mubr.bf16.vlgmr.msra.gmra.mrb[4].mxu1 %v8466_v32 }
 0x33f   :  { %2707 = vmatmul.mubr.bf16.vlgmr.msra.gmra.mrb[16].mxu0 %v8466_v32  ;;  %5601 = vmatpush1.bf16.msra.mxu1 %v7355_v58  ;;  %v7376_v32 = vld [vmem:[#allocation14 + $0xb0] ss:$28 sps:$4 sm:$0xff]  }
 0x340   :  { %5765 = vmatpush1.bf16.msra.mxu0 %v7358_v59  ;;  %5602 = vmatprep.subr.bf16.mxu1 %v7363_v5  ;;  %v7450_v58 = vld [vmem:[#allocation14 + $0x354] ss:$28 sps:$4 sm:$0xff]   ;;  %v7445_v59 = vld [vmem:[#allocation14 + $0x348] ss:$28 sps:$4 sm:$0xff]  }
 0x341   :  { %5766 = vmatprep.subr.bf16.mxu0 %v7366_v60  ;;  %v7448_v5 = vld [vmem:[#allocation14 + $0x350] ss:$28 sps:$4 sm:$0xff]   ;;  %v7453_v60 = vld [vmem:[#allocation14 + $0x384] ss:$28 sps:$4 sm:$0xff]  }
 0x343   :  { %5603 = vmatpush1.bf16.msra.mxu1 %v7361_v61  ;;  %v7456_v61 = vld [vmem:[#allocation14 + $0x38c] ss:$28 sps:$4 sm:$0xff]  }
 0x344   :  { %5767 = vmatpush1.bf16.msra.mxu0 %v7364_v62  ;;  %5604 = vmatprep.subr.bf16.mxu1 %v7369_v63  ;;  %v8480_v62 = vld [vmem:[#allocation13] sm:$0xff] }
 0x345   :  { %5768 = vmatprep.subr.bf16.mxu0 %v7372_v0  ;;  %v1070_v63 = vrot.slane %v8480_v62, %v8407_v42  ;;  %v1074_v0 = vrot.slane %v8480_v62, %v8410_v43 }
 0x347   :  { %5605 = vmatpush1.bf16.msra.mxu1 %v7367_v1  ;;  %v1082_v1 = vrot.slane %v8480_v62, %v8458_v56 }
 0x348   :  { %5769 = vmatpush1.bf16.msra.mxu0 %v7370_v2  ;;  %5606 = vmatprep.subr.bf16.mxu1 %v7375_v3 }
 0x349   :  { %5770 = vmatprep.subr.bf16.mxu0 %v7378_v4 }
 0x34b   :  { %5607 = vmatpush1.bf16.msra.mxu1 %v7373_v7 }
 0x34c   :  { %5771 = vmatpush1.bf16.msra.mxu0 %v7376_v32  ;;  %5608 = vmatprep.subr.bf16.mxu1 %v7381_v6 }
 0x34d   :  { %5772 = vmatprep.subr.bf16.mxu0 %v7384_v8 }
 0x34f   :  { %5609 = vmatpush1.bf16.msra.mxu1 %v7379_v9 }
 0x350   :  { %5773 = vmatpush1.bf16.msra.mxu0 %v7382_v10  ;;  %5610 = vmatprep.subr.bf16.mxu1 %v7387_v11 }
 0x351   :  { %5774 = vmatprep.subr.bf16.mxu0 %v7390_v15 }
 0x353   :  { %5611 = vmatpush1.bf16.msra.mxu1 %v7385_v16 }
 0x354   :  { %5775 = vmatpush1.bf16.msra.mxu0 %v7388_v30  ;;  %5612 = vmatprep.subr.bf16.mxu1 %v7393_v17 }
 0x355   :  { %5776 = vmatprep.subr.bf16.mxu0 %v7396_v21 }
 0x357   :  { %5613 = vmatpush1.bf16.msra.mxu1 %v7391_v22 }
 0x358   :  { %5777 = vmatpush1.bf16.msra.mxu0 %v7394_v23  ;;  %5614 = vmatprep.subr.bf16.mxu1 %v7399_v24 }
 0x359   :  { %5778 = vmatprep.subr.bf16.mxu0 %v7402_v52  ;;  %v7451_v52 = vld [vmem:[#allocation14 + $0x380] ss:$28 sps:$4 sm:$0xff]  }
 0x35b   :  { %5615 = vmatpush1.bf16.msra.mxu1 %v7397_v25  ;;  %v7454_v25 = vld [vmem:[#allocation14 + $0x388] ss:$28 sps:$4 sm:$0xff]  }
 0x35c   :  { %5779 = vmatpush1.bf16.msra.mxu0 %v7400_v26  ;;  %5616 = vmatprep.subr.bf16.mxu1 %v7405_v27  ;;  %v7459_v27 = vld [vmem:[#allocation14 + $0x3bc] ss:$28 sps:$4 sm:$0xff]  }
 0x35d   :  { %5780 = vmatprep.subr.bf16.mxu0 %v7408_v28  ;;  %v7462_v28 = vld [vmem:[#allocation14 + $0x3c4] ss:$28 sps:$4 sm:$0xff]  }
 0x35f   :  { %5617 = vmatpush1.bf16.msra.mxu1 %v7403_v12 }
 0x360   :  { %5781 = vmatpush1.bf16.msra.mxu0 %v7406_v13  ;;  %5618 = vmatprep.subr.bf16.mxu1 %v7411_v14  ;;  %v7457_v13 = vld [vmem:[#allocation14 + $0x3b8] ss:$28 sps:$4 sm:$0xff]   ;;  %v7460_v14 = vld [vmem:[#allocation14 + $0x3c0] ss:$28 sps:$4 sm:$0xff]  }
 0x361   :  { %5782 = vmatprep.subr.bf16.mxu0 %v7414_v18  ;;  %v7465_v18 = vld [vmem:[#allocation14 + $0x3f4] ss:$28 sps:$4 sm:$0xff]  }
 0x363   :  { %5619 = vmatpush1.bf16.msra.mxu1 %v7409_v19  ;;  %v7468_v19 = vld [vmem:[#allocation14 + $0x3fc] ss:$28 sps:$4 sm:$0xff]  }
 0x364   :  { %5783 = vmatpush1.bf16.msra.mxu0 %v7412_v20  ;;  %5620 = vmatprep.subr.bf16.mxu1 %v7417_v29  ;;  %v7463_v20 = vld [vmem:[#allocation14 + $0x3f0] ss:$28 sps:$4 sm:$0xff]   ;;  %v7466_v29 = vld [vmem:[#allocation14 + $0x3f8] ss:$28 sps:$4 sm:$0xff]  }
 0x365   :  { %5784 = vmatprep.subr.bf16.mxu0 %v7420_v31  ;;  %v7471_v31 = vld [vmem:[#allocation14 + $0x42c] ss:$28 sps:$4 sm:$0xff]  }
 0x367   :  { %5621 = vmatpush1.bf16.msra.mxu1 %v7415_v33  ;;  %v7474_v33 = vld [vmem:[#allocation14 + $0x434] ss:$28 sps:$4 sm:$0xff]  }
 0x368   :  { %5785 = vmatpush1.bf16.msra.mxu0 %v7418_v34  ;;  %5622 = vmatprep.subr.bf16.mxu1 %v7423_v35  ;;  %v7469_v34 = vld [vmem:[#allocation14 + $0x428] ss:$28 sps:$4 sm:$0xff]   ;;  %v7472_v35 = vld [vmem:[#allocation14 + $0x430] ss:$28 sps:$4 sm:$0xff]  }
 0x369   :  { %5786 = vmatprep.subr.bf16.mxu0 %v7426_v37  ;;  %v7477_v37 = vld [vmem:[#allocation14 + $0x464] ss:$28 sps:$4 sm:$0xff]  }
 0x36b   :  { %5623 = vmatpush1.bf16.msra.mxu1 %v7421_v38  ;;  %v7480_v38 = vld [vmem:[#allocation14 + $0x46c] ss:$28 sps:$4 sm:$0xff]  }
 0x36c   :  { %5787 = vmatpush1.bf16.msra.mxu0 %v7424_v39  ;;  %5624 = vmatprep.subr.bf16.mxu1 %v7429_v40  ;;  %v7475_v39 = vld [vmem:[#allocation14 + $0x460] ss:$28 sps:$4 sm:$0xff]   ;;  %v7478_v40 = vld [vmem:[#allocation14 + $0x468] ss:$28 sps:$4 sm:$0xff]  }
 0x36d   :  { %5788 = vmatprep.subr.bf16.mxu0 %v7432_v41  ;;  %v7483_v41 = vld [vmem:[#allocation14 + $0x49c] ss:$28 sps:$4 sm:$0xff]  }
 0x36f   :  { %5625 = vmatpush1.bf16.msra.mxu1 %v7427_v44  ;;  %v7486_v44 = vld [vmem:[#allocation14 + $0x4a4] ss:$28 sps:$4 sm:$0xff]  }
 0x370   :  { %5789 = vmatpush1.bf16.msra.mxu0 %v7430_v45  ;;  %5626 = vmatprep.subr.bf16.mxu1 %v7435_v46  ;;  %v7481_v45 = vld [vmem:[#allocation14 + $0x498] ss:$28 sps:$4 sm:$0xff]   ;;  %v7484_v46 = vld [vmem:[#allocation14 + $0x4a0] ss:$28 sps:$4 sm:$0xff]  }
 0x371   :  { %5790 = vmatprep.subr.bf16.mxu0 %v7438_v47  ;;  %v7489_v47 = vld [vmem:[#allocation14 + $0x4d4] ss:$28 sps:$4 sm:$0xff]  }
 0x373   :  { %5627 = vmatpush1.bf16.msra.mxu1 %v7433_v48  ;;  %v7492_v48 = vld [vmem:[#allocation14 + $0x4dc] ss:$28 sps:$4 sm:$0xff]  }
 0x374   :  { %5791 = vmatpush1.bf16.msra.mxu0 %v7436_v49  ;;  %5628 = vmatprep.subr.bf16.mxu1 %v7441_v50  ;;  %v7487_v49 = vld [vmem:[#allocation14 + $0x4d0] ss:$28 sps:$4 sm:$0xff]   ;;  %v7490_v50 = vld [vmem:[#allocation14 + $0x4d8] ss:$28 sps:$4 sm:$0xff]  }
 0x375   :  { %5792 = vmatprep.subr.bf16.mxu0 %v7444_v53  ;;  %v7495_v53 = vld [vmem:[#allocation14 + $0x50c] ss:$28 sps:$4 sm:$0xff]  }
 0x377   :  { %5629 = vmatpush1.bf16.msra.mxu1 %v7439_v54  ;;  %v7498_v54 = vld [vmem:[#allocation14 + $0x514] ss:$28 sps:$4 sm:$0xff]  }
 0x378   :  { %5793 = vmatpush1.bf16.msra.mxu0 %v7442_v55  ;;  %5630 = vmatprep.subr.bf16.mxu1 %v7447_v57  ;;  %v7493_v55 = vld [vmem:[#allocation14 + $0x508] ss:$28 sps:$4 sm:$0xff]   ;;  %v7496_v57 = vld [vmem:[#allocation14 + $0x510] ss:$28 sps:$4 sm:$0xff]  }
 0x379   :  { %5794 = vmatprep.subr.bf16.mxu0 %v7450_v58  ;;  %v7501_v58 = vld [vmem:[#allocation14 + $0x544] ss:$28 sps:$4 sm:$0xff]  }
 0x37b   :  { %5631 = vmatpush1.bf16.msra.mxu1 %v7445_v59  ;;  %v7504_v59 = vld [vmem:[#allocation14 + $0x54c] ss:$28 sps:$4 sm:$0xff]  }
 0x37c   :  { %5795 = vmatpush1.bf16.msra.mxu0 %v7448_v5  ;;  %5641 = vmatprep.subr.bf16.mxu1 %v7453_v60  ;;  %v7499_v5 = vld [vmem:[#allocation14 + $0x540] ss:$28 sps:$4 sm:$0xff]   ;;  %v7502_v60 = vld [vmem:[#allocation14 + $0x548] ss:$28 sps:$4 sm:$0xff]  }
 0x37d   :  { %5805 = vmatprep.subr.bf16.mxu0 %v7456_v61  ;;  %v7507_v61 = vld [vmem:[#allocation14 + $0x57c] ss:$28 sps:$4 sm:$0xff]  }
 0x391   :  { %v2462_v2 = vpop.f32.mrb[0].mxu1  ;;  %v8488_v3 = vpop.f32.mrb[12].mxu0 }
 0x392   :  { %v7150_v4 = vadd.f32 %v2462_v2, %v1070_v63  ;;  %v2464_v7 = vpop.f32.mrb[1].mxu1  ;;  %v2546_v32 = vpop.f32.mrb[13].mxu0  ;;  %v7510_v63 = vld [vmem:[#allocation14 + $0x584] ss:$28 sps:$4 sm:$0xff]   ;;  %v7513_v2 = vld [vmem:[#allocation14 + $0x5b4] ss:$28 sps:$4 sm:$0xff]  }
 0x393   :  { %v7151_v6 = vadd.f32 %v2464_v7, %v1074_v0  ;;  %v7153_v8 = vadd.f32 %v2546_v32, %v1082_v1  ;;  %v2466_v9 = vpop.f32.mrb[2].mxu1  ;;  %v2548_v10 = vpop.f32.mrb[14].mxu0  ;;  %v7505_v0 = vld [vmem:[#allocation14 + $0x578] ss:$28 sps:$4 sm:$0xff]   ;;  %v7508_v1 = vld [vmem:[#allocation14 + $0x580] ss:$28 sps:$4 sm:$0xff]  }
 0x394   :  { %vm2715_vm6 = vcmp.ge.f32.partialorder %v7150_v4, 0.0  ;;  %v2723_v11 = vmul.f32 0.2, %v7150_v4  ;;  %v2467_v17 = vpop.f32.mrb[3].mxu1  ;;  %v2549_v21 = vpop.f32.mrb[15].mxu0 }
 0x395   :  { %vm2716_vm7 = vcmp.ge.f32.partialorder %v7151_v6, 0.0  ;;  %v2724_v15 = vmul.f32 0.2, %v7151_v6  ;;  %vm2718_vm8 = vcmp.ge.f32.partialorder %v7153_v8, 0.0  ;;  %v2726_v16 = vmul.f32 0.2, %v7153_v8 }
 0x396   :  { %v2731_v30 = vsel %vm2715_vm6, %v7150_v4, %v2723_v11  ;;  %v7516_v4 = vld [vmem:[#allocation14 + $0x5bc] ss:$28 sps:$4 sm:$0xff]   ;;  %v7511_v7 = vld [vmem:[#allocation14 + $0x5b0] ss:$28 sps:$4 sm:$0xff]   ;;  %v7517_v9 = vld [vmem:[#allocation14 + $0x5e8] ss:$28 sps:$4 sm:$0xff]  }
 0x397   :  { %v2732_v22 = vsel %vm2716_vm7, %v7151_v6, %v2724_v15  ;;  %v2734_v24 = vsel %vm2718_vm8, %v7153_v8, %v2726_v16  ;;  %v8492_v26 = vpack.c.bf16 %v2731_v30, %v2731_v30  ;;  %v7514_v32 = vld [vmem:[#allocation14 + $0x5b8] ss:$28 sps:$4 sm:$0xff]   ;;  %v7519_v6 = vld [vmem:[#allocation14 + $0x5ec] ss:$28 sps:$4 sm:$0xff]   ;;  %v7525_v11 = vld [vmem:[#allocation14 + $0x624] ss:$28 sps:$4 sm:$0xff]  }
 0x398   :  { %v8490_v23 = vpack.c.bf16 %v2732_v22, %v2732_v22  ;;  %v8496_v12 = vpack.c.bf16 %v2734_v24, %v2734_v24  ;;  %v7522_v8 = vld [vmem:[#allocation14 + $0x5f4] ss:$28 sps:$4 sm:$0xff]   ;;  %v7528_v15 = vld [vmem:[#allocation14 + $0x62c] ss:$28 sps:$4 sm:$0xff]   ;;  %v7523_v16 = vld [vmem:[#allocation14 + $0x620] ss:$28 sps:$4 sm:$0xff]   ;;  %v1078_v22 = vrot.slane %v8480_v62, %v8455_v51 }
 0x399   :  { %v7520_v10 = vld [vmem:[#allocation14 + $0x5f0] ss:$28 sps:$4 sm:$0xff]   ;;  %v7526_v30 = vld [vmem:[#allocation14 + $0x628] ss:$28 sps:$4 sm:$0xff]   ;;  %v7531_v17 = vld [vmem:[#allocation14 + $0x65c] ss:$28 sps:$4 sm:$0xff]  }
 0x39a   :  { %5632 = vmatprep.mubr.bf16.mxu1 %v8490_v23  ;;  %5796 = vmatprep.mubr.bf16.mxu0 %v8490_v23  ;;  %v7534_v21 = vld [vmem:[#allocation14 + $0x664] ss:$28 sps:$4 sm:$0xff]   ;;  %v7529_v24 = vld [vmem:[#allocation14 + $0x658] ss:$28 sps:$4 sm:$0xff]  }
 0x39b   :  { %5633 = vmatmul.mubr.bf16.vlgmr.msra.gmra.mrb[8].mxu1 %v8492_v26  ;;  %5797 = vmatmul.mubr.bf16.vlgmr.msra.gmra.mrb[20].mxu0 %v8492_v26 }
 0x39c   :  { %5642 = vmatpush1.bf16.msra.mxu1 %v7451_v52  ;;  %5806 = vmatpush1.bf16.msra.mxu0 %v7454_v25  ;;  %v7532_v52 = vld [vmem:[#allocation14 + $0x660] ss:$28 sps:$4 sm:$0xff]   ;;  %v7537_v25 = vld [vmem:[#allocation14 + $0x694] ss:$28 sps:$4 sm:$0xff]  }
 0x39d   :  { %5673 = vmatprep.mubr.bf16.mxu1 %v8496_v12  ;;  %5837 = vmatprep.mubr.bf16.mxu0 %v8496_v12 }
 0x39e   :  { %5643 = vmatprep.subr.bf16.mxu1 %v7459_v27  ;;  %5807 = vmatprep.subr.bf16.mxu0 %v7462_v28  ;;  %v7540_v27 = vld [vmem:[#allocation14 + $0x69c] ss:$28 sps:$4 sm:$0xff]   ;;  %v7152_v28 = vadd.f32 %v8488_v3, %v1078_v22  ;;  %v7609_v22 = vld [vmem:[#allocation14 + $0x934] ss:$28 sps:$4 sm:$0xff]  }
 0x39f   :  { %v7547_v3 = vld [vmem:[#allocation14 + $0x700] ss:$28 sps:$4 sm:$0xff]  }
 0x3a0   :  { %5644 = vmatpush1.bf16.msra.mxu1 %v7457_v13  ;;  %5808 = vmatpush1.bf16.msra.mxu0 %v7460_v14  ;;  %v7535_v13 = vld [vmem:[#allocation14 + $0x690] ss:$28 sps:$4 sm:$0xff]   ;;  %v7538_v14 = vld [vmem:[#allocation14 + $0x698] ss:$28 sps:$4 sm:$0xff]   ;;  %vm2717_vm9 = vcmp.ge.f32.partialorder %v7152_v28, 0.0 }
 0x3a1   :  { %5645 = vmatprep.subr.bf16.mxu1 %v7465_v18  ;;  %5809 = vmatprep.subr.bf16.mxu0 %v7468_v19  ;;  %v7543_v18 = vld [vmem:[#allocation14 + $0x6cc] ss:$28 sps:$4 sm:$0xff]   ;;  %v7546_v19 = vld [vmem:[#allocation14 + $0x6d4] ss:$28 sps:$4 sm:$0xff]  }
 0x3a4   :  { %5646 = vmatpush1.bf16.msra.mxu1 %v7463_v20  ;;  %5810 = vmatpush1.bf16.msra.mxu0 %v7466_v29  ;;  %v2725_v20 = vmul.f32 0.2, %v7152_v28  ;;  %v7541_v29 = vld [vmem:[#allocation14 + $0x6c8] ss:$28 sps:$4 sm:$0xff]  }
 0x3a5   :  { %5647 = vmatprep.subr.bf16.mxu1 %v7471_v31  ;;  %5811 = vmatprep.subr.bf16.mxu0 %v7474_v33  ;;  %v7544_v31 = vld [vmem:[#allocation14 + $0x6d0] ss:$28 sps:$4 sm:$0xff]   ;;  %v7549_v33 = vld [vmem:[#allocation14 + $0x704] ss:$28 sps:$4 sm:$0xff]  }
 0x3a8   :  { %5648 = vmatpush1.bf16.msra.mxu1 %v7469_v34  ;;  %5812 = vmatpush1.bf16.msra.mxu0 %v7472_v35  ;;  %v7552_v34 = vld [vmem:[#allocation14 + $0x70c] ss:$28 sps:$4 sm:$0xff]   ;;  %v2733_v35 = vsel %vm2717_vm9, %v7152_v28, %v2725_v20  ;;  %v7618_v28 = vld [vmem:[#allocation14 + $0x974] ss:$28 sps:$4 sm:$0xff]   ;;  %v7619_v20 = vld [vmem:[#allocation14 + $0x9a0] ss:$28 sps:$4 sm:$0xff]  }
 0x3a9   :  { %5649 = vmatprep.subr.bf16.mxu1 %v7477_v37  ;;  %5813 = vmatprep.subr.bf16.mxu0 %v7480_v38  ;;  %v7550_v37 = vld [vmem:[#allocation14 + $0x708] ss:$28 sps:$4 sm:$0xff]   ;;  %v8505_v38 = vpack.c.bf16 %v2733_v35, %v2733_v35  ;;  %v1089_v35 = vsub.s32 5, %v8404_v36 }
 0x3ac   :  { %5650 = vmatpush1.bf16.msra.mxu1 %v7475_v39  ;;  %5814 = vmatpush1.bf16.msra.mxu0 %v7478_v40  ;;  %v7555_v39 = vld [vmem:[#allocation14 + $0x73c] ss:$28 sps:$4 sm:$0xff]   ;;  %v7558_v40 = vld [vmem:[#allocation14 + $0x744] ss:$28 sps:$4 sm:$0xff]  }
 0x3ad   :  { %5651 = vmatprep.subr.bf16.mxu1 %v7483_v41  ;;  %5815 = vmatprep.subr.bf16.mxu0 %v7486_v44  ;;  %v7553_v41 = vld [vmem:[#allocation14 + $0x738] ss:$28 sps:$4 sm:$0xff]   ;;  %v7556_v44 = vld [vmem:[#allocation14 + $0x740] ss:$28 sps:$4 sm:$0xff]  }
 0x3b0   :  { %5652 = vmatpush1.bf16.msra.mxu1 %v7481_v45  ;;  %5816 = vmatpush1.bf16.msra.mxu0 %v7484_v46  ;;  %v7561_v45 = vld [vmem:[#allocation14 + $0x774] ss:$28 sps:$4 sm:$0xff]   ;;  %v7564_v46 = vld [vmem:[#allocation14 + $0x77c] ss:$28 sps:$4 sm:$0xff]  }
 0x3b1   :  { %5653 = vmatprep.subr.bf16.mxu1 %v7489_v47  ;;  %5817 = vmatprep.subr.bf16.mxu0 %v7492_v48  ;;  %v7559_v47 = vld [vmem:[#allocation14 + $0x770] ss:$28 sps:$4 sm:$0xff]   ;;  %v7562_v48 = vld [vmem:[#allocation14 + $0x778] ss:$28 sps:$4 sm:$0xff]  }
 0x3b4   :  { %5654 = vmatpush1.bf16.msra.mxu1 %v7487_v49  ;;  %5818 = vmatpush1.bf16.msra.mxu0 %v7490_v50  ;;  %v7567_v49 = vld [vmem:[#allocation14 + $0x7ac] ss:$28 sps:$4 sm:$0xff]   ;;  %v7570_v50 = vld [vmem:[#allocation14 + $0x7b4] ss:$28 sps:$4 sm:$0xff]  }
 0x3b5   :  { %5655 = vmatprep.subr.bf16.mxu1 %v7495_v53  ;;  %5819 = vmatprep.subr.bf16.mxu0 %v7498_v54  ;;  %v7565_v53 = vld [vmem:[#allocation14 + $0x7a8] ss:$28 sps:$4 sm:$0xff]   ;;  %v7568_v54 = vld [vmem:[#allocation14 + $0x7b0] ss:$28 sps:$4 sm:$0xff]  }
 0x3b8   :  { %5656 = vmatpush1.bf16.msra.mxu1 %v7493_v55  ;;  %5820 = vmatpush1.bf16.msra.mxu0 %v7496_v57  ;;  %v7573_v55 = vld [vmem:[#allocation14 + $0x7e4] ss:$28 sps:$4 sm:$0xff]   ;;  %v7576_v57 = vld [vmem:[#allocation14 + $0x7ec] ss:$28 sps:$4 sm:$0xff]  }
 0x3b9   :  { %5657 = vmatprep.subr.bf16.mxu1 %v7501_v58  ;;  %5821 = vmatprep.subr.bf16.mxu0 %v7504_v59  ;;  %v7571_v58 = vld [vmem:[#allocation14 + $0x7e0] ss:$28 sps:$4 sm:$0xff]   ;;  %v7574_v59 = vld [vmem:[#allocation14 + $0x7e8] ss:$28 sps:$4 sm:$0xff]  }
 0x3bc   :  { %5658 = vmatpush1.bf16.msra.mxu1 %v7499_v5  ;;  %5822 = vmatpush1.bf16.msra.mxu0 %v7502_v60  ;;  %v7579_v5 = vld [vmem:[#allocation14 + $0x81c] ss:$28 sps:$4 sm:$0xff]   ;;  %v7582_v60 = vld [vmem:[#allocation14 + $0x824] ss:$28 sps:$4 sm:$0xff]  }
 0x3bd   :  { %5659 = vmatprep.subr.bf16.mxu1 %v7507_v61  ;;  %5823 = vmatprep.subr.bf16.mxu0 %v7510_v63  ;;  %v7577_v61 = vld [vmem:[#allocation14 + $0x818] ss:$28 sps:$4 sm:$0xff]   ;;  %v7580_v63 = vld [vmem:[#allocation14 + $0x820] ss:$28 sps:$4 sm:$0xff]  }
 0x3c0   :  { %5660 = vmatpush1.bf16.msra.mxu1 %v7505_v0  ;;  %5824 = vmatpush1.bf16.msra.mxu0 %v7508_v1  ;;  %v7585_v0 = vld [vmem:[#allocation14 + $0x854] ss:$28 sps:$4 sm:$0xff]   ;;  %v7588_v1 = vld [vmem:[#allocation14 + $0x85c] ss:$28 sps:$4 sm:$0xff]  }
 0x3c1   :  { %5661 = vmatprep.subr.bf16.mxu1 %v7513_v2  ;;  %5825 = vmatprep.subr.bf16.mxu0 %v7516_v4  ;;  %v7583_v2 = vld [vmem:[#allocation14 + $0x850] ss:$28 sps:$4 sm:$0xff]   ;;  %v7586_v4 = vld [vmem:[#allocation14 + $0x858] ss:$28 sps:$4 sm:$0xff]  }
 0x3c4   :  { %5662 = vmatpush1.bf16.msra.mxu1 %v7511_v7  ;;  %5826 = vmatpush1.bf16.msra.mxu0 %v7514_v32  ;;  %v7591_v7 = vld [vmem:[#allocation14 + $0x88c] ss:$28 sps:$4 sm:$0xff]   ;;  %v7594_v32 = vld [vmem:[#allocation14 + $0x894] ss:$28 sps:$4 sm:$0xff]  }
 0x3c5   :  { %5663 = vmatprep.subr.bf16.mxu1 %v7519_v6  ;;  %5827 = vmatprep.subr.bf16.mxu0 %v7522_v8  ;;  %v7589_v6 = vld [vmem:[#allocation14 + $0x888] ss:$28 sps:$4 sm:$0xff]   ;;  %v7592_v8 = vld [vmem:[#allocation14 + $0x890] ss:$28 sps:$4 sm:$0xff]  }
 0x3c8   :  { %5664 = vmatpush1.bf16.msra.mxu1 %v7517_v9  ;;  %5828 = vmatpush1.bf16.msra.mxu0 %v7520_v10  ;;  %v7597_v9 = vld [vmem:[#allocation14 + $0x8c4] ss:$28 sps:$4 sm:$0xff]   ;;  %v7600_v10 = vld [vmem:[#allocation14 + $0x8cc] ss:$28 sps:$4 sm:$0xff]  }
 0x3c9   :  { %5665 = vmatprep.subr.bf16.mxu1 %v7525_v11  ;;  %5829 = vmatprep.subr.bf16.mxu0 %v7528_v15  ;;  %v7595_v11 = vld [vmem:[#allocation14 + $0x8c0] ss:$28 sps:$4 sm:$0xff]   ;;  %v7598_v15 = vld [vmem:[#allocation14 + $0x8c8] ss:$28 sps:$4 sm:$0xff]  }
 0x3cc   :  { %5666 = vmatpush1.bf16.msra.mxu1 %v7523_v16  ;;  %5830 = vmatpush1.bf16.msra.mxu0 %v7526_v30  ;;  %v7603_v16 = vld [vmem:[#allocation14 + $0x8fc] ss:$28 sps:$4 sm:$0xff]   ;;  %v7606_v30 = vld [vmem:[#allocation14 + $0x904] ss:$28 sps:$4 sm:$0xff]  }
 0x3cd   :  { %5667 = vmatprep.subr.bf16.mxu1 %v7531_v17  ;;  %5831 = vmatprep.subr.bf16.mxu0 %v7534_v21  ;;  %v7601_v17 = vld [vmem:[#allocation14 + $0x8f8] ss:$28 sps:$4 sm:$0xff]   ;;  %v7604_v21 = vld [vmem:[#allocation14 + $0x900] ss:$28 sps:$4 sm:$0xff]  }
 0x3d0   :  { %5668 = vmatpush1.bf16.msra.mxu1 %v7529_v24  ;;  %5832 = vmatpush1.bf16.msra.mxu0 %v7532_v52  ;;  %v7612_v24 = vld [vmem:[#allocation14 + $0x93c] ss:$28 sps:$4 sm:$0xff]   ;;  %v7607_v52 = vld [vmem:[#allocation14 + $0x930] ss:$28 sps:$4 sm:$0xff]  }
 0x3d1   :  { %5669 = vmatprep.subr.bf16.mxu1 %v7537_v25  ;;  %5833 = vmatprep.subr.bf16.mxu0 %v7540_v27  ;;  %v7610_v25 = vld [vmem:[#allocation14 + $0x938] ss:$28 sps:$4 sm:$0xff]   ;;  %v7615_v27 = vld [vmem:[#allocation14 + $0x96c] ss:$28 sps:$4 sm:$0xff]  }
 0x3d4   :  { %5670 = vmatpush1.bf16.msra.mxu1 %v7535_v13  ;;  %5834 = vmatpush1.bf16.msra.mxu0 %v7538_v14  ;;  %v7613_v13 = vld [vmem:[#allocation14 + $0x968] ss:$28 sps:$4 sm:$0xff]   ;;  %v7616_v14 = vld [vmem:[#allocation14 + $0x970] ss:$28 sps:$4 sm:$0xff]  }
 0x3d5   :  { %5671 = vmatprep.subr.bf16.mxu1 %v7543_v18  ;;  %5835 = vmatprep.subr.bf16.mxu0 %v7546_v19  ;;  %v7621_v18 = vld [vmem:[#allocation14 + $0x9a4] ss:$28 sps:$4 sm:$0xff]   ;;  %v7624_v19 = vld [vmem:[#allocation14 + $0x9ac] ss:$28 sps:$4 sm:$0xff]  }
 0x3d8   :  { %5672 = vmatpush1.bf16.msra.mxu1 %v7541_v29  ;;  %5836 = vmatpush1.bf16.msra.mxu0 %v7544_v31  ;;  %v7622_v29 = vld [vmem:[#allocation14 + $0x9a8] ss:$28 sps:$4 sm:$0xff]   ;;  %v7627_v31 = vld [vmem:[#allocation14 + $0x9dc] ss:$28 sps:$4 sm:$0xff]  }
 0x3d9   :  { %5682 = vmatprep.subr.bf16.mxu1 %v7549_v33  ;;  %5846 = vmatprep.subr.bf16.mxu0 %v7552_v34  ;;  %v7630_v33 = vld [vmem:[#allocation14 + $0x9e4] ss:$28 sps:$4 sm:$0xff]   ;;  %v1085_v34 = vsub.s32 4, %v8404_v36 }
 0x3db   :  { %5674 = vmatmul.mubr.bf16.vlgmr.msra.gmra.mrb[8].mxu1 %v8505_v38  ;;  %5838 = vmatmul.mubr.bf16.vlgmr.msra.gmra.mrb[20].mxu0 %v8505_v38 }
 0x3dc   :  { %5683 = vmatpush1.bf16.msra.mxu1 %v7547_v3  ;;  %5847 = vmatpush1.bf16.msra.mxu0 %v7550_v37  ;;  %v7625_v3 = vld [vmem:[#allocation14 + $0x9d8] ss:$28 sps:$4 sm:$0xff]   ;;  %v7628_v37 = vld [vmem:[#allocation14 + $0x9e0] ss:$28 sps:$4 sm:$0xff]  }
 0x3dd   :  { %5684 = vmatprep.subr.bf16.mxu1 %v7555_v39  ;;  %5848 = vmatprep.subr.bf16.mxu0 %v7558_v40  ;;  %v1097_v39 = vsub.s32 7, %v8404_v36  ;;  %v7633_v40 = vld [vmem:[#allocation14 + $0xa14] ss:$28 sps:$4 sm:$0xff]  }
 0x3e0   :  { %5685 = vmatpush1.bf16.msra.mxu1 %v7553_v41  ;;  %5849 = vmatpush1.bf16.msra.mxu0 %v7556_v44  ;;  %v7636_v41 = vld [vmem:[#allocation14 + $0xa1c] ss:$28 sps:$4 sm:$0xff]   ;;  %v1086_v44 = vrot.slane %v8480_v62, %v1085_v34 }
 0x3e1   :  { %5686 = vmatprep.subr.bf16.mxu1 %v7561_v45  ;;  %5850 = vmatprep.subr.bf16.mxu0 %v7564_v46  ;;  %v1090_v45 = vrot.slane %v8480_v62, %v1089_v35  ;;  %v1098_v46 = vrot.slane %v8480_v62, %v1097_v39  ;;  %v7675_v39 = vld [vmem:[#allocation14 + $0xb9c] ss:$28 sps:$4 sm:$0xff]  }
 0x3e4   :  { %5687 = vmatpush1.bf16.msra.mxu1 %v7559_v47  ;;  %5851 = vmatpush1.bf16.msra.mxu0 %v7562_v48  ;;  %v7631_v47 = vld [vmem:[#allocation14 + $0xa10] ss:$28 sps:$4 sm:$0xff]   ;;  %v7634_v48 = vld [vmem:[#allocation14 + $0xa18] ss:$28 sps:$4 sm:$0xff]  }
 0x3e5   :  { %5688 = vmatprep.subr.bf16.mxu1 %v7567_v49  ;;  %5852 = vmatprep.subr.bf16.mxu0 %v7570_v50  ;;  %v7639_v50 = vld [vmem:[#allocation14 + $0xa4c] ss:$28 sps:$4 sm:$0xff]  }
 0x3e8   :  { %5689 = vmatpush1.bf16.msra.mxu1 %v7565_v53  ;;  %5853 = vmatpush1.bf16.msra.mxu0 %v7568_v54  ;;  %v7642_v53 = vld [vmem:[#allocation14 + $0xa54] ss:$28 sps:$4 sm:$0xff]  }
 0x3e9   :  { %5690 = vmatprep.subr.bf16.mxu1 %v7573_v55  ;;  %5854 = vmatprep.subr.bf16.mxu0 %v7576_v57 }
 0x3ec   :  { %5691 = vmatpush1.bf16.msra.mxu1 %v7571_v58  ;;  %5855 = vmatpush1.bf16.msra.mxu0 %v7574_v59  ;;  %v7637_v58 = vld [vmem:[#allocation14 + $0xa48] ss:$28 sps:$4 sm:$0xff]  }
 0x3ed   :  { %5692 = vmatprep.subr.bf16.mxu1 %v7579_v5  ;;  %5856 = vmatprep.subr.bf16.mxu0 %v7582_v60 }
 0x3f0   :  { %5693 = vmatpush1.bf16.msra.mxu1 %v7577_v61  ;;  %5857 = vmatpush1.bf16.msra.mxu0 %v7580_v63  ;;  %v7640_v61 = vld [vmem:[#allocation14 + $0xa50] ss:$28 sps:$4 sm:$0xff]   ;;  %v7645_v63 = vld [vmem:[#allocation14 + $0xa84] ss:$28 sps:$4 sm:$0xff]  }
 0x3f1   :  { %5694 = vmatprep.subr.bf16.mxu1 %v7585_v0  ;;  %5858 = vmatprep.subr.bf16.mxu0 %v7588_v1 }
 0x3f4   :  { %5695 = vmatpush1.bf16.msra.mxu1 %v7583_v2  ;;  %5859 = vmatpush1.bf16.msra.mxu0 %v7586_v4 }
 0x3f5   :  { %5696 = vmatprep.subr.bf16.mxu1 %v7591_v7  ;;  %5860 = vmatprep.subr.bf16.mxu0 %v7594_v32  ;;  %v7648_v32 = vld [vmem:[#allocation14 + $0xa8c] ss:$28 sps:$4 sm:$0xff]  }
 0x3f8   :  { %5697 = vmatpush1.bf16.msra.mxu1 %v7589_v6  ;;  %5861 = vmatpush1.bf16.msra.mxu0 %v7592_v8 }
 0x3f9   :  { %5698 = vmatprep.subr.bf16.mxu1 %v7597_v9  ;;  %5862 = vmatprep.subr.bf16.mxu0 %v7600_v10 }
 0x3fc   :  { %5699 = vmatpush1.bf16.msra.mxu1 %v7595_v11  ;;  %5863 = vmatpush1.bf16.msra.mxu0 %v7598_v15 }
 0x3fd   :  { %5700 = vmatprep.subr.bf16.mxu1 %v7603_v16  ;;  %5864 = vmatprep.subr.bf16.mxu0 %v7606_v30  ;;  %v7643_v16 = vld [vmem:[#allocation14 + $0xa80] ss:$28 sps:$4 sm:$0xff]   ;;  %v7646_v30 = vld [vmem:[#allocation14 + $0xa88] ss:$28 sps:$4 sm:$0xff]  }
 0x400   :  { %5701 = vmatpush1.bf16.msra.mxu1 %v7601_v17  ;;  %5865 = vmatpush1.bf16.msra.mxu0 %v7604_v21  ;;  %v7651_v21 = vld [vmem:[#allocation14 + $0xabc] ss:$28 sps:$4 sm:$0xff]  }
 0x401   :  { %5702 = vmatprep.subr.bf16.mxu1 %v7609_v22  ;;  %5866 = vmatprep.subr.bf16.mxu0 %v7612_v24  ;;  %v7654_v22 = vld [vmem:[#allocation14 + $0xac4] ss:$28 sps:$4 sm:$0xff]  }
 0x404   :  { %5703 = vmatpush1.bf16.msra.mxu1 %v7607_v52  ;;  %5867 = vmatpush1.bf16.msra.mxu0 %v7610_v25  ;;  %v7649_v52 = vld [vmem:[#allocation14 + $0xab8] ss:$28 sps:$4 sm:$0xff]   ;;  %v7652_v25 = vld [vmem:[#allocation14 + $0xac0] ss:$28 sps:$4 sm:$0xff]  }
 0x405   :  { %5704 = vmatprep.subr.bf16.mxu1 %v7615_v27  ;;  %5868 = vmatprep.subr.bf16.mxu0 %v7618_v28  ;;  %v7657_v27 = vld [vmem:[#allocation14 + $0xaf4] ss:$28 sps:$4 sm:$0xff]   ;;  %v7660_v28 = vld [vmem:[#allocation14 + $0xafc] ss:$28 sps:$4 sm:$0xff]  }
 0x408   :  { %5705 = vmatpush1.bf16.msra.mxu1 %v7613_v13  ;;  %5869 = vmatpush1.bf16.msra.mxu0 %v7616_v14  ;;  %v7655_v13 = vld [vmem:[#allocation14 + $0xaf0] ss:$28 sps:$4 sm:$0xff]   ;;  %v7658_v14 = vld [vmem:[#allocation14 + $0xaf8] ss:$28 sps:$4 sm:$0xff]  }
 0x409   :  { %5706 = vmatprep.subr.bf16.mxu1 %v7621_v18  ;;  %5870 = vmatprep.subr.bf16.mxu0 %v7624_v19  ;;  %v7663_v18 = vld [vmem:[#allocation14 + $0xb2c] ss:$28 sps:$4 sm:$0xff]   ;;  %v7666_v19 = vld [vmem:[#allocation14 + $0xb34] ss:$28 sps:$4 sm:$0xff]  }
 0x40c   :  { %5707 = vmatpush1.bf16.msra.mxu1 %v7619_v20  ;;  %5871 = vmatpush1.bf16.msra.mxu0 %v7622_v29  ;;  %v7661_v20 = vld [vmem:[#allocation14 + $0xb28] ss:$28 sps:$4 sm:$0xff]   ;;  %v7664_v29 = vld [vmem:[#allocation14 + $0xb30] ss:$28 sps:$4 sm:$0xff]  }
 0x40d   :  { %5708 = vmatprep.subr.bf16.mxu1 %v7627_v31  ;;  %5872 = vmatprep.subr.bf16.mxu0 %v7630_v33  ;;  %v7669_v31 = vld [vmem:[#allocation14 + $0xb64] ss:$28 sps:$4 sm:$0xff]   ;;  %v7672_v33 = vld [vmem:[#allocation14 + $0xb6c] ss:$28 sps:$4 sm:$0xff]  }
 0x410   :  { %5709 = vmatpush1.bf16.msra.mxu1 %v7625_v3  ;;  %5873 = vmatpush1.bf16.msra.mxu0 %v7628_v37  ;;  %v7667_v3 = vld [vmem:[#allocation14 + $0xb60] ss:$28 sps:$4 sm:$0xff]   ;;  %v7670_v37 = vld [vmem:[#allocation14 + $0xb68] ss:$28 sps:$4 sm:$0xff]  }
 0x411   :  { %v2626_v49 = vpop.f32.mrb[4].mxu1  ;;  %5710 = vmatprep.subr.bf16.mxu1 %v7633_v40  ;;  %5874 = vmatprep.subr.bf16.mxu0 %v7636_v41  ;;  %v7678_v40 = vld [vmem:[#allocation14 + $0xba4] ss:$28 sps:$4 sm:$0xff]   ;;  %v7673_v41 = vld [vmem:[#allocation14 + $0xb98] ss:$28 sps:$4 sm:$0xff]  }
 0x412   :  { %v7154_v54 = vadd.f32 %v2626_v49, %v1086_v44  ;;  %v8519_v55 = vpop.f32.mrb[16].mxu0  ;;  %v2628_v57 = vpop.f32.mrb[5].mxu1  ;;  %v7676_v44 = vld [vmem:[#allocation14 + $0xba0] ss:$28 sps:$4 sm:$0xff]   ;;  %v7687_v49 = vld [vmem:[#allocation14 + $0xc0c] ss:$28 sps:$4 sm:$0xff]  }
 0x413   :  { %v7155_v59 = vadd.f32 %v2628_v57, %v1090_v45  ;;  %v2710_v5 = vpop.f32.mrb[17].mxu0  ;;  %v2630_v60 = vpop.f32.mrb[6].mxu1  ;;  %v7681_v45 = vld [vmem:[#allocation14 + $0xbd4] ss:$28 sps:$4 sm:$0xff]   ;;  %v7693_v57 = vld [vmem:[#allocation14 + $0xc44] ss:$28 sps:$4 sm:$0xff]  }
 0x414   :  { %vm2719_vm10 = vcmp.ge.f32.partialorder %v7154_v54, 0.0  ;;  %v2727_v0 = vmul.f32 0.2, %v7154_v54  ;;  %v7157_v1 = vadd.f32 %v2710_v5, %v1098_v46  ;;  %v2712_v2 = vpop.f32.mrb[18].mxu0  ;;  %5711 = vmatpush1.bf16.msra.mxu1 %v7631_v47  ;;  %5875 = vmatpush1.bf16.msra.mxu0 %v7634_v48  ;;  %v2631_v4 = vpop.f32.mrb[7].mxu1 }
 0x415   :  { %vm2720_vm11 = vcmp.ge.f32.partialorder %v7155_v59, 0.0  ;;  %v2728_v7 = vmul.f32 0.2, %v7155_v59  ;;  %5712 = vmatprep.subr.bf16.mxu1 %v7639_v50  ;;  %5876 = vmatprep.subr.bf16.mxu0 %v7642_v53  ;;  %v2713_v9 = vpop.f32.mrb[19].mxu0  ;;  %v7684_v46 = vld [vmem:[#allocation14 + $0xbdc] ss:$28 sps:$4 sm:$0xff]  }
 0x416   :  { %v2735_v6 = vsel %vm2719_vm10, %v7154_v54, %v2727_v0  ;;  %vm2722_vm12 = vcmp.ge.f32.partialorder %v7157_v1, 0.0  ;;  %v2730_v8 = vmul.f32 0.2, %v7157_v1  ;;  %v7679_v47 = vld [vmem:[#allocation14 + $0xbd0] ss:$28 sps:$4 sm:$0xff]  }
 0x417   :  { %v2736_v10 = vsel %vm2720_vm11, %v7155_v59, %v2728_v7  ;;  %v8523_v17 = vpack.c.bf16 %v2735_v6, %v2735_v6  ;;  %v7682_v48 = vld [vmem:[#allocation14 + $0xbd8] ss:$28 sps:$4 sm:$0xff]   ;;  %v7685_v53 = vld [vmem:[#allocation14 + $0xc08] ss:$28 sps:$4 sm:$0xff]   ;;  %v7688_v54 = vld [vmem:[#allocation14 + $0xc10] ss:$28 sps:$4 sm:$0xff]  }
 0x418   :  { %v8521_v11 = vpack.c.bf16 %v2736_v10, %v2736_v10  ;;  %v2738_v15 = vsel %vm2722_vm12, %v7157_v1, %v2730_v8  ;;  %5713 = vmatpush1.bf16.msra.mxu1 %v7637_v58  ;;  %5877 = vmatpush1.bf16.msra.mxu0 %v7640_v61  ;;  %v7690_v50 = vld [vmem:[#allocation14 + $0xc14] ss:$28 sps:$4 sm:$0xff]   ;;  %v7696_v58 = vld [vmem:[#allocation14 + $0xc4c] ss:$28 sps:$4 sm:$0xff]   ;;  %v7691_v59 = vld [vmem:[#allocation14 + $0xc40] ss:$28 sps:$4 sm:$0xff]  }
 0x419   :  { %5723 = vmatprep.subr.bf16.mxu1 %v7645_v63  ;;  %5887 = vmatprep.subr.bf16.mxu0 %v7648_v32  ;;  %v8527_v24 = vpack.c.bf16 %v2738_v15, %v2738_v15  ;;  %v7694_v5 = vld [vmem:[#allocation14 + $0xc48] ss:$28 sps:$4 sm:$0xff]   ;;  %v7699_v60 = vld [vmem:[#allocation14 + $0xc7c] ss:$28 sps:$4 sm:$0xff]   ;;  %v7705_v1 = vld [vmem:[#allocation14 + $0xcb4] ss:$28 sps:$4 sm:$0xff]  }
 0x41a   :  { %5714 = vmatprep.mubr.bf16.mxu1 %v8521_v11  ;;  %5878 = vmatprep.mubr.bf16.mxu0 %v8521_v11  ;;  %v7702_v61 = vld [vmem:[#allocation14 + $0xc84] ss:$28 sps:$4 sm:$0xff]   ;;  %v7697_v63 = vld [vmem:[#allocation14 + $0xc78] ss:$28 sps:$4 sm:$0xff]   ;;  %v7703_v4 = vld [vmem:[#allocation14 + $0xcb0] ss:$28 sps:$4 sm:$0xff]  }
 0x41b   :  { %5715 = vmatmul.mubr.bf16.vlgmr.msra.gmra.mrb[8].mxu1 %v8523_v17  ;;  %5879 = vmatmul.mubr.bf16.vlgmr.msra.gmra.mrb[20].mxu0 %v8523_v17  ;;  %v7700_v0 = vld [vmem:[#allocation14 + $0xc80] ss:$28 sps:$4 sm:$0xff]   ;;  %v7706_v7 = vld [vmem:[#allocation14 + $0xcb8] ss:$28 sps:$4 sm:$0xff]   ;;  %v7711_v32 = vld [vmem:[#allocation14 + $0xcec] ss:$28 sps:$4 sm:$0xff]  }
 0x41c   :  { %5724 = vmatpush1.bf16.msra.mxu1 %v7643_v16  ;;  %5888 = vmatpush1.bf16.msra.mxu0 %v7646_v30  ;;  %v7708_v2 = vld [vmem:[#allocation14 + $0xcbc] ss:$28 sps:$4 sm:$0xff]   ;;  %v7714_v6 = vld [vmem:[#allocation14 + $0xcf4] ss:$28 sps:$4 sm:$0xff]   ;;  %v7709_v8 = vld [vmem:[#allocation14 + $0xce8] ss:$28 sps:$4 sm:$0xff]  }
 0x41d   :  { %5755 = vmatprep.mubr.bf16.mxu1 %v8527_v24  ;;  %5919 = vmatprep.mubr.bf16.mxu0 %v8527_v24  ;;  %v7712_v9 = vld [vmem:[#allocation14 + $0xcf0] ss:$28 sps:$4 sm:$0xff]   ;;  %v7717_v10 = vld [vmem:[#allocation14 + $0xd24] ss:$28 sps:$4 sm:$0xff]   ;;  %v1093_v16 = vsub.s32 6, %v8404_v36 }
 0x41e   :  { %5725 = vmatprep.subr.bf16.mxu1 %v7651_v21  ;;  %5889 = vmatprep.subr.bf16.mxu0 %v7654_v22  ;;  %v7720_v15 = vld [vmem:[#allocation14 + $0xd2c] ss:$28 sps:$4 sm:$0xff]   ;;  %v7715_v30 = vld [vmem:[#allocation14 + $0xd20] ss:$28 sps:$4 sm:$0xff]  }
 0x41f   :  { %v7718_v21 = vld [vmem:[#allocation14 + $0xd28] ss:$28 sps:$4 sm:$0xff]   ;;  %v7723_v22 = vld [vmem:[#allocation14 + $0xd5c] ss:$28 sps:$4 sm:$0xff]  }
 0x420   :  { %5726 = vmatpush1.bf16.msra.mxu1 %v7649_v52  ;;  %5890 = vmatpush1.bf16.msra.mxu0 %v7652_v25  ;;  %v7726_v52 = vld [vmem:[#allocation14 + $0xd64] ss:$28 sps:$4 sm:$0xff]   ;;  %v1094_v25 = vrot.slane %v8480_v62, %v1093_v16 }
 0x421   :  { %5727 = vmatprep.subr.bf16.mxu1 %v7657_v27  ;;  %5891 = vmatprep.subr.bf16.mxu0 %v7660_v28  ;;  %v7721_v27 = vld [vmem:[#allocation14 + $0xd58] ss:$28 sps:$4 sm:$0xff]   ;;  %v7724_v28 = vld [vmem:[#allocation14 + $0xd60] ss:$28 sps:$4 sm:$0xff]   ;;  %v7733_v62 = vld [vmem:[#allocation14 + $0xdc8] ss:$28 sps:$4 sm:$0xff]  }
 0x424   :  { %5728 = vmatpush1.bf16.msra.mxu1 %v7655_v13  ;;  %5892 = vmatpush1.bf16.msra.mxu0 %v7658_v14  ;;  %v7729_v13 = vld [vmem:[#allocation14 + $0xd94] ss:$28 sps:$4 sm:$0xff]   ;;  %v7732_v14 = vld [vmem:[#allocation14 + $0xd9c] ss:$28 sps:$4 sm:$0xff]  }
 0x425   :  { %5729 = vmatprep.subr.bf16.mxu1 %v7663_v18  ;;  %5893 = vmatprep.subr.bf16.mxu0 %v7666_v19  ;;  %v7156_v18 = vadd.f32 %v8519_v55, %v1094_v25  ;;  %v7727_v19 = vld [vmem:[#allocation14 + $0xd90] ss:$28 sps:$4 sm:$0xff]   ;;  %v7783_v25 = vld [vmem:[#allocation14 + $0x398] ss:$28 sps:$4 sm:$0xff]  }
 0x426   :  { %v7739_v55 = vld [vmem:[#allocation14 + $0x10] ss:$28 sps:$4 sm:$0xff]  }
 0x427   :  { %vm2721_vm13 = vcmp.ge.f32.partialorder %v7156_v18, 0.0 }
 0x428   :  { %5730 = vmatpush1.bf16.msra.mxu1 %v7661_v20  ;;  %5894 = vmatpush1.bf16.msra.mxu0 %v7664_v29  ;;  %v7730_v20 = vld [vmem:[#allocation14 + $0xd98] ss:$28 sps:$4 sm:$0xff]   ;;  %v7735_v29 = vld [vmem:[#allocation14 + $0xdcc] ss:$28 sps:$4 sm:$0xff]  }
 0x429   :  { %5731 = vmatprep.subr.bf16.mxu1 %v7669_v31  ;;  %5895 = vmatprep.subr.bf16.mxu0 %v7672_v33  ;;  %v7738_v31 = vld [vmem:[#allocation14 + $0xdd4] ss:$28 sps:$4 sm:$0xff]   ;;  %v2729_v33 = vmul.f32 0.2, %v7156_v18 }
 0x42c   :  { %5732 = vmatpush1.bf16.msra.mxu1 %v7667_v3  ;;  %5896 = vmatpush1.bf16.msra.mxu0 %v7670_v37  ;;  %v7736_v3 = vld [vmem:[#allocation14 + $0xdd0] ss:$28 sps:$4 sm:$0xff]  }
 0x42d   :  { %5733 = vmatprep.subr.bf16.mxu1 %v7675_v39  ;;  %5897 = vmatprep.subr.bf16.mxu0 %v7678_v40  ;;  %v7741_v37 = vld [vmem:[#allocation14 + $0x14] ss:$28 sps:$4 sm:$0xff]   ;;  %v2737_v40 = vsel %vm2721_vm13, %v7156_v18, %v2729_v33  ;;  %v7791_v18 = vld [vmem:[#allocation14 + $0x244] ss:$28 sps:$4 sm:$0xff]  }
 0x42e   :  { %v7742_v39 = vld [vmem:[#allocation14 + $0x1d8] ss:$28 sps:$4 sm:$0xff]   ;;  %v7797_v33 = vld [vmem:[#allocation14 + $0x600] ss:$28 sps:$4 sm:$0xff]  }
 0x430   :  { %5734 = vmatpush1.bf16.msra.mxu1 %v7673_v41  ;;  %5898 = vmatpush1.bf16.msra.mxu0 %v7676_v44  ;;  %v8538_v41 = vpack.c.bf16 %v2737_v40, %v2737_v40  ;;  %v7743_v44 = vld [vmem:[#allocation14 + $0x18] ss:$28 sps:$4 sm:$0xff]   ;;  %v7799_v40 = vld [vmem:[#allocation14 + $0x2b0] ss:$28 sps:$4 sm:$0xff]  }
 0x431   :  { %5735 = vmatprep.subr.bf16.mxu1 %v7681_v45  ;;  %5899 = vmatprep.subr.bf16.mxu0 %v7684_v46  ;;  %v7746_v45 = vld [vmem:[#allocation14 + $0x4c] ss:$28 sps:$4 sm:$0xff]  }
 0x432   :  { %v7747_v46 = vld [vmem:[#allocation14 + $0x210] ss:$28 sps:$4 sm:$0xff]  }
 0x434   :  { %5736 = vmatpush1.bf16.msra.mxu1 %v7679_v47  ;;  %5900 = vmatpush1.bf16.msra.mxu0 %v7682_v48  ;;  %v7744_v47 = vld [vmem:[#allocation14 + $0x48] ss:$28 sps:$4 sm:$0xff]   ;;  %v7748_v48 = vld [vmem:[#allocation14 + $0x50] ss:$28 sps:$4 sm:$0xff]  }
 0x435   :  { %5737 = vmatprep.subr.bf16.mxu1 %v7687_v49  ;;  %5901 = vmatprep.subr.bf16.mxu0 %v7690_v50  ;;  %v7751_v49 = vld [vmem:[#allocation14 + $0x84] ss:$28 sps:$4 sm:$0xff]  }
 0x436   :  { %v7752_v50 = vld [vmem:[#allocation14 + $0x248] ss:$28 sps:$4 sm:$0xff]  }
 0x438   :  { %5738 = vmatpush1.bf16.msra.mxu1 %v7685_v53  ;;  %5902 = vmatpush1.bf16.msra.mxu0 %v7688_v54  ;;  %v7749_v53 = vld [vmem:[#allocation14 + $0x80] ss:$28 sps:$4 sm:$0xff]   ;;  %v7753_v54 = vld [vmem:[#allocation14 + $0x88] ss:$28 sps:$4 sm:$0xff]  }
 0x439   :  { %5739 = vmatprep.subr.bf16.mxu1 %v7693_v57  ;;  %5903 = vmatprep.subr.bf16.mxu0 %v7696_v58  ;;  %v7756_v57 = vld [vmem:[#allocation14 + $0xbc] ss:$28 sps:$4 sm:$0xff]  }
 0x43a   :  { %v7757_v58 = vld [vmem:[#allocation14 + $0x280] ss:$28 sps:$4 sm:$0xff]  }
 0x43c   :  { %5740 = vmatpush1.bf16.msra.mxu1 %v7691_v59  ;;  %5904 = vmatpush1.bf16.msra.mxu0 %v7694_v5  ;;  %v7754_v59 = vld [vmem:[#allocation14 + $0xb8] ss:$28 sps:$4 sm:$0xff]   ;;  %v7758_v5 = vld [vmem:[#allocation14 + $0xc0] ss:$28 sps:$4 sm:$0xff]  }
 0x43d   :  { %5741 = vmatprep.subr.bf16.mxu1 %v7699_v60  ;;  %5905 = vmatprep.subr.bf16.mxu0 %v7702_v61  ;;  %v7761_v60 = vld [vmem:[#allocation14 + $0xf4] ss:$28 sps:$4 sm:$0xff]  }
 0x43e   :  { %v7759_v61 = vld [vmem:[#allocation14 + $0xf0] ss:$28 sps:$4 sm:$0xff]  }
 0x440   :  { %5742 = vmatpush1.bf16.msra.mxu1 %v7697_v63  ;;  %5906 = vmatpush1.bf16.msra.mxu0 %v7700_v0  ;;  %v7763_v63 = vld [vmem:[#allocation14 + $0xf8] ss:$28 sps:$4 sm:$0xff]   ;;  %v7766_v0 = vld [vmem:[#allocation14 + $0x12c] ss:$28 sps:$4 sm:$0xff]  }
 0x441   :  { %5743 = vmatprep.subr.bf16.mxu1 %v7705_v1  ;;  %5907 = vmatprep.subr.bf16.mxu0 %v7708_v2  ;;  %v7767_v1 = vld [vmem:[#allocation14 + $0x2f0] ss:$28 sps:$4 sm:$0xff]   ;;  %v7764_v2 = vld [vmem:[#allocation14 + $0x128] ss:$28 sps:$4 sm:$0xff]  }
 0x444   :  { %5744 = vmatpush1.bf16.msra.mxu1 %v7703_v4  ;;  %5908 = vmatpush1.bf16.msra.mxu0 %v7706_v7  ;;  %v7768_v4 = vld [vmem:[#allocation14 + $0x130] ss:$28 sps:$4 sm:$0xff]   ;;  %v7771_v7 = vld [vmem:[#allocation14 + $0x164] ss:$28 sps:$4 sm:$0xff]  }
 0x445   :  { %5745 = vmatprep.subr.bf16.mxu1 %v7711_v32  ;;  %5909 = vmatprep.subr.bf16.mxu0 %v7714_v6  ;;  %v7772_v32 = vld [vmem:[#allocation14 + $0x328] ss:$28 sps:$4 sm:$0xff]   ;;  %v7769_v6 = vld [vmem:[#allocation14 + $0x160] ss:$28 sps:$4 sm:$0xff]  }
 0x448   :  { %5746 = vmatpush1.bf16.msra.mxu1 %v7709_v8  ;;  %5910 = vmatpush1.bf16.msra.mxu0 %v7712_v9  ;;  %v7773_v8 = vld [vmem:[#allocation14 + $0x168] ss:$28 sps:$4 sm:$0xff]   ;;  %v7776_v9 = vld [vmem:[#allocation14 + $0x19c] ss:$28 sps:$4 sm:$0xff]  }
 0x449   :  { %5747 = vmatprep.subr.bf16.mxu1 %v7717_v10  ;;  %5911 = vmatprep.subr.bf16.mxu0 %v7720_v15  ;;  %v7777_v10 = vld [vmem:[#allocation14 + $0x360] ss:$28 sps:$4 sm:$0xff]   ;;  %v7774_v15 = vld [vmem:[#allocation14 + $0x198] ss:$28 sps:$4 sm:$0xff]  }
 0x44c   :  { %5748 = vmatpush1.bf16.msra.mxu1 %v7715_v30  ;;  %5912 = vmatpush1.bf16.msra.mxu0 %v7718_v21  ;;  %v7778_v30 = vld [vmem:[#allocation14 + $0x1a0] ss:$28 sps:$4 sm:$0xff]   ;;  %v7781_v21 = vld [vmem:[#allocation14 + $0x1d4] ss:$28 sps:$4 sm:$0xff]  }
 0x44d   :  { %5749 = vmatprep.subr.bf16.mxu1 %v7723_v22  ;;  %5913 = vmatprep.subr.bf16.mxu0 %v7726_v52  ;;  %v7782_v22 = vld [vmem:[#allocation14 + $0x558] ss:$28 sps:$4 sm:$0xff]   ;;  %v7779_v52 = vld [vmem:[#allocation14 + $0x1d0] ss:$28 sps:$4 sm:$0xff]  }
 0x450   :  { %5750 = vmatpush1.bf16.msra.mxu1 %v7721_v27  ;;  %5914 = vmatpush1.bf16.msra.mxu0 %v7724_v28  ;;  %v7786_v27 = vld [vmem:[#allocation14 + $0x20c] ss:$28 sps:$4 sm:$0xff]  }
 0x451   :  { %5751 = vmatprep.subr.bf16.mxu1 %v7729_v13  ;;  %5915 = vmatprep.subr.bf16.mxu0 %v7732_v14  ;;  %v7787_v28 = vld [vmem:[#allocation14 + $0x590] ss:$28 sps:$4 sm:$0xff]   ;;  %v7784_v13 = vld [vmem:[#allocation14 + $0x208] ss:$28 sps:$4 sm:$0xff]  }
 0x452   :  { %v7788_v14 = vld [vmem:[#allocation14 + $0x3d0] ss:$28 sps:$4 sm:$0xff]  }
 0x454   :  { %5752 = vmatpush1.bf16.msra.mxu1 %v7727_v19  ;;  %5916 = vmatpush1.bf16.msra.mxu0 %v7730_v20  ;;  %v7792_v19 = vld [vmem:[#allocation14 + $0x5c8] ss:$28 sps:$4 sm:$0xff]   ;;  %v7789_v20 = vld [vmem:[#allocation14 + $0x240] ss:$28 sps:$4 sm:$0xff]  }
 0x455   :  { %5753 = vmatprep.subr.bf16.mxu1 %v7735_v29  ;;  %5917 = vmatprep.subr.bf16.mxu0 %v7738_v31  ;;  %v7793_v29 = vld [vmem:[#allocation14 + $0x408] ss:$28 sps:$4 sm:$0xff]   ;;  %v7796_v31 = vld [vmem:[#allocation14 + $0x27c] ss:$28 sps:$4 sm:$0xff]  }
 0x458   :  { %5754 = vmatpush1.bf16.msra.mxu1 %v7733_v62  ;;  %5918 = vmatpush1.bf16.msra.mxu0 %v7736_v3  ;;  %v7794_v62 = vld [vmem:[#allocation14 + $0x278] ss:$28 sps:$4 sm:$0xff]   ;;  %v7798_v3 = vld [vmem:[#allocation14 + $0x440] ss:$28 sps:$4 sm:$0xff]  }
 0x459   :  { %5928 = vmatprep.subr.bf16.mxu1 %v7741_v37  ;;  %7062 = vmatprep.subr.bf16.mxu0 %v7742_v39  ;;  %v7801_v37 = vld [vmem:[#allocation14 + $0x2b4] ss:$28 sps:$4 sm:$0xff]  }
 0x45a   :  { %v7802_v39 = vld [vmem:[#allocation14 + $0x638] ss:$28 sps:$4 sm:$0xff]  }
 0x45b   :  { %5756 = vmatmul.mubr.bf16.vlgmr.msra.gmra.mrb[8].mxu1 %v8538_v41  ;;  %5920 = vmatmul.mubr.bf16.vlgmr.msra.gmra.mrb[20].mxu0 %v8538_v41 }
 0x45c   :  { %5929 = vmatpush1.bf16.msra.mxu1 %v7739_v55  ;;  %5960 = vmatprep.mubr.bf16.mxu1 %v8490_v23  ;;  %v7803_v55 = vld [vmem:[#allocation14 + $0x478] ss:$28 sps:$4 sm:$0xff]  }
 0x45d   :  { %7063 = vmatpush3.bf16.msra.mxu0 %v7743_v44  ;;  %6124 = vmatprep.mubr.bf16.mxu0 %v8490_v23  ;;  %v7762_v23 = vld [vmem:[#allocation14 + $0x2b8] ss:$28 sps:$4 sm:$0xff]   ;;  %v7806_v44 = vld [vmem:[#allocation14 + $0x2ec] ss:$28 sps:$4 sm:$0xff]  }
 0x45e   :  { %5930 = vmatprep.subr.bf16.mxu1 %v7746_v45  ;;  %7064 = vmatprep.subr.bf16.mxu0 %v7747_v46  ;;  %v7807_v45 = vld [vmem:[#allocation14 + $0x670] ss:$28 sps:$4 sm:$0xff]   ;;  %v7804_v46 = vld [vmem:[#allocation14 + $0x2e8] ss:$28 sps:$4 sm:$0xff]  }
 0x460   :  { %5931 = vmatpush1.bf16.msra.mxu1 %v7744_v47  ;;  %v7808_v47 = vld [vmem:[#allocation14 + $0x4b0] ss:$28 sps:$4 sm:$0xff]  }
 0x461   :  { %7065 = vmatpush3.bf16.msra.mxu0 %v7748_v48  ;;  %5932 = vmatprep.subr.bf16.mxu1 %v7751_v49  ;;  %v7811_v48 = vld [vmem:[#allocation14 + $0x324] ss:$28 sps:$4 sm:$0xff]  }
 0x462   :  { %7066 = vmatprep.subr.bf16.mxu0 %v7752_v50  ;;  %v7812_v49 = vld [vmem:[#allocation14 + $0x6a8] ss:$28 sps:$4 sm:$0xff]   ;;  %v7809_v50 = vld [vmem:[#allocation14 + $0x320] ss:$28 sps:$4 sm:$0xff]  }
 0x464   :  { %5933 = vmatpush1.bf16.msra.mxu1 %v7749_v53  ;;  %v7813_v53 = vld [vmem:[#allocation14 + $0x4e8] ss:$28 sps:$4 sm:$0xff]  }
 0x465   :  { %7067 = vmatpush3.bf16.msra.mxu0 %v7753_v54  ;;  %5934 = vmatprep.subr.bf16.mxu1 %v7756_v57  ;;  %v7816_v54 = vld [vmem:[#allocation14 + $0x35c] ss:$28 sps:$4 sm:$0xff]  }
 0x466   :  { %7068 = vmatprep.subr.bf16.mxu0 %v7757_v58  ;;  %v7817_v57 = vld [vmem:[#allocation14 + $0x6e0] ss:$28 sps:$4 sm:$0xff]   ;;  %v7814_v58 = vld [vmem:[#allocation14 + $0x358] ss:$28 sps:$4 sm:$0xff]  }
 0x468   :  { %5935 = vmatpush1.bf16.msra.mxu1 %v7754_v59  ;;  %v7818_v59 = vld [vmem:[#allocation14 + $0x520] ss:$28 sps:$4 sm:$0xff]  }
 0x469   :  { %7069 = vmatpush3.bf16.msra.mxu0 %v7758_v5  ;;  %5936 = vmatprep.subr.bf16.mxu1 %v7761_v60  ;;  %v7821_v5 = vld [vmem:[#allocation14 + $0x394] ss:$28 sps:$4 sm:$0xff]  }
 0x46a   :  { %7070 = vmatprep.subr.bf16.mxu0 %v7762_v23  ;;  %v7822_v60 = vld [vmem:[#allocation14 + $0x8d8] ss:$28 sps:$4 sm:$0xff]   ;;  %v7819_v23 = vld [vmem:[#allocation14 + $0x390] ss:$28 sps:$4 sm:$0xff]  }
 0x46c   :  { %5937 = vmatpush1.bf16.msra.mxu1 %v7759_v61  ;;  %v7823_v61 = vld [vmem:[#allocation14 + $0x718] ss:$28 sps:$4 sm:$0xff]  }
 0x46d   :  { %7071 = vmatpush3.bf16.msra.mxu0 %v7763_v63  ;;  %5938 = vmatprep.subr.bf16.mxu1 %v7766_v0  ;;  %v7826_v63 = vld [vmem:[#allocation14 + $0x3cc] ss:$28 sps:$4 sm:$0xff]  }
 0x46e   :  { %7072 = vmatprep.subr.bf16.mxu0 %v7767_v1  ;;  %v7827_v0 = vld [vmem:[#allocation14 + $0x910] ss:$28 sps:$4 sm:$0xff]   ;;  %v7824_v1 = vld [vmem:[#allocation14 + $0x3c8] ss:$28 sps:$4 sm:$0xff]  }
 0x470   :  { %5939 = vmatpush1.bf16.msra.mxu1 %v7764_v2  ;;  %v7828_v2 = vld [vmem:[#allocation14 + $0x750] ss:$28 sps:$4 sm:$0xff]  }
 0x471   :  { %7073 = vmatpush3.bf16.msra.mxu0 %v7768_v4  ;;  %5940 = vmatprep.subr.bf16.mxu1 %v7771_v7  ;;  %v7831_v4 = vld [vmem:[#allocation14 + $0x404] ss:$28 sps:$4 sm:$0xff]  }
 0x472   :  { %7074 = vmatprep.subr.bf16.mxu0 %v7772_v32  ;;  %v7832_v7 = vld [vmem:[#allocation14 + $0x948] ss:$28 sps:$4 sm:$0xff]   ;;  %v7829_v32 = vld [vmem:[#allocation14 + $0x400] ss:$28 sps:$4 sm:$0xff]  }
 0x474   :  { %5941 = vmatpush1.bf16.msra.mxu1 %v7769_v6  ;;  %v7836_v6 = vld [vmem:[#allocation14 + $0x43c] ss:$28 sps:$4 sm:$0xff]  }
 0x475   :  { %7075 = vmatpush3.bf16.msra.mxu0 %v7773_v8  ;;  %5942 = vmatprep.subr.bf16.mxu1 %v7776_v9  ;;  %v7837_v8 = vld [vmem:[#allocation14 + $0x980] ss:$28 sps:$4 sm:$0xff]   ;;  %v7834_v9 = vld [vmem:[#allocation14 + $0x438] ss:$28 sps:$4 sm:$0xff]  }
 0x476   :  { %7076 = vmatprep.subr.bf16.mxu0 %v7777_v10  ;;  %v7841_v10 = vld [vmem:[#allocation14 + $0x474] ss:$28 sps:$4 sm:$0xff]  }
 0x478   :  { %5943 = vmatpush1.bf16.msra.mxu1 %v7774_v15  ;;  %v7842_v15 = vld [vmem:[#allocation14 + $0x9b8] ss:$28 sps:$4 sm:$0xff]  }
 0x479   :  { %7077 = vmatpush3.bf16.msra.mxu0 %v7778_v30  ;;  %5944 = vmatprep.subr.bf16.mxu1 %v7781_v21  ;;  %v7839_v30 = vld [vmem:[#allocation14 + $0x470] ss:$28 sps:$4 sm:$0xff]   ;;  %v7843_v21 = vld [vmem:[#allocation14 + $0x7f8] ss:$28 sps:$4 sm:$0xff]  }
 0x47a   :  { %7084 = vmatprep.subr.bf16.mxu0 %v7782_v22  ;;  %v7846_v22 = vld [vmem:[#allocation14 + $0x4ac] ss:$28 sps:$4 sm:$0xff]  }
 0x47c   :  { %6125 = vmatmul.mubr.bf16.vlgmr.msra.gmra.mrb[24].mxu0 %v8492_v26  ;;  %5945 = vmatpush1.bf16.msra.mxu1 %v7779_v52  ;;  %v7847_v52 = vld [vmem:[#allocation14 + $0x9f0] ss:$28 sps:$4 sm:$0xff]  }
 0x47d   :  { %7085 = vmatpush3.bf16.msra.mxu0 %v7783_v25  ;;  %6164 = vmatprep.mubr.bf16.mxu0 %v8496_v12  ;;  %v7844_v25 = vld [vmem:[#allocation14 + $0x4a8] ss:$28 sps:$4 sm:$0xff]  }
 0x47e   :  { %5946 = vmatprep.subr.bf16.mxu1 %v7786_v27  ;;  %7086 = vmatprep.subr.bf16.mxu0 %v7787_v28  ;;  %v7848_v27 = vld [vmem:[#allocation14 + $0x830] ss:$28 sps:$4 sm:$0xff]   ;;  %v7851_v28 = vld [vmem:[#allocation14 + $0x4e4] ss:$28 sps:$4 sm:$0xff]  }
 0x480   :  { %5947 = vmatpush1.bf16.msra.mxu1 %v7784_v13  ;;  %v7852_v13 = vld [vmem:[#allocation14 + $0xa28] ss:$28 sps:$4 sm:$0xff]  }
 0x481   :  { %7087 = vmatpush3.bf16.msra.mxu0 %v7788_v14  ;;  %5948 = vmatprep.subr.bf16.mxu1 %v7791_v18  ;;  %v7849_v14 = vld [vmem:[#allocation14 + $0x4e0] ss:$28 sps:$4 sm:$0xff]   ;;  %v7853_v18 = vld [vmem:[#allocation14 + $0x868] ss:$28 sps:$4 sm:$0xff]  }
 0x482   :  { %7088 = vmatprep.subr.bf16.mxu0 %v7792_v19  ;;  %v7856_v19 = vld [vmem:[#allocation14 + $0x51c] ss:$28 sps:$4 sm:$0xff]  }
 0x484   :  { %5949 = vmatpush1.bf16.msra.mxu1 %v7789_v20  ;;  %v7857_v20 = vld [vmem:[#allocation14 + $0xa60] ss:$28 sps:$4 sm:$0xff]  }
 0x485   :  { %7089 = vmatpush3.bf16.msra.mxu0 %v7793_v29  ;;  %5950 = vmatprep.subr.bf16.mxu1 %v7796_v31  ;;  %v7854_v29 = vld [vmem:[#allocation14 + $0x518] ss:$28 sps:$4 sm:$0xff]   ;;  %v7858_v31 = vld [vmem:[#allocation14 + $0x8a0] ss:$28 sps:$4 sm:$0xff]  }
 0x486   :  { %7090 = vmatprep.subr.bf16.mxu0 %v7797_v33  ;;  %v7861_v33 = vld [vmem:[#allocation14 + $0x554] ss:$28 sps:$4 sm:$0xff]  }
 0x488   :  { %5951 = vmatpush1.bf16.msra.mxu1 %v7794_v62  ;;  %v7862_v62 = vld [vmem:[#allocation14 + $0xc58] ss:$28 sps:$4 sm:$0xff]  }
 0x489   :  { %7091 = vmatpush3.bf16.msra.mxu0 %v7798_v3  ;;  %5952 = vmatprep.subr.bf16.mxu1 %v7801_v37  ;;  %v7859_v3 = vld [vmem:[#allocation14 + $0x550] ss:$28 sps:$4 sm:$0xff]   ;;  %v7863_v37 = vld [vmem:[#allocation14 + $0xa98] ss:$28 sps:$4 sm:$0xff]  }
 0x48a   :  { %7092 = vmatprep.subr.bf16.mxu0 %v7802_v39  ;;  %v7866_v39 = vld [vmem:[#allocation14 + $0x58c] ss:$28 sps:$4 sm:$0xff]  }
 0x48c   :  { %5953 = vmatpush1.bf16.msra.mxu1 %v7799_v40  ;;  %v7867_v40 = vld [vmem:[#allocation14 + $0xc90] ss:$28 sps:$4 sm:$0xff]  }
 0x48d   :  { %7093 = vmatpush3.bf16.msra.mxu0 %v7803_v55  ;;  %5954 = vmatprep.subr.bf16.mxu1 %v7806_v44  ;;  %v7864_v55 = vld [vmem:[#allocation14 + $0x588] ss:$28 sps:$4 sm:$0xff]   ;;  %v7868_v44 = vld [vmem:[#allocation14 + $0xad0] ss:$28 sps:$4 sm:$0xff]  }
 0x48e   :  { %7094 = vmatprep.subr.bf16.mxu0 %v7807_v45  ;;  %v7871_v45 = vld [vmem:[#allocation14 + $0x5c4] ss:$28 sps:$4 sm:$0xff]  }
 0x490   :  { %5955 = vmatpush1.bf16.msra.mxu1 %v7804_v46  ;;  %v7872_v46 = vld [vmem:[#allocation14 + $0xcc8] ss:$28 sps:$4 sm:$0xff]  }
 0x491   :  { %7095 = vmatpush3.bf16.msra.mxu0 %v7808_v47  ;;  %5956 = vmatprep.subr.bf16.mxu1 %v7811_v48  ;;  %v7869_v47 = vld [vmem:[#allocation14 + $0x5c0] ss:$28 sps:$4 sm:$0xff]   ;;  %v7873_v48 = vld [vmem:[#allocation14 + $0xb08] ss:$28 sps:$4 sm:$0xff]  }
 0x492   :  { %7096 = vmatprep.subr.bf16.mxu0 %v7812_v49  ;;  %v7876_v49 = vld [vmem:[#allocation14 + $0x5fc] ss:$28 sps:$4 sm:$0xff]  }
 0x494   :  { %5957 = vmatpush1.bf16.msra.mxu1 %v7809_v50  ;;  %v7877_v50 = vld [vmem:[#allocation14 + $0xd00] ss:$28 sps:$4 sm:$0xff]  }
 0x495   :  { %7097 = vmatpush3.bf16.msra.mxu0 %v7813_v53  ;;  %5958 = vmatprep.subr.bf16.mxu1 %v7816_v54  ;;  %v7874_v53 = vld [vmem:[#allocation14 + $0x5f8] ss:$28 sps:$4 sm:$0xff]   ;;  %v7878_v54 = vld [vmem:[#allocation14 + $0xb40] ss:$28 sps:$4 sm:$0xff]  }
 0x496   :  { %7098 = vmatprep.subr.bf16.mxu0 %v7817_v57  ;;  %v7881_v57 = vld [vmem:[#allocation14 + $0x634] ss:$28 sps:$4 sm:$0xff]  }
 0x498   :  { %5959 = vmatpush1.bf16.msra.mxu1 %v7814_v58  ;;  %v7882_v58 = vld [vmem:[#allocation14 + $0xd38] ss:$28 sps:$4 sm:$0xff]  }
 0x499   :  { %7099 = vmatpush3.bf16.msra.mxu0 %v7818_v59  ;;  %5969 = vmatprep.subr.bf16.mxu1 %v7821_v5  ;;  %v7879_v59 = vld [vmem:[#allocation14 + $0x630] ss:$28 sps:$4 sm:$0xff]   ;;  %v7883_v5 = vld [vmem:[#allocation14 + $0xb78] ss:$28 sps:$4 sm:$0xff]  }
 0x49a   :  { %7106 = vmatprep.subr.bf16.mxu0 %v7822_v60  ;;  %v7886_v60 = vld [vmem:[#allocation14 + $0x66c] ss:$28 sps:$4 sm:$0xff]  }
 0x49b   :  { %5961 = vmatmul.mubr.bf16.vlgmr.msra.gmra.mrb[12].mxu1 %v8492_v26  ;;  %v7833_v26 = vld [vmem:[#allocation14 + $0x788] ss:$28 sps:$4 sm:$0xff]  }
 0x49c   :  { %6165 = vmatmul.mubr.bf16.vlgmr.msra.gmra.mrb[28].mxu0 %v8505_v38  ;;  %5970 = vmatpush1.bf16.msra.mxu1 %v7819_v23  ;;  %v7887_v23 = vld [vmem:[#allocation14 + $0xd70] ss:$28 sps:$4 sm:$0xff]  }
 0x49d   :  { %6001 = vmatprep.mubr.bf16.mxu1 %v8496_v12  ;;  %7107 = vmatpush3.bf16.msra.mxu0 %v7823_v61  ;;  %v7838_v12 = vld [vmem:[#allocation14 + $0x7c0] ss:$28 sps:$4 sm:$0xff]   ;;  %v7884_v61 = vld [vmem:[#allocation14 + $0x668] ss:$28 sps:$4 sm:$0xff]  }
 0x49e   :  { %6204 = vmatprep.mubr.bf16.mxu0 %v8521_v11  ;;  %5971 = vmatprep.subr.bf16.mxu1 %v7826_v63  ;;  %v7888_v63 = vld [vmem:[#allocation14 + $0xbb0] ss:$28 sps:$4 sm:$0xff]  }
 0x49f   :  { %7108 = vmatprep.subr.bf16.mxu0 %v7827_v0  ;;  %v7891_v0 = vld [vmem:[#allocation14 + $0x6a4] ss:$28 sps:$4 sm:$0xff]  }
 0x4a0   :  { %5972 = vmatpush1.bf16.msra.mxu1 %v7824_v1  ;;  %v7892_v1 = vld [vmem:[#allocation14 + $0xda8] ss:$28 sps:$4 sm:$0xff]  }
 0x4a1   :  { %7109 = vmatpush3.bf16.msra.mxu0 %v7828_v2  ;;  %5973 = vmatprep.subr.bf16.mxu1 %v7831_v4  ;;  %v7889_v2 = vld [vmem:[#allocation14 + $0x6a0] ss:$28 sps:$4 sm:$0xff]   ;;  %v7893_v4 = vld [vmem:[#allocation14 + $0xbe8] ss:$28 sps:$4 sm:$0xff]  }
 0x4a2   :  { %7110 = vmatprep.subr.bf16.mxu0 %v7832_v7  ;;  %v7896_v7 = vld [vmem:[#allocation14 + $0x6dc] ss:$28 sps:$4 sm:$0xff]  }
 0x4a4   :  { %5974 = vmatpush1.bf16.msra.mxu1 %v7829_v32  ;;  %v7897_v32 = vld [vmem:[#allocation14 + $0xde0] ss:$28 sps:$4 sm:$0xff]  }
 0x4a5   :  { %7111 = vmatpush3.bf16.msra.mxu0 %v7833_v26  ;;  %5975 = vmatprep.subr.bf16.mxu1 %v7836_v6  ;;  %v7894_v26 = vld [vmem:[#allocation14 + $0x6d8] ss:$28 sps:$4 sm:$0xff]   ;;  %v7898_v6 = vld [vmem:[#allocation14 + $0xc20] ss:$28 sps:$4 sm:$0xff]  }
 0x4a6   :  { %7112 = vmatprep.subr.bf16.mxu0 %v7837_v8  ;;  %v7901_v8 = vld [vmem:[#allocation14 + $0x714] ss:$28 sps:$4 sm:$0xff]  }
 0x4a8   :  { %5976 = vmatpush1.bf16.msra.mxu1 %v7834_v9  ;;  %v7899_v9 = vld [vmem:[#allocation14 + $0x710] ss:$28 sps:$4 sm:$0xff]  }
 0x4a9   :  { %7113 = vmatpush3.bf16.msra.mxu0 %v7838_v12  ;;  %5977 = vmatprep.subr.bf16.mxu1 %v7841_v10  ;;  %v7904_v12 = vld [vmem:[#allocation14 + $0x74c] ss:$28 sps:$4 sm:$0xff]  }
 0x4aa   :  { %7114 = vmatprep.subr.bf16.mxu0 %v7842_v15  ;;  %v7902_v10 = vld [vmem:[#allocation14 + $0x748] ss:$28 sps:$4 sm:$0xff]  }
 0x4ab   :  { %v7907_v15 = vld [vmem:[#allocation14 + $0x784] ss:$28 sps:$4 sm:$0xff]  }
 0x4ac   :  { %5978 = vmatpush1.bf16.msra.mxu1 %v7839_v30  ;;  %v7905_v30 = vld [vmem:[#allocation14 + $0x780] ss:$28 sps:$4 sm:$0xff]  }
 0x4ad   :  { %7115 = vmatpush3.bf16.msra.mxu0 %v7843_v21  ;;  %5979 = vmatprep.subr.bf16.mxu1 %v7846_v22  ;;  %v7910_v21 = vld [vmem:[#allocation14 + $0x7bc] ss:$28 sps:$4 sm:$0xff]  }
 0x4ae   :  { %7116 = vmatprep.subr.bf16.mxu0 %v7847_v52  ;;  %v7908_v22 = vld [vmem:[#allocation14 + $0x7b8] ss:$28 sps:$4 sm:$0xff]  }
 0x4af   :  { %v7913_v52 = vld [vmem:[#allocation14 + $0x7f4] ss:$28 sps:$4 sm:$0xff]  }
 0x4b0   :  { %5980 = vmatpush1.bf16.msra.mxu1 %v7844_v25  ;;  %v7911_v25 = vld [vmem:[#allocation14 + $0x7f0] ss:$28 sps:$4 sm:$0xff]  }
 0x4b1   :  { %7117 = vmatpush3.bf16.msra.mxu0 %v7848_v27  ;;  %5981 = vmatprep.subr.bf16.mxu1 %v7851_v28  ;;  %v7914_v27 = vld [vmem:[#allocation14 + $0x828] ss:$28 sps:$4 sm:$0xff]  }
 0x4b2   :  { %7118 = vmatprep.subr.bf16.mxu0 %v7852_v13  ;;  %v7919_v28 = vld [vmem:[#allocation14 + $0x864] ss:$28 sps:$4 sm:$0xff]   ;;  %v7922_v13 = vld [vmem:[#allocation14 + $0x89c] ss:$28 sps:$4 sm:$0xff]  }
 0x4b4   :  { %5982 = vmatpush1.bf16.msra.mxu1 %v7849_v14  ;;  %v7920_v14 = vld [vmem:[#allocation14 + $0x898] ss:$28 sps:$4 sm:$0xff]  }
 0x4b5   :  { %7119 = vmatpush3.bf16.msra.mxu0 %v7853_v18  ;;  %5983 = vmatprep.subr.bf16.mxu1 %v7856_v19  ;;  %v7925_v18 = vld [vmem:[#allocation14 + $0x8d4] ss:$28 sps:$4 sm:$0xff]  }
 0x4b6   :  { %7120 = vmatprep.subr.bf16.mxu0 %v7857_v20  ;;  %v7923_v19 = vld [vmem:[#allocation14 + $0x8d0] ss:$28 sps:$4 sm:$0xff]  }
 0x4b7   :  { %v7928_v20 = vld [vmem:[#allocation14 + $0x90c] ss:$28 sps:$4 sm:$0xff]  }
 0x4b8   :  { %5984 = vmatpush1.bf16.msra.mxu1 %v7854_v29  ;;  %v7926_v29 = vld [vmem:[#allocation14 + $0x908] ss:$28 sps:$4 sm:$0xff]  }
 0x4b9   :  { %7121 = vmatpush3.bf16.msra.mxu0 %v7858_v31  ;;  %5985 = vmatprep.subr.bf16.mxu1 %v7861_v33  ;;  %v7931_v31 = vld [vmem:[#allocation14 + $0x944] ss:$28 sps:$4 sm:$0xff]  }
 0x4ba   :  { %7128 = vmatprep.subr.bf16.mxu0 %v7862_v62  ;;  %v7929_v33 = vld [vmem:[#allocation14 + $0x940] ss:$28 sps:$4 sm:$0xff]  }
 0x4bb   :  { %v7934_v62 = vld [vmem:[#allocation14 + $0x97c] ss:$28 sps:$4 sm:$0xff]  }
 0x4bc   :  { %6205 = vmatmul.mubr.bf16.vlgmr.msra.gmra.mrb[32].mxu0 %v8523_v17  ;;  %5986 = vmatpush1.bf16.msra.mxu1 %v7859_v3  ;;  %v7932_v3 = vld [vmem:[#allocation14 + $0x978] ss:$28 sps:$4 sm:$0xff]  }
 0x4bd   :  { %7129 = vmatpush3.bf16.msra.mxu0 %v7863_v37  ;;  %6244 = vmatprep.mubr.bf16.mxu0 %v8527_v24  ;;  %v7937_v37 = vld [vmem:[#allocation14 + $0x9b4] ss:$28 sps:$4 sm:$0xff]  }
 0x4be   :  { %5987 = vmatprep.subr.bf16.mxu1 %v7866_v39  ;;  %7130 = vmatprep.subr.bf16.mxu0 %v7867_v40  ;;  %v7935_v39 = vld [vmem:[#allocation14 + $0x9b0] ss:$28 sps:$4 sm:$0xff]  }
 0x4bf   :  { %v7940_v40 = vld [vmem:[#allocation14 + $0x9ec] ss:$28 sps:$4 sm:$0xff]  }
 0x4c0   :  { %5988 = vmatpush1.bf16.msra.mxu1 %v7864_v55  ;;  %v7938_v55 = vld [vmem:[#allocation14 + $0x9e8] ss:$28 sps:$4 sm:$0xff]  }
 0x4c1   :  { %7131 = vmatpush3.bf16.msra.mxu0 %v7868_v44  ;;  %5989 = vmatprep.subr.bf16.mxu1 %v7871_v45  ;;  %v7943_v44 = vld [vmem:[#allocation14 + $0xa24] ss:$28 sps:$4 sm:$0xff]  }
 0x4c2   :  { %7132 = vmatprep.subr.bf16.mxu0 %v7872_v46  ;;  %v7941_v45 = vld [vmem:[#allocation14 + $0xa20] ss:$28 sps:$4 sm:$0xff]  }
 0x4c3   :  { %v7946_v46 = vld [vmem:[#allocation14 + $0xa5c] ss:$28 sps:$4 sm:$0xff]  }
 0x4c4   :  { %5990 = vmatpush1.bf16.msra.mxu1 %v7869_v47  ;;  %v7944_v47 = vld [vmem:[#allocation14 + $0xa58] ss:$28 sps:$4 sm:$0xff]  }
 0x4c5   :  { %7133 = vmatpush3.bf16.msra.mxu0 %v7873_v48  ;;  %5991 = vmatprep.subr.bf16.mxu1 %v7876_v49  ;;  %v7949_v48 = vld [vmem:[#allocation14 + $0xa94] ss:$28 sps:$4 sm:$0xff]  }
 0x4c6   :  { %7134 = vmatprep.subr.bf16.mxu0 %v7877_v50  ;;  %v7947_v49 = vld [vmem:[#allocation14 + $0xa90] ss:$28 sps:$4 sm:$0xff]  }
 0x4c7   :  { %v7952_v50 = vld [vmem:[#allocation14 + $0xacc] ss:$28 sps:$4 sm:$0xff]  }
 0x4c8   :  { %5992 = vmatpush1.bf16.msra.mxu1 %v7874_v53  ;;  %v7950_v53 = vld [vmem:[#allocation14 + $0xac8] ss:$28 sps:$4 sm:$0xff]  }
 0x4c9   :  { %7135 = vmatpush3.bf16.msra.mxu0 %v7878_v54  ;;  %5993 = vmatprep.subr.bf16.mxu1 %v7881_v57  ;;  %v7955_v54 = vld [vmem:[#allocation14 + $0xb04] ss:$28 sps:$4 sm:$0xff]  }
 0x4ca   :  { %7136 = vmatprep.subr.bf16.mxu0 %v7882_v58  ;;  %v7953_v57 = vld [vmem:[#allocation14 + $0xb00] ss:$28 sps:$4 sm:$0xff]  }
 0x4cb   :  { %v7958_v58 = vld [vmem:[#allocation14 + $0xb3c] ss:$28 sps:$4 sm:$0xff]  }
 0x4cc   :  { %5994 = vmatpush1.bf16.msra.mxu1 %v7879_v59  ;;  %v7956_v59 = vld [vmem:[#allocation14 + $0xb38] ss:$28 sps:$4 sm:$0xff]  }
 0x4cd   :  { %7137 = vmatpush3.bf16.msra.mxu0 %v7883_v5  ;;  %5995 = vmatprep.subr.bf16.mxu1 %v7886_v60  ;;  %v7961_v5 = vld [vmem:[#allocation14 + $0xb74] ss:$28 sps:$4 sm:$0xff]  }
 0x4ce   :  { %7138 = vmatprep.subr.bf16.mxu0 %v7887_v23  ;;  %v7959_v60 = vld [vmem:[#allocation14 + $0xb70] ss:$28 sps:$4 sm:$0xff]   ;;  %v8557_v23 = vld [vmem:[#allocation16] sm:$0xff] }
 0x4d0   :  { %5996 = vmatpush1.bf16.msra.mxu1 %v7884_v61  ;;  %v3272_v61 = vrot.slane %v8557_v23, %v8455_v51 }
 0x4d1   :  { %7139 = vmatpush3.bf16.msra.mxu0 %v7888_v63  ;;  %5997 = vmatprep.subr.bf16.mxu1 %v7891_v0  ;;  %v3268_v63 = vrot.slane %v8557_v23, %v8410_v43  ;;  %v3276_v0 = vrot.slane %v8557_v23, %v8458_v56  ;;  %v7970_v56 = vld [vmem:[#allocation14 + $0xc1c] ss:$28 sps:$4 sm:$0xff]  }
 0x4d2   :  { %7140 = vmatprep.subr.bf16.mxu0 %v7892_v1  ;;  %v7962_v1 = vld [vmem:[#allocation14 + $0xba8] ss:$28 sps:$4 sm:$0xff]  }
 0x4d4   :  { %5998 = vmatpush1.bf16.msra.mxu1 %v7889_v2  ;;  %v7967_v2 = vld [vmem:[#allocation14 + $0xbe4] ss:$28 sps:$4 sm:$0xff]  }
 0x4d5   :  { %7141 = vmatpush3.bf16.msra.mxu0 %v7893_v4  ;;  %5999 = vmatprep.subr.bf16.mxu1 %v7896_v7 }
 0x4d6   :  { %7142 = vmatprep.subr.bf16.mxu0 %v7897_v32 }
 0x4d8   :  { %6000 = vmatpush1.bf16.msra.mxu1 %v7894_v26 }
 0x4d9   :  { %7143 = vmatpush3.bf16.msra.mxu0 %v7898_v6  ;;  %6010 = vmatprep.subr.bf16.mxu1 %v7901_v8 }
 0x4db   :  { %6002 = vmatmul.mubr.bf16.vlgmr.msra.gmra.mrb[12].mxu1 %v8505_v38  ;;  %v7916_v38 = vld [vmem:[#allocation14 + $0x82c] ss:$28 sps:$4 sm:$0xff]  }
 0x4dc   :  { %6245 = vmatmul.mubr.bf16.vlgmr.msra.gmra.mrb[36].mxu0 %v8538_v41  ;;  %6011 = vmatpush1.bf16.msra.mxu1 %v7899_v9 }
 0x4dd   :  { %6042 = vmatprep.mubr.bf16.mxu1 %v8521_v11  ;;  %6012 = vmatprep.subr.bf16.mxu1 %v7904_v12  ;;  %v7917_v11 = vld [vmem:[#allocation14 + $0x860] ss:$28 sps:$4 sm:$0xff]  }
 0x4e0   :  { %6013 = vmatpush1.bf16.msra.mxu1 %v7902_v10  ;;  %v7965_v10 = vld [vmem:[#allocation14 + $0xbe0] ss:$28 sps:$4 sm:$0xff]  }
 0x4e1   :  { %6014 = vmatprep.subr.bf16.mxu1 %v7907_v15 }
 0x4e4   :  { %6015 = vmatpush1.bf16.msra.mxu1 %v7905_v30  ;;  %v7968_v30 = vld [vmem:[#allocation14 + $0xc18] ss:$28 sps:$4 sm:$0xff]  }
 0x4e5   :  { %6016 = vmatprep.subr.bf16.mxu1 %v7910_v21  ;;  %v7973_v21 = vld [vmem:[#allocation14 + $0xc54] ss:$28 sps:$4 sm:$0xff]  }
 0x4e8   :  { %6017 = vmatpush1.bf16.msra.mxu1 %v7908_v22  ;;  %v7971_v22 = vld [vmem:[#allocation14 + $0xc50] ss:$28 sps:$4 sm:$0xff]  }
 0x4e9   :  { %6018 = vmatprep.subr.bf16.mxu1 %v7913_v52  ;;  %v7976_v52 = vld [vmem:[#allocation14 + $0xc8c] ss:$28 sps:$4 sm:$0xff]  }
 0x4ec   :  { %6019 = vmatpush1.bf16.msra.mxu1 %v7911_v25  ;;  %v7974_v25 = vld [vmem:[#allocation14 + $0xc88] ss:$28 sps:$4 sm:$0xff]  }
 0x4ed   :  { %6020 = vmatprep.subr.bf16.mxu1 %v7916_v38  ;;  %v7979_v38 = vld [vmem:[#allocation14 + $0xcc4] ss:$28 sps:$4 sm:$0xff]  }
 0x4f0   :  { %6021 = vmatpush1.bf16.msra.mxu1 %v7914_v27  ;;  %v7977_v27 = vld [vmem:[#allocation14 + $0xcc0] ss:$28 sps:$4 sm:$0xff]  }
 0x4f1   :  { %6022 = vmatprep.subr.bf16.mxu1 %v7919_v28  ;;  %v7982_v28 = vld [vmem:[#allocation14 + $0xcfc] ss:$28 sps:$4 sm:$0xff]  }
 0x4f4   :  { %6023 = vmatpush1.bf16.msra.mxu1 %v7917_v11  ;;  %v7980_v11 = vld [vmem:[#allocation14 + $0xcf8] ss:$28 sps:$4 sm:$0xff]  }
 0x4f5   :  { %6024 = vmatprep.subr.bf16.mxu1 %v7922_v13  ;;  %v7985_v13 = vld [vmem:[#allocation14 + $0xd34] ss:$28 sps:$4 sm:$0xff]  }
 0x4f8   :  { %6025 = vmatpush1.bf16.msra.mxu1 %v7920_v14  ;;  %v7983_v14 = vld [vmem:[#allocation14 + $0xd30] ss:$28 sps:$4 sm:$0xff]  }
 0x4f9   :  { %6026 = vmatprep.subr.bf16.mxu1 %v7925_v18  ;;  %v7988_v18 = vld [vmem:[#allocation14 + $0xd6c] ss:$28 sps:$4 sm:$0xff]  }
 0x4fc   :  { %6027 = vmatpush1.bf16.msra.mxu1 %v7923_v19  ;;  %v7986_v19 = vld [vmem:[#allocation14 + $0xd68] ss:$28 sps:$4 sm:$0xff]  }
 0x4fd   :  { %6028 = vmatprep.subr.bf16.mxu1 %v7928_v20  ;;  %v7991_v20 = vld [vmem:[#allocation14 + $0xda4] ss:$28 sps:$4 sm:$0xff]  }
 0x500   :  { %6029 = vmatpush1.bf16.msra.mxu1 %v7926_v29 }
 0x501   :  { %6030 = vmatprep.subr.bf16.mxu1 %v7931_v31 }
 0x504   :  { %6031 = vmatpush1.bf16.msra.mxu1 %v7929_v33  ;;  %v7989_v33 = vld [vmem:[#allocation14 + $0xda0] ss:$28 sps:$4 sm:$0xff]  }
 0x505   :  { %6032 = vmatprep.subr.bf16.mxu1 %v7934_v62 }
 0x508   :  { %6033 = vmatpush1.bf16.msra.mxu1 %v7932_v3 }
 0x509   :  { %6034 = vmatprep.subr.bf16.mxu1 %v7937_v37  ;;  %v7994_v37 = vld [vmem:[#allocation14 + $0xddc] ss:$28 sps:$4 sm:$0xff]  }
 0x50c   :  { %6035 = vmatpush1.bf16.msra.mxu1 %v7935_v39 }
 0x50d   :  { %6036 = vmatprep.subr.bf16.mxu1 %v7940_v40  ;;  %v7992_v40 = vld [vmem:[#allocation14 + $0xdd8] ss:$28 sps:$4 sm:$0xff]  }
 0x510   :  { %6037 = vmatpush1.bf16.msra.mxu1 %v7938_v55  ;;  %v3288_v55 = vrot.slane %v8557_v23, %v1093_v16  ;;  %v3280_v16 = vrot.slane %v8557_v23, %v1085_v34 }
 0x511   :  { %6038 = vmatprep.subr.bf16.mxu1 %v7943_v44 }
 0x514   :  { %6039 = vmatpush1.bf16.msra.mxu1 %v7941_v45 }
 0x515   :  { %6040 = vmatprep.subr.bf16.mxu1 %v7946_v46 }
 0x518   :  { %6041 = vmatpush1.bf16.msra.mxu1 %v7944_v47 }
 0x519   :  { %6051 = vmatprep.subr.bf16.mxu1 %v7949_v48 }
 0x51b   :  { %6043 = vmatmul.mubr.bf16.vlgmr.msra.gmra.mrb[12].mxu1 %v8523_v17  ;;  %v7964_v17 = vld [vmem:[#allocation14 + $0xbac] ss:$28 sps:$4 sm:$0xff]  }
 0x51c   :  { %6052 = vmatpush1.bf16.msra.mxu1 %v7947_v49  ;;  %6083 = vmatprep.mubr.bf16.mxu1 %v8527_v24  ;;  %v3264_v24 = vrot.slane %v8557_v23, %v8407_v42 }
 0x51d   :  { %6053 = vmatprep.subr.bf16.mxu1 %v7952_v50 }
 0x520   :  { %6054 = vmatpush1.bf16.msra.mxu1 %v7950_v53 }
 0x521   :  { %6055 = vmatprep.subr.bf16.mxu1 %v7955_v54 }
 0x524   :  { %6056 = vmatpush1.bf16.msra.mxu1 %v7953_v57 }
 0x525   :  { %6057 = vmatprep.subr.bf16.mxu1 %v7958_v58 }
 0x528   :  { %6058 = vmatpush1.bf16.msra.mxu1 %v7956_v59 }
 0x529   :  { %6059 = vmatprep.subr.bf16.mxu1 %v7961_v5 }
 0x52c   :  { %6060 = vmatpush1.bf16.msra.mxu1 %v7959_v60 }
 0x52d   :  { %6061 = vmatprep.subr.bf16.mxu1 %v7964_v17 }
 0x52e   :  { %v5757_v4 = vpop.f32.mrb[8].mxu1  ;;  %v5921_v7 = vpop.f32.mrb[20].mxu0 }
 0x52f   :  { %v7158_v32 = vadd.f32 %v5757_v4, %v3264_v24  ;;  %v7160_v26 = vadd.f32 %v5921_v7, %v3272_v61  ;;  %v5759_v6 = vpop.f32.mrb[9].mxu1  ;;  %v5923_v8 = vpop.f32.mrb[21].mxu0 }
 0x530   :  { %v7159_v42 = vadd.f32 %v5759_v6, %v3268_v63  ;;  %v7161_v9 = vadd.f32 %v5923_v8, %v3276_v0  ;;  %v5761_v12 = vpop.f32.mrb[10].mxu1  ;;  %v5925_v51 = vpop.f32.mrb[22].mxu0  ;;  %6062 = vmatpush1.bf16.msra.mxu1 %v7962_v1  ;;  %v3284_v0 = vrot.slane %v8557_v23, %v1089_v35 }
 0x531   :  { %6252 = vst [vmem:[#allocation17] sm:$0xff] %v7158_v32  ;;  %6254 = vst [vmem:[#allocation17 + $0x10] sm:$0xff] %v7160_v26  ;;  %v5762_v43 = vpop.f32.mrb[11].mxu1  ;;  %v5926_v15 = vpop.f32.mrb[23].mxu0  ;;  %6063 = vmatprep.subr.bf16.mxu1 %v7967_v2 }
 0x532   :  { %6253 = vst [vmem:[#allocation17 + $0x8] sm:$0xff] %v7159_v42  ;;  %6255 = vst [vmem:[#allocation17 + $0x18] sm:$0xff] %v7161_v9 }
 0x534   :  { %6064 = vmatpush1.bf16.msra.mxu1 %v7965_v10 }
 0x535   :  { %6065 = vmatprep.subr.bf16.mxu1 %v7970_v56 }
 0x538   :  { %6066 = vmatpush1.bf16.msra.mxu1 %v7968_v30 }
 0x539   :  { %6067 = vmatprep.subr.bf16.mxu1 %v7973_v21 }
 0x53c   :  { %6068 = vmatpush1.bf16.msra.mxu1 %v7971_v22 }
 0x53d   :  { %6069 = vmatprep.subr.bf16.mxu1 %v7976_v52 }
 0x540   :  { %6070 = vmatpush1.bf16.msra.mxu1 %v7974_v25 }
 0x541   :  { %6071 = vmatprep.subr.bf16.mxu1 %v7979_v38 }
 0x544   :  { %6072 = vmatpush1.bf16.msra.mxu1 %v7977_v27 }
 0x545   :  { %6073 = vmatprep.subr.bf16.mxu1 %v7982_v28 }
 0x548   :  { %6074 = vmatpush1.bf16.msra.mxu1 %v7980_v11 }
 0x549   :  { %6075 = vmatprep.subr.bf16.mxu1 %v7985_v13 }
 0x54c   :  { %6076 = vmatpush1.bf16.msra.mxu1 %v7983_v14 }
 0x54d   :  { %6077 = vmatprep.subr.bf16.mxu1 %v7988_v18 }
 0x54f   :  { %v7078_v29 = vpop.f32.mrb[24].mxu0 }
 0x550   :  { %v7079_v31 = vpop.f32.mrb[25].mxu0  ;;  %6078 = vmatpush1.bf16.msra.mxu1 %v7986_v19 }
 0x551   :  { %v7080_v62 = vadd.f32 %v7079_v31, %v7078_v29  ;;  %v7081_v3 = vpop.f32.mrb[26].mxu0  ;;  %6079 = vmatprep.subr.bf16.mxu1 %v7991_v20 }
 0x552   :  { %v7082_v39 = vpop.f32.mrb[27].mxu0 }
 0x553   :  { %v6127_v46 = vadd.f32 %v7080_v62, %v3288_v55 }
 0x554   :  { %6080 = vmatpush1.bf16.msra.mxu1 %v7989_v33 }
 0x555   :  { %6081 = vmatprep.subr.bf16.mxu1 %v7994_v37 }
 0x558   :  { %6082 = vmatpush1.bf16.msra.mxu1 %v7992_v40 }
 0x55b   :  { %6084 = vmatmul.mubr.bf16.vlgmr.msra.gmra.mrb[12].mxu1 %v8538_v41 }
 0x56f   :  { %v7100_v44 = vpop.f32.mrb[28].mxu0 }
 0x570   :  { %v7101_v45 = vpop.f32.mrb[29].mxu0 }
 0x571   :  { %v7102_v47 = vadd.f32 %v7101_v45, %v7100_v44  ;;  %v7103_v48 = vpop.f32.mrb[30].mxu0 }
 0x572   :  { %v7104_v49 = vpop.f32.mrb[31].mxu0 }
 0x573   :  { %v6167_v50 = vadd.f32 %v7102_v47, %v6127_v46 }
 0x58f   :  { %v7122_v53 = vpop.f32.mrb[32].mxu0 }
 0x590   :  { %v7123_v54 = vpop.f32.mrb[33].mxu0 }
 0x591   :  { %v7124_v57 = vadd.f32 %v7123_v54, %v7122_v53  ;;  %v7125_v58 = vpop.f32.mrb[34].mxu0 }
 0x592   :  { %v7126_v59 = vpop.f32.mrb[35].mxu0 }
 0x593   :  { %v6207_v5 = vadd.f32 %v7124_v57, %v6167_v50 }
 0x5af   :  { %v7144_v60 = vpop.f32.mrb[36].mxu0 }
 0x5b0   :  { %v7145_v17 = vpop.f32.mrb[37].mxu0 }
 0x5b1   :  { %v7146_v41 = vadd.f32 %v7145_v17, %v7144_v60  ;;  %v7147_v24 = vpop.f32.mrb[38].mxu0 }
 0x5b2   :  { %v7148_v61 = vpop.f32.mrb[39].mxu0 }
 0x5b3   :  { %v6247_v63 = vadd.f32 %v7146_v41, %v6207_v5 }
 0x5b5   :  { %6258 = vst [vmem:[#allocation17 + $0x30] sm:$0xff] %v6247_v63 }
 0x62e   :  { %v6085_v1 = vpop.f32.mrb[12].mxu1 }
 0x62f   :  { %v7162_v2 = vadd.f32 %v6085_v1, %v3280_v16  ;;  %v6087_v4 = vpop.f32.mrb[13].mxu1 }
 0x630   :  { %v7163_v7 = vadd.f32 %v6087_v4, %v3284_v0  ;;  %v6089_v32 = vpop.f32.mrb[14].mxu1 }
 0x631   :  { %6256 = vst [vmem:[#allocation17 + $0x20] sm:$0xff] %v7162_v2  ;;  %v6090_v26 = vpop.f32.mrb[15].mxu1 }
 0x632   :  { %6257 = vst [vmem:[#allocation17 + $0x28] sm:$0xff] %v7163_v7 }
 0x633   :  { %8204 = shalt.err (!%p8201_p6)
}
 0x634   :  { %s8205_s22 = scalar_lea.hbm %s8598_s9, 896 }
 0x635   :  { %p8206_p7 = scmp.ne.s32.totalorder %s8598_s9, %s8205_s22  ;;  %p8209_p8 = scmp.lt.u32.totalorder %s8205_s22, %s8598_s9 }
 0x637   :  { %p8211_p9 = pnand %p8209_p8, %p8206_p7 }
 0x639   :  { %8214 = shalt.err (!%p8211_p9)
}
 0x63a   :  { %6268 = dma.vmem_to_hbm [thread:$0]  %s6266_s24, 896, %s8598_s9, [#allocation4]  }
 0x63b   :  { %8225 = dma.done.wait [#allocation4], 896  }
 0x63c   :  { %8226 = vsyncadd [#allocation4], 4294966400 }
 0x63d   :  { %6272 = vsyncpa [#allocation3], 1 }
 0x63e   :  { %6273 = vsyncpa [#allocation6], 1 }
 0x63f   :  { %6274 = vsyncpa [#allocation9], 1 }
 0x640   :  { %6275 = vsyncpa [#allocation12], 1 }
 0x641   :  { %6276 = vsyncpa [#allocation15], 1 }
 0x642   :  { %6277 = vsyncpa [#allocation4], 1 }

</bundles_post_ra>
